<compile_context>
chip_gen: v7x
topology: tpu7x:2x2x1
jax: 0.10.0
libtpu: 0.0.40
codegen_flags: <defaults>
</compile_context>

<pallas_src>
import math
import numpy as np

import jax
import jax.numpy as jnp
from jax.experimental import pallas as pl
from jax.experimental.pallas import tpu as pltpu

# ---------------- small config consistent with the module ----------------
B = 2
SEQ_LEN = 16        # configs.seq_len
ENC_IN = 4          # configs.enc_in (N variables)
PRED_LEN = 8        # configs.pred_len
D_MODEL = 32        # configs.d_model
N_HEADS = 4         # configs.n_heads
D_FF = 32           # configs.d_ff (also d_keys of the ReprogrammingLayer)
D_LLM = 64          # configs.llm_dim
PATCH_LEN = 8       # configs.patch_len
STRIDE = 4          # configs.stride
VOCAB = 256         # stand-in LLaMA vocab size
NUM_TOKENS = 1000   # hard-coded in the module
S_PAD = 1024        # NUM_TOKENS padded to a lane-aligned multiple of 128

D_KEYS = D_FF
PATCH_NUMS = int((SEQ_LEN - PATCH_LEN) / STRIDE + 2)    # 4
HEAD_NF = D_FF * PATCH_NUMS                             # 128
BN = B * ENC_IN                                         # 8 rows (batch*vars)
ROWS = BN * PATCH_NUMS                                  # 32 query rows
EPS = 1e-5
NEG_INF = -1e30


# ---------------- constant gather matrix: ReplicationPad1d + unfold + circular conv ----
def _patch_conv_gather():
    """(P*T, 3*patch_len) 0/1 matrix; block p maps the normalized length-T series onto the
    concatenated [patch_{p-1}, patch_p, patch_{p+1}] window (circular over patches,
    replication-padded on the right), so the Conv1d(k=3) becomes one matmul."""
    g = np.zeros((PATCH_NUMS, SEQ_LEN, 3 * PATCH_LEN), np.float32)
    for p in range(PATCH_NUMS):
        for k in range(3):                                  # kernel taps -> patches p-1, p, p+1
            j = (p + k - 1) % PATCH_NUMS
            for c in range(PATCH_LEN):
                t = min(j * STRIDE + c, SEQ_LEN - 1)        # ReplicationPad1d((0, stride))
                g[p, t, k * PATCH_LEN + c] = 1.0
    return g.reshape(PATCH_NUMS * SEQ_LEN, 3 * PATCH_LEN)


_PATCH_GATHER = _patch_conv_gather()                        # (64, 24) numpy constant


# ---------------- fully fused forward kernel ----------------
def _timellm_fused_kernel(x_ref, gw_ref, wall_ref, ball_ref, v_ref, wo_ref, bo_ref,
                          whead_ref, bhead_ref, o_ref):
    f32 = jnp.float32
    bf16 = jnp.bfloat16

    # ---- RevIN normalize (Normalize, affine=False): per (batch, var) row over time ----
    x = x_ref[...]                                           # (BN, T) f32
    mean = jnp.mean(x, axis=-1, keepdims=True)
    xc = x - mean
    var = jnp.mean(xc * xc, axis=-1, keepdims=True)          # unbiased=False
    std = jnp.sqrt(var + EPS)
    xn = xc / std                                            # exact div (norm/denorm round trip)

    # ---- PatchEmbedding: pad + unfold + circular Conv1d folded into per-patch matmuls.
    #      enc row index is r = p*BN + bn (keeps later slices sublane-aligned).
    xn_b = xn.astype(bf16)
    enc = jnp.concatenate(
        [jnp.dot(xn_b, gw_ref[p * SEQ_LEN:(p + 1) * SEQ_LEN, :],
                 preferred_element_type=f32)
         for p in range(PATCH_NUMS)], axis=0)                # (ROWS, d_model) f32

    # ---- all-head scores in one wide matmul.  W_all = scale * Wq_h @ K_h^T (per head,
    #      concatenated along lanes); b_all carries scale * bq_h @ K_h^T and the -inf
    #      key-padding mask for tokens >= NUM_TOKENS.
    s_all = jnp.dot(enc.astype(bf16), wall_ref[...],
                    preferred_element_type=f32) + ball_ref[...]   # (ROWS, H*S_PAD)

    # ---- reprogramming cross-attention, head loop over 1024-lane-aligned slices;
    #      Wo (pre-sliced to [:, :d_ff]) accumulation fused in ----
    rep = bo_ref[...]                                        # (1, d_ff); broadcasts up
    for h in range(N_HEADS):
        s = s_all[:, h * S_PAD:(h + 1) * S_PAD]              # (ROWS, S_PAD), aligned slice
        m = jnp.max(s, axis=-1, keepdims=True)
        e = jnp.exp(s - m)
        a = e * pl.reciprocal(jnp.sum(e, axis=-1, keepdims=True), approx=True)
        oh = jnp.dot(a.astype(bf16), v_ref[h],
                     preferred_element_type=f32)             # (ROWS, E)
        rep = rep + jnp.dot(oh.astype(bf16), wo_ref[h],
                            preferred_element_type=f32)      # (ROWS, d_ff)

    # TODO(synk): frozen LLaMA backbone has no Pallas equivalent; it is an identity
    # pass-through of inputs_embeds, so only the patch tokens / first d_ff channels survive
    # (the d_ff slice is already folded into Wo/bo above).

    # ---- FlattenHead (permutation folded into whead) + RevIN denormalize ----
    head = bhead_ref[...]                                    # (1, pred_len)
    for p in range(PATCH_NUMS):
        head = head + jnp.dot(rep[p * BN:(p + 1) * BN, :].astype(bf16),
                              whead_ref[p * D_FF:(p + 1) * D_FF, :],
                              preferred_element_type=f32)    # (BN, pred_len)
    o_ref[...] = head * std + mean


# ---------------- full forecast ----------------
def forecast(x_enc, p):
    Bb, T, N = x_enc.shape
    x_rows = jnp.transpose(x_enc, (0, 2, 1)).reshape(Bb * N, T).astype(jnp.float32)

    # TODO(synk): summary statistics (min/max/median/trend/FFT lags) and the LLaMA tokenizer
    # prompt only feed the frozen-LLM text prompt; with the identity backbone stand-in they
    # cannot influence the sliced output, so they are elided (dead code).

    f32 = jnp.float32
    bf = lambda a: a.astype(jnp.bfloat16)
    scale = 1.0 / math.sqrt(D_KEYS)
    pad_s = S_PAD - NUM_TOKENS

    # --- parameter-only chain, constant-folded outside the kernel (XLA) ---
    src = p["W_map"] @ p["word_emb"] + p["b_map"][:, None]            # (num_tokens, d_llm)
    k = src @ p["Wk"] + p["bk"][None, :]                               # (num_tokens, H*E)
    v = src @ p["Wv"] + p["bv"][None, :]                               # (num_tokens, H*E)

    k_h = k.reshape(NUM_TOKENS, N_HEADS, D_KEYS)                       # (S, H, E)
    wq_h = p["Wq"].reshape(D_MODEL, N_HEADS, D_KEYS)                   # (d_model, H, E)
    bq_h = p["bq"].reshape(N_HEADS, D_KEYS)                            # (H, E)

    # W_all[d, h*S_PAD + s] = scale * sum_e Wq[d,h,e] * K[s,h,e];  padded keys -> 0
    wall = jnp.einsum("dhe,she->dhs", wq_h, k_h) * scale               # (d_model, H, S)
    wall = jnp.pad(wall, ((0, 0), (0, 0), (0, pad_s))).reshape(D_MODEL, N_HEADS * S_PAD)
    # b_all carries the query bias term AND the key-padding mask (-inf on padded columns)
    ball = jnp.einsum("he,she->hs", bq_h, k_h) * scale                 # (H, S)
    ball = jnp.pad(ball, ((0, 0), (0, pad_s)), constant_values=NEG_INF)
    ball = ball.reshape(1, N_HEADS * S_PAD).astype(f32)

    # head-major V, zero-padded along tokens (masked out by b_all before softmax)
    v_heads = jnp.pad(v.reshape(NUM_TOKENS, N_HEADS, D_KEYS), ((0, pad_s), (0, 0), (0, 0)))
    v_heads = jnp.transpose(v_heads, (1, 0, 2))                        # (H, S_PAD, E)

    # out projection, head-major, with the post-LLM d_ff slice folded in
    wo_heads = p["Wo"][:, :D_FF].reshape(N_HEADS, D_KEYS, D_FF)        # (H, E, d_ff)
    bo = p["bo"][:D_FF][None, :].astype(f32)                           # (1, d_ff)

    # patch conv (ReplicationPad + unfold + circular Conv1d) folded into one gather-matmul
    wmat = jnp.transpose(p["conv_w"], (2, 1, 0)).reshape(3 * PATCH_LEN, D_MODEL)
    gw = jnp.asarray(_PATCH_GATHER) @ wmat                             # (P*T, d_model)

    # FlattenHead weight, permuted so row c*P+p -> p*D_FF+c
    whead_perm = (p["W_head"].reshape(D_FF, PATCH_NUMS, PRED_LEN)
                  .transpose(1, 0, 2).reshape(PATCH_NUMS * D_FF, PRED_LEN))
    bhead = p["b_head"][None, :].astype(f32)

    args = (x_rows, bf(gw), bf(wall), ball, bf(v_heads), bf(wo_heads), bo,
            bf(whead_perm), bhead)

    flops = 2 * (PATCH_NUMS * BN * SEQ_LEN * D_MODEL            # patch conv
                 + ROWS * D_MODEL * N_HEADS * S_PAD             # fused Q@K^T scores
                 + N_HEADS * (ROWS * S_PAD * D_KEYS             # A @ V
                              + ROWS * D_KEYS * D_FF)           # Wo accumulation
                 + PATCH_NUMS * BN * D_FF * PRED_LEN)           # head
    bytes_accessed = (sum(int(np.prod(a.shape)) * a.dtype.itemsize for a in args)
                      + BN * PRED_LEN * 4)

    def full_spec(a):
        return pl.BlockSpec(a.shape, lambda i: (0,) * a.ndim)

    out_rows = pl.pallas_call(
        _timellm_fused_kernel,
        out_shape=jax.ShapeDtypeStruct((BN, PRED_LEN), jnp.float32),
        grid=(1,),
        in_specs=[full_spec(a) for a in args],
        out_specs=pl.BlockSpec((BN, PRED_LEN), lambda i: (0, 0)),
        compiler_params=pltpu.CompilerParams(dimension_semantics=("arbitrary",)),
        cost_estimate=pl.CostEstimate(flops=flops,
                                      transcendentals=N_HEADS * ROWS * S_PAD,
                                      bytes_accessed=bytes_accessed),
    )(*args)

    out = jnp.transpose(out_rows.reshape(Bb, N, PRED_LEN), (0, 2, 1))   # (B, pred_len, N)
    return out


# ---------------- deterministic parameter init ----------------
def init_params(key):
    ks = jax.random.split(key, 16)
    s = 0.02
    nrm = lambda k, shp: (jax.random.normal(k, shp, jnp.float32) * s)
    p = {
        "word_emb": nrm(ks[0], (VOCAB, D_LLM)),
        "W_map": nrm(ks[1], (NUM_TOKENS, VOCAB)),        # torch Linear(vocab, num_tokens).weight
        "b_map": nrm(ks[2], (NUM_TOKENS,)),
        "conv_w": nrm(ks[3], (D_MODEL, PATCH_LEN, 3)),   # TokenEmbedding Conv1d weight
        "Wq": nrm(ks[4], (D_MODEL, N_HEADS * D_KEYS)),
        "bq": nrm(ks[5], (N_HEADS * D_KEYS,)),
        "Wk": nrm(ks[6], (D_LLM, N_HEADS * D_KEYS)),
        "bk": nrm(ks[7], (N_HEADS * D_KEYS,)),
        "Wv": nrm(ks[8], (D_LLM, N_HEADS * D_KEYS)),
        "bv": nrm(ks[9], (N_HEADS * D_KEYS,)),
        "Wo": nrm(ks[10], (N_HEADS * D_KEYS, D_LLM)),
        "bo": nrm(ks[11], (D_LLM,)),
        "W_head": nrm(ks[12], (HEAD_NF, PRED_LEN)),
        "b_head": nrm(ks[13], (PRED_LEN,)),
    }
    return p


if __name__ == "__main__":
    key = jax.random.PRNGKey(0)
    kx, kp = jax.random.split(key)
    x_enc = jax.random.normal(kx, (B, SEQ_LEN, ENC_IN), dtype=jnp.float32)
    params = init_params(kp)

    dec_out = jax.jit(forecast)(x_enc, params)
    dec_out = dec_out[:, -PRED_LEN:, :]          # Model.forward slicing
    jax.block_until_ready(dec_out)
    assert dec_out.shape == (B, PRED_LEN, ENC_IN)
    assert bool(jnp.all(jnp.isfinite(dec_out)))
    print("KERNEL_OK")
</pallas_src>

<mosaic_0001>
module attributes {stable_mosaic.version = 11 : i64} {
  func.func @_timellm_fused_kernel(%arg0: i32, %arg1: memref<8x16xf32, #tpu.memory_space<vmem>>, %arg2: memref<64x32xbf16, #tpu.memory_space<vmem>>, %arg3: memref<32x4096xbf16, #tpu.memory_space<vmem>>, %arg4: memref<1x4096xf32, #tpu.memory_space<vmem>>, %arg5: memref<4x1024x32xbf16, #tpu.memory_space<vmem>>, %arg6: memref<4x32x32xbf16, #tpu.memory_space<vmem>>, %arg7: memref<1x32xf32, #tpu.memory_space<vmem>>, %arg8: memref<128x8xbf16, #tpu.memory_space<vmem>>, %arg9: memref<1x8xf32, #tpu.memory_space<vmem>>, %arg10: memref<8x8xf32, #tpu.memory_space<vmem>>) attributes {dimension_semantics = [#tpu.dimension_semantics<arbitrary>], iteration_bounds = array<i64: 1>, scalar_prefetch = 0 : i64, scratch_operands = 0 : i64, tpu.core_type = #tpu.core_type<tc>, window_params = [{pipeline_mode = #tpu.pipeline_mode<synchronous>, transform_indices = @transform_0, window_bounds = array<i64: 8, 16>}, {pipeline_mode = #tpu.pipeline_mode<synchronous>, transform_indices = @transform_1, window_bounds = array<i64: 64, 32>}, {pipeline_mode = #tpu.pipeline_mode<synchronous>, transform_indices = @transform_2, window_bounds = array<i64: 32, 4096>}, {pipeline_mode = #tpu.pipeline_mode<synchronous>, transform_indices = @transform_3, window_bounds = array<i64: 1, 4096>}, {pipeline_mode = #tpu.pipeline_mode<synchronous>, transform_indices = @transform_4, window_bounds = array<i64: 4, 1024, 32>}, {pipeline_mode = #tpu.pipeline_mode<synchronous>, transform_indices = @transform_5, window_bounds = array<i64: 4, 32, 32>}, {pipeline_mode = #tpu.pipeline_mode<synchronous>, transform_indices = @transform_6, window_bounds = array<i64: 1, 32>}, {pipeline_mode = #tpu.pipeline_mode<synchronous>, transform_indices = @transform_7, window_bounds = array<i64: 128, 8>}, {pipeline_mode = #tpu.pipeline_mode<synchronous>, transform_indices = @transform_8, window_bounds = array<i64: 1, 8>}, {pipeline_mode = #tpu.pipeline_mode<synchronous>, transform_indices = @transform_9, window_bounds = array<i64: 8, 8>}]} {
    %c0 = arith.constant 0 : index
    %c0_0 = arith.constant 0 : index
    %0 = vector.load %arg1[%c0, %c0_0] : memref<8x16xf32, #tpu.memory_space<vmem>>, vector<8x16xf32>
    %cst = arith.constant dense<0.000000e+00> : vector<8xf32>
    %1 = vector.multi_reduction <add>, %0, %cst [1] : vector<8x16xf32> to vector<8xf32>
    %2 = vector.shape_cast %1 : vector<8xf32> to vector<8x1xf32>
    %cst_1 = arith.constant 1.600000e+01 : f32
    %3 = vector.broadcast %cst_1 : f32 to vector<8x1xf32>
    %4 = arith.divf %2, %3 : vector<8x1xf32>
    %5 = vector.broadcast %4 : vector<8x1xf32> to vector<8x16xf32>
    %6 = arith.subf %0, %5 : vector<8x16xf32>
    %7 = arith.mulf %6, %6 : vector<8x16xf32>
    %cst_2 = arith.constant dense<0.000000e+00> : vector<8xf32>
    %8 = vector.multi_reduction <add>, %7, %cst_2 [1] : vector<8x16xf32> to vector<8xf32>
    %9 = vector.shape_cast %8 : vector<8xf32> to vector<8x1xf32>
    %cst_3 = arith.constant 1.600000e+01 : f32
    %10 = vector.broadcast %cst_3 : f32 to vector<8x1xf32>
    %11 = arith.divf %9, %10 : vector<8x1xf32>
    %cst_4 = arith.constant 9.99999974E-6 : f32
    %12 = vector.broadcast %cst_4 : f32 to vector<8x1xf32>
    %13 = arith.addf %11, %12 : vector<8x1xf32>
    %14 = math.sqrt %13 : vector<8x1xf32>
    %15 = vector.broadcast %14 : vector<8x1xf32> to vector<8x16xf32>
    %16 = arith.divf %6, %15 : vector<8x16xf32>
    %17 = arith.truncf %16 : vector<8x16xf32> to vector<8x16xbf16>
    %c0_5 = arith.constant 0 : index
    %c0_6 = arith.constant 0 : index
    %18 = vector.load %arg2[%c0_5, %c0_6] : memref<64x32xbf16, #tpu.memory_space<vmem>>, vector<16x32xbf16>
    %cst_7 = arith.constant dense<0.000000e+00> : vector<8x32xf32>
    %19 = tpu.matmul %17, %18, %cst_7 {dimension_numbers = #tpu.dot_dimension_numbers<[1], [0], [0], [1], [0, 0, 1, 1], [], []>} : vector<8x16xbf16>, vector<16x32xbf16>, vector<8x32xf32> -> vector<8x32xf32>
    %c16 = arith.constant 16 : index
    %c0_8 = arith.constant 0 : index
    %20 = vector.load %arg2[%c16, %c0_8] : memref<64x32xbf16, #tpu.memory_space<vmem>>, vector<16x32xbf16>
    %cst_9 = arith.constant dense<0.000000e+00> : vector<8x32xf32>
    %21 = tpu.matmul %17, %20, %cst_9 {dimension_numbers = #tpu.dot_dimension_numbers<[1], [0], [0], [1], [0, 0, 1, 1], [], []>} : vector<8x16xbf16>, vector<16x32xbf16>, vector<8x32xf32> -> vector<8x32xf32>
    %c32 = arith.constant 32 : index
    %c0_10 = arith.constant 0 : index
    %22 = vector.load %arg2[%c32, %c0_10] : memref<64x32xbf16, #tpu.memory_space<vmem>>, vector<16x32xbf16>
    %cst_11 = arith.constant dense<0.000000e+00> : vector<8x32xf32>
    %23 = tpu.matmul %17, %22, %cst_11 {dimension_numbers = #tpu.dot_dimension_numbers<[1], [0], [0], [1], [0, 0, 1, 1], [], []>} : vector<8x16xbf16>, vector<16x32xbf16>, vector<8x32xf32> -> vector<8x32xf32>
    %c48 = arith.constant 48 : index
    %c0_12 = arith.constant 0 : index
    %24 = vector.load %arg2[%c48, %c0_12] : memref<64x32xbf16, #tpu.memory_space<vmem>>, vector<16x32xbf16>
    %cst_13 = arith.constant dense<0.000000e+00> : vector<8x32xf32>
    %25 = tpu.matmul %17, %24, %cst_13 {dimension_numbers = #tpu.dot_dimension_numbers<[1], [0], [0], [1], [0, 0, 1, 1], [], []>} : vector<8x16xbf16>, vector<16x32xbf16>, vector<8x32xf32> -> vector<8x32xf32>
    %26 = tpu.concatenate %19, %21, %23, %25 in 0 : vector<8x32xf32>, vector<8x32xf32>, vector<8x32xf32>, vector<8x32xf32> -> vector<32x32xf32>
    %27 = arith.truncf %26 : vector<32x32xf32> to vector<32x32xbf16>
    %c0_14 = arith.constant 0 : index
    %c0_15 = arith.constant 0 : index
    %28 = vector.load %arg3[%c0_14, %c0_15] : memref<32x4096xbf16, #tpu.memory_space<vmem>>, vector<32x4096xbf16>
    %cst_16 = arith.constant dense<0.000000e+00> : vector<32x4096xf32>
    %29 = tpu.matmul %27, %28, %cst_16 {dimension_numbers = #tpu.dot_dimension_numbers<[1], [0], [0], [1], [0, 0, 1, 1], [], []>} : vector<32x32xbf16>, vector<32x4096xbf16>, vector<32x4096xf32> -> vector<32x4096xf32>
    %c0_17 = arith.constant 0 : index
    %c0_18 = arith.constant 0 : index
    %30 = vector.load %arg4[%c0_17, %c0_18] : memref<1x4096xf32, #tpu.memory_space<vmem>>, vector<1x4096xf32>
    %31 = vector.broadcast %30 : vector<1x4096xf32> to vector<32x4096xf32>
    %32 = arith.addf %29, %31 : vector<32x4096xf32>
    %c0_19 = arith.constant 0 : index
    %c0_20 = arith.constant 0 : index
    %33 = vector.load %arg7[%c0_19, %c0_20] : memref<1x32xf32, #tpu.memory_space<vmem>>, vector<1x32xf32>
    %34 = vector.extract_strided_slice %32 {offsets = [0, 0], sizes = [32, 1024], strides = [1, 1]} : vector<32x4096xf32> to vector<32x1024xf32>
    %cst_21 = arith.constant dense<0xFF800000> : vector<32xf32>
    %35 = vector.multi_reduction <maximumf>, %34, %cst_21 [1] : vector<32x1024xf32> to vector<32xf32>
    %36 = vector.shape_cast %35 : vector<32xf32> to vector<32x1xf32>
    %37 = vector.broadcast %36 : vector<32x1xf32> to vector<32x1024xf32>
    %38 = arith.subf %34, %37 : vector<32x1024xf32>
    %39 = math.exp %38 : vector<32x1024xf32>
    %cst_22 = arith.constant dense<0.000000e+00> : vector<32xf32>
    %40 = vector.multi_reduction <add>, %39, %cst_22 [1] : vector<32x1024xf32> to vector<32xf32>
    %41 = vector.shape_cast %40 : vector<32xf32> to vector<32x1xf32>
    %42 = tpu.reciprocal %41 {approx = true} : vector<32x1xf32> -> vector<32x1xf32>
    %43 = vector.broadcast %42 : vector<32x1xf32> to vector<32x1024xf32>
    %44 = arith.mulf %39, %43 : vector<32x1024xf32>
    %45 = arith.truncf %44 : vector<32x1024xf32> to vector<32x1024xbf16>
    %c0_23 = arith.constant 0 : index
    %c0_24 = arith.constant 0 : index
    %c0_25 = arith.constant 0 : index
    %46 = vector.load %arg5[%c0_23, %c0_24, %c0_25] : memref<4x1024x32xbf16, #tpu.memory_space<vmem>>, vector<1x1024x32xbf16>
    %47 = vector.shape_cast %46 : vector<1x1024x32xbf16> to vector<1024x32xbf16>
    %cst_26 = arith.constant dense<0.000000e+00> : vector<32x32xf32>
    %48 = tpu.matmul %45, %47, %cst_26 {dimension_numbers = #tpu.dot_dimension_numbers<[1], [0], [0], [1], [0, 0, 1, 1], [], []>} : vector<32x1024xbf16>, vector<1024x32xbf16>, vector<32x32xf32> -> vector<32x32xf32>
    %49 = arith.truncf %48 : vector<32x32xf32> to vector<32x32xbf16>
    %c0_27 = arith.constant 0 : index
    %c0_28 = arith.constant 0 : index
    %c0_29 = arith.constant 0 : index
    %50 = vector.load %arg6[%c0_27, %c0_28, %c0_29] : memref<4x32x32xbf16, #tpu.memory_space<vmem>>, vector<1x32x32xbf16>
    %51 = vector.shape_cast %50 : vector<1x32x32xbf16> to vector<32x32xbf16>
    %cst_30 = arith.constant dense<0.000000e+00> : vector<32x32xf32>
    %52 = tpu.matmul %49, %51, %cst_30 {dimension_numbers = #tpu.dot_dimension_numbers<[1], [0], [0], [1], [0, 0, 1, 1], [], []>} : vector<32x32xbf16>, vector<32x32xbf16>, vector<32x32xf32> -> vector<32x32xf32>
    %53 = vector.broadcast %33 : vector<1x32xf32> to vector<32x32xf32>
    %54 = arith.addf %53, %52 : vector<32x32xf32>
    %55 = vector.extract_strided_slice %32 {offsets = [0, 1024], sizes = [32, 1024], strides = [1, 1]} : vector<32x4096xf32> to vector<32x1024xf32>
    %cst_31 = arith.constant dense<0xFF800000> : vector<32xf32>
    %56 = vector.multi_reduction <maximumf>, %55, %cst_31 [1] : vector<32x1024xf32> to vector<32xf32>
    %57 = vector.shape_cast %56 : vector<32xf32> to vector<32x1xf32>
    %58 = vector.broadcast %57 : vector<32x1xf32> to vector<32x1024xf32>
    %59 = arith.subf %55, %58 : vector<32x1024xf32>
    %60 = math.exp %59 : vector<32x1024xf32>
    %cst_32 = arith.constant dense<0.000000e+00> : vector<32xf32>
    %61 = vector.multi_reduction <add>, %60, %cst_32 [1] : vector<32x1024xf32> to vector<32xf32>
    %62 = vector.shape_cast %61 : vector<32xf32> to vector<32x1xf32>
    %63 = tpu.reciprocal %62 {approx = true} : vector<32x1xf32> -> vector<32x1xf32>
    %64 = vector.broadcast %63 : vector<32x1xf32> to vector<32x1024xf32>
    %65 = arith.mulf %60, %64 : vector<32x1024xf32>
    %66 = arith.truncf %65 : vector<32x1024xf32> to vector<32x1024xbf16>
    %c1 = arith.constant 1 : index
    %c0_33 = arith.constant 0 : index
    %c0_34 = arith.constant 0 : index
    %67 = vector.load %arg5[%c1, %c0_33, %c0_34] : memref<4x1024x32xbf16, #tpu.memory_space<vmem>>, vector<1x1024x32xbf16>
    %68 = vector.shape_cast %67 : vector<1x1024x32xbf16> to vector<1024x32xbf16>
    %cst_35 = arith.constant dense<0.000000e+00> : vector<32x32xf32>
    %69 = tpu.matmul %66, %68, %cst_35 {dimension_numbers = #tpu.dot_dimension_numbers<[1], [0], [0], [1], [0, 0, 1, 1], [], []>} : vector<32x1024xbf16>, vector<1024x32xbf16>, vector<32x32xf32> -> vector<32x32xf32>
    %70 = arith.truncf %69 : vector<32x32xf32> to vector<32x32xbf16>
    %c1_36 = arith.constant 1 : index
    %c0_37 = arith.constant 0 : index
    %c0_38 = arith.constant 0 : index
    %71 = vector.load %arg6[%c1_36, %c0_37, %c0_38] : memref<4x32x32xbf16, #tpu.memory_space<vmem>>, vector<1x32x32xbf16>
    %72 = vector.shape_cast %71 : vector<1x32x32xbf16> to vector<32x32xbf16>
    %cst_39 = arith.constant dense<0.000000e+00> : vector<32x32xf32>
    %73 = tpu.matmul %70, %72, %cst_39 {dimension_numbers = #tpu.dot_dimension_numbers<[1], [0], [0], [1], [0, 0, 1, 1], [], []>} : vector<32x32xbf16>, vector<32x32xbf16>, vector<32x32xf32> -> vector<32x32xf32>
    %74 = arith.addf %54, %73 : vector<32x32xf32>
    %75 = vector.extract_strided_slice %32 {offsets = [0, 2048], sizes = [32, 1024], strides = [1, 1]} : vector<32x4096xf32> to vector<32x1024xf32>
    %cst_40 = arith.constant dense<0xFF800000> : vector<32xf32>
    %76 = vector.multi_reduction <maximumf>, %75, %cst_40 [1] : vector<32x1024xf32> to vector<32xf32>
    %77 = vector.shape_cast %76 : vector<32xf32> to vector<32x1xf32>
    %78 = vector.broadcast %77 : vector<32x1xf32> to vector<32x1024xf32>
    %79 = arith.subf %75, %78 : vector<32x1024xf32>
    %80 = math.exp %79 : vector<32x1024xf32>
    %cst_41 = arith.constant dense<0.000000e+00> : vector<32xf32>
    %81 = vector.multi_reduction <add>, %80, %cst_41 [1] : vector<32x1024xf32> to vector<32xf32>
    %82 = vector.shape_cast %81 : vector<32xf32> to vector<32x1xf32>
    %83 = tpu.reciprocal %82 {approx = true} : vector<32x1xf32> -> vector<32x1xf32>
    %84 = vector.broadcast %83 : vector<32x1xf32> to vector<32x1024xf32>
    %85 = arith.mulf %80, %84 : vector<32x1024xf32>
    %86 = arith.truncf %85 : vector<32x1024xf32> to vector<32x1024xbf16>
    %c2 = arith.constant 2 : index
    %c0_42 = arith.constant 0 : index
    %c0_43 = arith.constant 0 : index
    %87 = vector.load %arg5[%c2, %c0_42, %c0_43] : memref<4x1024x32xbf16, #tpu.memory_space<vmem>>, vector<1x1024x32xbf16>
    %88 = vector.shape_cast %87 : vector<1x1024x32xbf16> to vector<1024x32xbf16>
    %cst_44 = arith.constant dense<0.000000e+00> : vector<32x32xf32>
    %89 = tpu.matmul %86, %88, %cst_44 {dimension_numbers = #tpu.dot_dimension_numbers<[1], [0], [0], [1], [0, 0, 1, 1], [], []>} : vector<32x1024xbf16>, vector<1024x32xbf16>, vector<32x32xf32> -> vector<32x32xf32>
    %90 = arith.truncf %89 : vector<32x32xf32> to vector<32x32xbf16>
    %c2_45 = arith.constant 2 : index
    %c0_46 = arith.constant 0 : index
    %c0_47 = arith.constant 0 : index
    %91 = vector.load %arg6[%c2_45, %c0_46, %c0_47] : memref<4x32x32xbf16, #tpu.memory_space<vmem>>, vector<1x32x32xbf16>
    %92 = vector.shape_cast %91 : vector<1x32x32xbf16> to vector<32x32xbf16>
    %cst_48 = arith.constant dense<0.000000e+00> : vector<32x32xf32>
    %93 = tpu.matmul %90, %92, %cst_48 {dimension_numbers = #tpu.dot_dimension_numbers<[1], [0], [0], [1], [0, 0, 1, 1], [], []>} : vector<32x32xbf16>, vector<32x32xbf16>, vector<32x32xf32> -> vector<32x32xf32>
    %94 = arith.addf %74, %93 : vector<32x32xf32>
    %95 = vector.extract_strided_slice %32 {offsets = [0, 3072], sizes = [32, 1024], strides = [1, 1]} : vector<32x4096xf32> to vector<32x1024xf32>
    %cst_49 = arith.constant dense<0xFF800000> : vector<32xf32>
    %96 = vector.multi_reduction <maximumf>, %95, %cst_49 [1] : vector<32x1024xf32> to vector<32xf32>
    %97 = vector.shape_cast %96 : vector<32xf32> to vector<32x1xf32>
    %98 = vector.broadcast %97 : vector<32x1xf32> to vector<32x1024xf32>
    %99 = arith.subf %95, %98 : vector<32x1024xf32>
    %100 = math.exp %99 : vector<32x1024xf32>
    %cst_50 = arith.constant dense<0.000000e+00> : vector<32xf32>
    %101 = vector.multi_reduction <add>, %100, %cst_50 [1] : vector<32x1024xf32> to vector<32xf32>
    %102 = vector.shape_cast %101 : vector<32xf32> to vector<32x1xf32>
    %103 = tpu.reciprocal %102 {approx = true} : vector<32x1xf32> -> vector<32x1xf32>
    %104 = vector.broadcast %103 : vector<32x1xf32> to vector<32x1024xf32>
    %105 = arith.mulf %100, %104 : vector<32x1024xf32>
    %106 = arith.truncf %105 : vector<32x1024xf32> to vector<32x1024xbf16>
    %c3 = arith.constant 3 : index
    %c0_51 = arith.constant 0 : index
    %c0_52 = arith.constant 0 : index
    %107 = vector.load %arg5[%c3, %c0_51, %c0_52] : memref<4x1024x32xbf16, #tpu.memory_space<vmem>>, vector<1x1024x32xbf16>
    %108 = vector.shape_cast %107 : vector<1x1024x32xbf16> to vector<1024x32xbf16>
    %cst_53 = arith.constant dense<0.000000e+00> : vector<32x32xf32>
    %109 = tpu.matmul %106, %108, %cst_53 {dimension_numbers = #tpu.dot_dimension_numbers<[1], [0], [0], [1], [0, 0, 1, 1], [], []>} : vector<32x1024xbf16>, vector<1024x32xbf16>, vector<32x32xf32> -> vector<32x32xf32>
    %110 = arith.truncf %109 : vector<32x32xf32> to vector<32x32xbf16>
    %c3_54 = arith.constant 3 : index
    %c0_55 = arith.constant 0 : index
    %c0_56 = arith.constant 0 : index
    %111 = vector.load %arg6[%c3_54, %c0_55, %c0_56] : memref<4x32x32xbf16, #tpu.memory_space<vmem>>, vector<1x32x32xbf16>
    %112 = vector.shape_cast %111 : vector<1x32x32xbf16> to vector<32x32xbf16>
    %cst_57 = arith.constant dense<0.000000e+00> : vector<32x32xf32>
    %113 = tpu.matmul %110, %112, %cst_57 {dimension_numbers = #tpu.dot_dimension_numbers<[1], [0], [0], [1], [0, 0, 1, 1], [], []>} : vector<32x32xbf16>, vector<32x32xbf16>, vector<32x32xf32> -> vector<32x32xf32>
    %114 = arith.addf %94, %113 : vector<32x32xf32>
    %c0_58 = arith.constant 0 : index
    %c0_59 = arith.constant 0 : index
    %115 = vector.load %arg9[%c0_58, %c0_59] : memref<1x8xf32, #tpu.memory_space<vmem>>, vector<1x8xf32>
    %116 = vector.extract_strided_slice %114 {offsets = [0, 0], sizes = [8, 32], strides = [1, 1]} : vector<32x32xf32> to vector<8x32xf32>
    %117 = arith.truncf %116 : vector<8x32xf32> to vector<8x32xbf16>
    %c0_60 = arith.constant 0 : index
    %c0_61 = arith.constant 0 : index
    %118 = vector.load %arg8[%c0_60, %c0_61] : memref<128x8xbf16, #tpu.memory_space<vmem>>, vector<32x8xbf16>
    %cst_62 = arith.constant dense<0.000000e+00> : vector<8x8xf32>
    %119 = tpu.matmul %117, %118, %cst_62 {dimension_numbers = #tpu.dot_dimension_numbers<[1], [0], [0], [1], [0, 0, 1, 1], [], []>} : vector<8x32xbf16>, vector<32x8xbf16>, vector<8x8xf32> -> vector<8x8xf32>
    %120 = vector.broadcast %115 : vector<1x8xf32> to vector<8x8xf32>
    %121 = arith.addf %120, %119 : vector<8x8xf32>
    %122 = vector.extract_strided_slice %114 {offsets = [8, 0], sizes = [8, 32], strides = [1, 1]} : vector<32x32xf32> to vector<8x32xf32>
    %123 = arith.truncf %122 : vector<8x32xf32> to vector<8x32xbf16>
    %c32_63 = arith.constant 32 : index
    %c0_64 = arith.constant 0 : index
    %124 = vector.load %arg8[%c32_63, %c0_64] : memref<128x8xbf16, #tpu.memory_space<vmem>>, vector<32x8xbf16>
    %cst_65 = arith.constant dense<0.000000e+00> : vector<8x8xf32>
    %125 = tpu.matmul %123, %124, %cst_65 {dimension_numbers = #tpu.dot_dimension_numbers<[1], [0], [0], [1], [0, 0, 1, 1], [], []>} : vector<8x32xbf16>, vector<32x8xbf16>, vector<8x8xf32> -> vector<8x8xf32>
    %126 = arith.addf %121, %125 : vector<8x8xf32>
    %127 = vector.extract_strided_slice %114 {offsets = [16, 0], sizes = [8, 32], strides = [1, 1]} : vector<32x32xf32> to vector<8x32xf32>
    %128 = arith.truncf %127 : vector<8x32xf32> to vector<8x32xbf16>
    %c64 = arith.constant 64 : index
    %c0_66 = arith.constant 0 : index
    %129 = vector.load %arg8[%c64, %c0_66] : memref<128x8xbf16, #tpu.memory_space<vmem>>, vector<32x8xbf16>
    %cst_67 = arith.constant dense<0.000000e+00> : vector<8x8xf32>
    %130 = tpu.matmul %128, %129, %cst_67 {dimension_numbers = #tpu.dot_dimension_numbers<[1], [0], [0], [1], [0, 0, 1, 1], [], []>} : vector<8x32xbf16>, vector<32x8xbf16>, vector<8x8xf32> -> vector<8x8xf32>
    %131 = arith.addf %126, %130 : vector<8x8xf32>
    %132 = vector.extract_strided_slice %114 {offsets = [24, 0], sizes = [8, 32], strides = [1, 1]} : vector<32x32xf32> to vector<8x32xf32>
    %133 = arith.truncf %132 : vector<8x32xf32> to vector<8x32xbf16>
    %c96 = arith.constant 96 : index
    %c0_68 = arith.constant 0 : index
    %134 = vector.load %arg8[%c96, %c0_68] : memref<128x8xbf16, #tpu.memory_space<vmem>>, vector<32x8xbf16>
    %cst_69 = arith.constant dense<0.000000e+00> : vector<8x8xf32>
    %135 = tpu.matmul %133, %134, %cst_69 {dimension_numbers = #tpu.dot_dimension_numbers<[1], [0], [0], [1], [0, 0, 1, 1], [], []>} : vector<8x32xbf16>, vector<32x8xbf16>, vector<8x8xf32> -> vector<8x8xf32>
    %136 = arith.addf %131, %135 : vector<8x8xf32>
    %137 = vector.broadcast %14 : vector<8x1xf32> to vector<8x8xf32>
    %138 = arith.mulf %136, %137 : vector<8x8xf32>
    %139 = vector.broadcast %4 : vector<8x1xf32> to vector<8x8xf32>
    %140 = arith.addf %138, %139 : vector<8x8xf32>
    %c0_70 = arith.constant 0 : index
    %c0_71 = arith.constant 0 : index
    %141 = vector.load %arg10[%c0_70, %c0_71] : memref<8x8xf32, #tpu.memory_space<vmem>>, vector<8x8xf32>
    tpu.vector_store %arg10[%c0_70, %c0_71], %140 {strides = array<i32>} : memref<8x8xf32, #tpu.memory_space<vmem>>, vector<8x8xf32>,
    return
  }
  func.func @transform_0(%arg0: i32) -> (i32, i32) {
    %c0_i32 = arith.constant 0 : i32
    %c0_i32_0 = arith.constant 0 : i32
    %c0_i32_1 = arith.constant 0 : i32
    return %c0_i32, %c0_i32_0 : i32, i32
  }
  func.func @transform_1(%arg0: i32) -> (i32, i32) {
    %c0_i32 = arith.constant 0 : i32
    %c0_i32_0 = arith.constant 0 : i32
    %c0_i32_1 = arith.constant 0 : i32
    return %c0_i32, %c0_i32_0 : i32, i32
  }
  func.func @transform_2(%arg0: i32) -> (i32, i32) {
    %c0_i32 = arith.constant 0 : i32
    %c0_i32_0 = arith.constant 0 : i32
    %c0_i32_1 = arith.constant 0 : i32
    return %c0_i32, %c0_i32_0 : i32, i32
  }
  func.func @transform_3(%arg0: i32) -> (i32, i32) {
    %c0_i32 = arith.constant 0 : i32
    %c0_i32_0 = arith.constant 0 : i32
    %c0_i32_1 = arith.constant 0 : i32
    return %c0_i32, %c0_i32_0 : i32, i32
  }
  func.func @transform_4(%arg0: i32) -> (i32, i32, i32) {
    %c0_i32 = arith.constant 0 : i32
    %c0_i32_0 = arith.constant 0 : i32
    %c0_i32_1 = arith.constant 0 : i32
    %c0_i32_2 = arith.constant 0 : i32
    return %c0_i32, %c0_i32_0, %c0_i32_1 : i32, i32, i32
  }
  func.func @transform_5(%arg0: i32) -> (i32, i32, i32) {
    %c0_i32 = arith.constant 0 : i32
    %c0_i32_0 = arith.constant 0 : i32
    %c0_i32_1 = arith.constant 0 : i32
    %c0_i32_2 = arith.constant 0 : i32
    return %c0_i32, %c0_i32_0, %c0_i32_1 : i32, i32, i32
  }
  func.func @transform_6(%arg0: i32) -> (i32, i32) {
    %c0_i32 = arith.constant 0 : i32
    %c0_i32_0 = arith.constant 0 : i32
    %c0_i32_1 = arith.constant 0 : i32
    return %c0_i32, %c0_i32_0 : i32, i32
  }
  func.func @transform_7(%arg0: i32) -> (i32, i32) {
    %c0_i32 = arith.constant 0 : i32
    %c0_i32_0 = arith.constant 0 : i32
    %c0_i32_1 = arith.constant 0 : i32
    return %c0_i32, %c0_i32_0 : i32, i32
  }
  func.func @transform_8(%arg0: i32) -> (i32, i32) {
    %c0_i32 = arith.constant 0 : i32
    %c0_i32_0 = arith.constant 0 : i32
    %c0_i32_1 = arith.constant 0 : i32
    return %c0_i32, %c0_i32_0 : i32, i32
  }
  func.func @transform_9(%arg0: i32) -> (i32, i32) {
    %c0_i32 = arith.constant 0 : i32
    %c0_i32_0 = arith.constant 0 : i32
    %c0_i32_1 = arith.constant 0 : i32
    return %c0_i32, %c0_i32_0 : i32, i32
  }
}

</mosaic_0001>

<bundles_post_ra>
// kernel: forecast.1
= control target key start
LH: loop header
LB: loop body
LE: loop exit
PB: predicated region body
PF: predicated region fallthrough
CT: control target
= control target key end

     0   :  { %vm35_vm0 = vcmask 130048   ;;  %v11367_v9 = vmov 0.0   ;;  %vm7948_vm1 = vmmov 0   ;;  %s11357_s0 = inlined_call_operand.vmem [shape: f32[8,16], index: 0, kind: input, shape index: {}]   ;;  %s11358_s1 = inlined_call_operand.vmem [shape: bf16[64,32], index: 1, kind: input, shape index: {}]   ;;  %s11359_s2 = inlined_call_operand.vmem [shape: bf16[32,4096], index: 2, kind: input, shape index: {}]   ;;  %s11360_s3 = inlined_call_operand.vmem [shape: f32[1,4096], index: 3, kind: input, shape index: {}]   ;;  %s11361_s4 = inlined_call_operand.vmem [shape: bf16[4,1024,32], index: 4, kind: input, shape index: {}]   ;;  %s11362_s5 = inlined_call_operand.vmem [shape: bf16[4,32,32], index: 5, kind: input, shape index: {}]   ;;  %s11363_s6 = inlined_call_operand.vmem [shape: f32[1,32], index: 6, kind: input, shape index: {}]   ;;  %s11364_s7 = inlined_call_operand.vmem [shape: bf16[128,8], index: 7, kind: input, shape index: {}]   ;;  %s11365_s8 = inlined_call_operand.vmem [shape: f32[1,8], index: 8, kind: input, shape index: {}]   ;;  %s11366_s9 = inlined_call_operand.hbm [shape: f32[8,8], index: 9, kind: output, shape index: {}]  }
   0x1   :  { %v34_v0 = vld [vmem:[%s11357_s0] sm:$0xff]  ;;  %v7356_v8 = vld [vmem:[%s11358_s1 + $0x10] sm:$0xff]   ;;  %7234 = vmatprep.subr.bf16.mxu1 %v11367_v9  ;;  %7246 = vmatprep.subr.bf16.mxu0 %v11367_v9 }
   0x2   :  { %v36_v1 = vsel %vm35_vm0, %v34_v0, 0.0  ;;  %v7355_v7 = vld [vmem:[%s11358_s1] sm:$0xff]   ;;  %7247 = vmatpush3.bf16.msra.mxu0 %v7356_v8  ;;  %7236 = vmatprep.mubr.msk.bf16.mxu1 %vm7948_vm1, %v11367_v9 }
   0x3   :  { %37 = vadd.xlane.f32.xlu0 %v36_v1  ;;  %7235 = vmatpush3.bf16.msra.mxu1 %v7355_v7 }
   0x4   :  { %7240 = vmatprep.subr.bf16.mxu1 %v11367_v9  ;;  %7248 = vmatprep.mubr.msk.bf16.mxu0 %vm7948_vm1, %v11367_v9 }
  0x90   :  { %v38_v2 = vpop.xlane.xlu0 %37 }
  0x91   :  { %v8005_v3 = vmul.f32 0.0625, %v38_v2 }
  0x93   :  { %11501 = vst [vmem:[#allocation5_spill] sm:$0xff] %v8005_v3  ;;  %v41_v4 = vsub.f32 %v34_v0, %v8005_v3 }
  0x95   :  { %v42_v5 = vmul.f32 %v41_v4, %v41_v4 }
  0x97   :  { %v43_v6 = vsel %vm35_vm0, %v42_v5, 0.0 }
  0x98   :  { %44 = vadd.xlane.f32.xlu0 %v43_v6 }
  0x99   :  { %14 = vsyncpa [#allocation3], 0  ;;  %v7357_v20 = vld [vmem:[%s11358_s1 + $0x8] sm:$0xff]   ;;  %v7358_v22 = vld [vmem:[%s11358_s1 + $0x18] sm:$0xff]   ;;  %v7949_v39 = vmov 0   ;;  %vm807_vm4 = vcmask 261120  }
  0x9a   :  { %v255_v23 = vld [vmem:[%s11359_s2] sm:$0xff]  ;;  %v256_v25 = vld [vmem:[%s11359_s2 + $0x8] sm:$0xff]  ;;  %v257_v40 = vld [vmem:[%s11359_s2 + $0x10] sm:$0xff]  ;;  %s7950_s16 = smov [#allocation2]   ;;  %vm5948_vm5 = vcmask 64512  }
  0x9b   :  { %v271_v24 = vld [vmem:[%s11359_s2 + $0x80] sm:$0xff]  ;;  %v272_v27 = vld [vmem:[%s11359_s2 + $0x88] sm:$0xff]  ;;  %v273_v41 = vld [vmem:[%s11359_s2 + $0x90] sm:$0xff] }
  0x9c   :  { %v5973_v26 = vcombine.high %v255_v23, %v271_v24  ;;  %v5972_v28 = vcombine.low %v255_v23, %v271_v24  ;;  %v5974_v29 = vcombine.low %v256_v25, %v272_v27  ;;  %v5975_v30 = vcombine.high %v256_v25, %v272_v27  ;;  %v287_v31 = vld [vmem:[%s11359_s2 + $0x100] sm:$0xff]  ;;  %v288_v33 = vld [vmem:[%s11359_s2 + $0x108] sm:$0xff]  ;;  %v258_v44 = vld [vmem:[%s11359_s2 + $0x18] sm:$0xff] }
  0x9d   :  { %v303_v32 = vld [vmem:[%s11359_s2 + $0x180] sm:$0xff]  ;;  %v304_v36 = vld [vmem:[%s11359_s2 + $0x188] sm:$0xff]  ;;  %v5976_v42 = vcombine.low %v257_v40, %v273_v41  ;;  %v5977_v43 = vcombine.high %v257_v40, %v273_v41  ;;  %v274_v45 = vld [vmem:[%s11359_s2 + $0x98] sm:$0xff] }
  0x9e   :  { %814 = vmatprep.subr.bf16.mxu0 %v5973_v26  ;;  %v6004_v34 = vcombine.low %v287_v31, %v303_v32  ;;  %v6005_v35 = vcombine.high %v287_v31, %v303_v32  ;;  %v6006_v37 = vcombine.low %v288_v33, %v304_v36  ;;  %v6007_v38 = vcombine.high %v288_v33, %v304_v36  ;;  %v289_v56 = vld [vmem:[%s11359_s2 + $0x110] sm:$0xff]  ;;  %v290_v58 = vld [vmem:[%s11359_s2 + $0x118] sm:$0xff]  ;;  %v259_v63 = vld [vmem:[%s11359_s2 + $0x20] sm:$0xff] }
  0x9f   :  { %v5978_v46 = vcombine.low %v258_v44, %v274_v45  ;;  %v5979_v47 = vcombine.high %v258_v44, %v274_v45  ;;  %v305_v57 = vld [vmem:[%s11359_s2 + $0x190] sm:$0xff]  ;;  %v306_v59 = vld [vmem:[%s11359_s2 + $0x198] sm:$0xff]  ;;  %v260_v5 = vld [vmem:[%s11359_s2 + $0x28] sm:$0xff] }
  0xa0   :  { %v6009_v1 = vcombine.high %v289_v56, %v305_v57  ;;  %v6011_v2 = vcombine.high %v290_v58, %v306_v59  ;;  %v276_v6 = vld [vmem:[%s11359_s2 + $0xa8] sm:$0xff]  ;;  %v6008_v8 = vcombine.low %v289_v56, %v305_v57  ;;  %v261_v27 = vld [vmem:[%s11359_s2 + $0x30] sm:$0xff]  ;;  %v263_v44 = vld [vmem:[%s11359_s2 + $0x40] sm:$0xff] }
  0xa1   :  { %v5982_v24 = vcombine.low %v260_v5, %v276_v6  ;;  %v309_v36 = vld [vmem:[%s11359_s2 + $0x1b0] sm:$0xff]  ;;  %v279_v45 = vld [vmem:[%s11359_s2 + $0xc0] sm:$0xff] }
  0xa2   :  { %v5988_v56 = vcombine.low %v263_v44, %v279_v45 }
 0x125   :  { %v45_v10 = vpop.xlane.xlu0 %44 }
 0x126   :  { %v46_v11 = vmul.f32 0.0625, %v45_v10  ;;  %v6010_v10 = vcombine.low %v290_v58, %v306_v59 }
 0x128   :  { %v47_v12 = vadd.f32 1e-05, %v46_v11 }
 0x12a   :  { %7631 = vrsqrt.f32 %v47_v12  ;;  %vm50_vm2 = vcmp.eq.f32.partialorder %v47_v12, inf  ;;  %v53_v15 = vand.u32 2147483648, %v47_v12  ;;  %vm52_vm3 = vcmp.eq.f32.partialorder %v47_v12, 0.0 }
 0x134   :  { %v7632_v13 = vpop.eup %7631 }
 0x135   :  { %v49_v14 = vmul.f32 %v7632_v13, %v47_v12 }
 0x137   :  { %v51_v16 = vsel %vm50_vm2, %v47_v12, %v49_v14  ;;  %v5983_v12 = vcombine.high %v260_v5, %v276_v6  ;;  %v297_v6 = vld [vmem:[%s11359_s2 + $0x150] sm:$0xff] }
 0x138   :  { %v8022_v17 = vsel %vm52_vm3, %v53_v15, %v51_v16 }
 0x139   :  { %11502 = vst [vmem:[#allocation6_spill] sm:$0xff] %v8022_v17  ;;  %7633 = vrcp.f32 %v8022_v17 }
 0x143   :  { %v7634_v18 = vpop.eup %7633 }
 0x144   :  { %v56_v19 = vmul.f32 %v7634_v18, %v41_v4  ;;  %v275_v4 = vld [vmem:[%s11359_s2 + $0xa0] sm:$0xff] }
 0x145   :  { %v5981_v11 = vcombine.high %v259_v63, %v275_v4  ;;  %v5980_v23 = vcombine.low %v259_v63, %v275_v4  ;;  %v266_v63 = vld [vmem:[%s11359_s2 + $0x58] sm:$0xff] }
 0x146   :  { %v57_v21 = vpack.c.bf16 %v56_v19, %v56_v19  ;;  %v291_v19 = vld [vmem:[%s11359_s2 + $0x120] sm:$0xff] }
 0x148   :  { %7237 = vmatmul.mubr.msk.bf16.vlgmr.msra.gmra.mrb[0].mxu1 %vm35_vm0, %v57_v21  ;;  %7249 = vmatmul.mubr.msk.bf16.vlgmr.msra.gmra.mrb[0].mxu0 %vm35_vm0, %v57_v21 }
 0x149   :  { %7241 = vmatpush3.bf16.msra.mxu1 %v7357_v20  ;;  %7242 = vmatprep.mubr.msk.bf16.mxu1 %vm7948_vm1, %v11367_v9  ;;  %v307_v20 = vld [vmem:[%s11359_s2 + $0x1a0] sm:$0xff] }
 0x14a   :  { %7252 = vmatprep.subr.bf16.mxu1 %v11367_v9  ;;  %815 = vmatpush1.bf16.msra.mxu0 %v5972_v28  ;;  %v6013_v25 = vcombine.high %v291_v19, %v307_v20  ;;  %v277_v28 = vld [vmem:[%s11359_s2 + $0xb0] sm:$0xff]  ;;  %v6012_v31 = vcombine.low %v291_v19, %v307_v20  ;;  %v268_v19 = vld [vmem:[%s11359_s2 + $0x68] sm:$0xff] }
 0x14b   :  { %816 = vmatprep.subr.bf16.mxu0 %v6005_v35  ;;  %846 = vmatprep.mubr.bf16.mxu0 %v7949_v39  ;;  %v5985_v33 = vcombine.high %v261_v27, %v277_v28  ;;  %v293_v35 = vld [vmem:[%s11359_s2 + $0x130] sm:$0xff]  ;;  %v5984_v40 = vcombine.low %v261_v27, %v277_v28  ;;  %v284_v20 = vld [vmem:[%s11359_s2 + $0xe8] sm:$0xff] }
 0x14c   :  { %v300_v27 = vld [vmem:[%s11359_s2 + $0x168] sm:$0xff] }
 0x14d   :  { %v316_v28 = vld [vmem:[%s11359_s2 + $0x1e8] sm:$0xff] }
 0x14e   :  { %817 = vmatpush1.bf16.msra.mxu0 %v6004_v34 }
 0x14f   :  { %920 = vmatprep.subr.bf16.mxu0 %v5977_v43 }
 0x150   :  { %7243 = vmatmul.mubr.msk.bf16.vlgmr.msra.gmra.mrb[4].mxu1 %vm35_vm0, %v57_v21 }
 0x151   :  { %7253 = vmatpush3.bf16.msra.mxu1 %v7358_v22  ;;  %7254 = vmatprep.mubr.msk.bf16.mxu1 %vm7948_vm1, %v11367_v9  ;;  %v308_v22 = vld [vmem:[%s11359_s2 + $0x1a8] sm:$0xff] }
 0x152   :  { %867 = vmatprep.subr.bf16.mxu1 %v5975_v30  ;;  %v278_v30 = vld [vmem:[%s11359_s2 + $0xb8] sm:$0xff] }
 0x158   :  { %7255 = vmatmul.mubr.msk.bf16.vlgmr.msra.gmra.mrb[8].mxu1 %vm35_vm0, %v57_v21  ;;  %v292_v21 = vld [vmem:[%s11359_s2 + $0x128] sm:$0xff] }
 0x159   :  { %868 = vmatpush1.bf16.msra.mxu1 %v5974_v29  ;;  %899 = vmatprep.mubr.bf16.mxu1 %v7949_v39  ;;  %v6015_v26 = vcombine.high %v292_v21, %v308_v22  ;;  %v262_v29 = vld [vmem:[%s11359_s2 + $0x38] sm:$0xff]  ;;  %v6014_v32 = vcombine.low %v292_v21, %v308_v22 }
 0x15a   :  { %869 = vmatprep.subr.bf16.mxu1 %v6007_v38  ;;  %v5987_v34 = vcombine.high %v262_v29, %v278_v30  ;;  %v310_v38 = vld [vmem:[%s11359_s2 + $0x1b8] sm:$0xff]  ;;  %v5986_v41 = vcombine.low %v262_v29, %v278_v30  ;;  %v5998_v30 = vcombine.low %v268_v19, %v284_v20 }
 0x15d   :  { %870 = vmatpush1.bf16.msra.mxu1 %v6006_v37  ;;  %v294_v37 = vld [vmem:[%s11359_s2 + $0x138] sm:$0xff] }
 0x15e   :  { %973 = vmatprep.subr.bf16.mxu1 %v5979_v47  ;;  %v6019_v43 = vcombine.high %v294_v37, %v310_v38  ;;  %v280_v47 = vld [vmem:[%s11359_s2 + $0xc8] sm:$0xff] }
 0x21b   :  { %v103_v48 = vpop.f32.mrb[0].mxu1  ;;  %v199_v49 = vpop.f32.mrb[0].mxu0 }
 0x21c   :  { %v7238_v50 = vpop.f32.mrb[1].mxu1  ;;  %v7250_v51 = vpop.f32.mrb[1].mxu0 }
 0x21d   :  { %v106_v52 = vpop.f32.mrb[2].mxu1  ;;  %v202_v53 = vpop.f32.mrb[2].mxu0  ;;  %v5989_v50 = vcombine.high %v263_v44, %v279_v45  ;;  %v302_v44 = vld [vmem:[%s11359_s2 + $0x178] sm:$0xff] }
 0x21e   :  { %v7239_v54 = vpop.f32.mrb[3].mxu1  ;;  %v7251_v55 = vpop.f32.mrb[3].mxu0  ;;  %v295_v52 = vld [vmem:[%s11359_s2 + $0x140] sm:$0xff]  ;;  %v318_v45 = vld [vmem:[%s11359_s2 + $0x1f8] sm:$0xff] }
 0x21f   :  { %v311_v53 = vld [vmem:[%s11359_s2 + $0x1c0] sm:$0xff]  ;;  %v296_v54 = vld [vmem:[%s11359_s2 + $0x148] sm:$0xff] }
 0x220   :  { %v312_v55 = vld [vmem:[%s11359_s2 + $0x1c8] sm:$0xff]  ;;  %v6021_v58 = vcombine.high %v295_v52, %v311_v53 }
 0x221   :  { %v6023_v59 = vcombine.high %v296_v54, %v312_v55 }
 0x223   :  { %v151_v60 = vpop.f32.mrb[4].mxu1 }
 0x224   :  { %v8090_v61 = vpack.c.bf16 %v151_v60, %v103_v48  ;;  %v7244_v62 = vpop.f32.mrb[5].mxu1  ;;  %v6016_v48 = vcombine.low %v293_v35, %v309_v36  ;;  %v265_v60 = vld [vmem:[%s11359_s2 + $0x50] sm:$0xff] }
 0x225   :  { %v154_v0 = vpop.f32.mrb[6].mxu1  ;;  %v281_v62 = vld [vmem:[%s11359_s2 + $0xd0] sm:$0xff] }
 0x226   :  { %v7245_v7 = vpop.f32.mrb[7].mxu1  ;;  %6036 = vmatmul.mubr.msk.bf16.vlgmr.msra.gmra.mrb[4].mxu0 %vm807_vm4, %v8090_v61  ;;  %6038 = vmatmul.mubr.msk.bf16.vlgmr.msra.gmra.mrb[12].mxu1 %vm807_vm4, %v8090_v61  ;;  %v282_v0 = vld [vmem:[%s11359_s2 + $0xd8] sm:$0xff]  ;;  %v5993_v4 = vcombine.high %v265_v60, %v281_v62 }
 0x227   :  { %921 = vmatpush1.bf16.msra.mxu0 %v5976_v42  ;;  %974 = vmatpush1.bf16.msra.mxu1 %v5978_v46  ;;  %v6017_v42 = vcombine.high %v293_v35, %v309_v36  ;;  %v264_v46 = vld [vmem:[%s11359_s2 + $0x48] sm:$0xff]  ;;  %v5995_v5 = vcombine.high %v266_v63, %v282_v0  ;;  %v313_v7 = vld [vmem:[%s11359_s2 + $0x1d0] sm:$0xff]  ;;  %v270_v35 = vld [vmem:[%s11359_s2 + $0x78] sm:$0xff] }
 0x228   :  { %856 = vmatprep.mubr.bf16.mxu0 %v7949_v39  ;;  %909 = vmatprep.mubr.bf16.mxu1 %v7949_v39  ;;  %v5991_v51 = vcombine.high %v264_v46, %v280_v47  ;;  %v5990_v57 = vcombine.low %v264_v46, %v280_v47  ;;  %v6024_v21 = vcombine.low %v297_v6, %v313_v7  ;;  %v286_v36 = vld [vmem:[%s11359_s2 + $0xf8] sm:$0xff] }
 0x229   :  { %922 = vmatprep.subr.bf16.mxu0 %v6009_v1  ;;  %975 = vmatprep.subr.bf16.mxu1 %v6011_v2  ;;  %v6020_v1 = vcombine.low %v295_v52, %v311_v53  ;;  %v6022_v2 = vcombine.low %v296_v54, %v312_v55  ;;  %v6002_v47 = vcombine.low %v270_v35, %v286_v36  ;;  %v327_v52 = vlaneseq }
 0x22b   :  { %v247_v13 = vpop.f32.mrb[8].mxu1  ;;  %923 = vmatpush1.bf16.msra.mxu0 %v6008_v8  ;;  %976 = vmatpush1.bf16.msra.mxu1 %v6010_v10  ;;  %v298_v8 = vld [vmem:[%s11359_s2 + $0x158] sm:$0xff]  ;;  %v328_v53 = vshrl.u32 %v327_v52, 7 }
 0x22c   :  { %v8110_v14 = vpack.c.bf16 %v247_v13, %v199_v49  ;;  %v7256_v15 = vpop.f32.mrb[9].mxu1  ;;  %1026 = vmatprep.subr.bf16.mxu0 %v5981_v11  ;;  %1079 = vmatprep.subr.bf16.mxu1 %v5983_v12  ;;  %v6018_v49 = vcombine.low %v294_v37, %v310_v38  ;;  %v314_v10 = vld [vmem:[%s11359_s2 + $0x1d8] sm:$0xff]  ;;  %v5992_v11 = vcombine.low %v265_v60, %v281_v62 }
 0x22d   :  { %v250_v16 = vpop.f32.mrb[10].mxu1  ;;  %v5994_v12 = vcombine.low %v266_v63, %v282_v0  ;;  %v6025_v13 = vcombine.high %v297_v6, %v313_v7  ;;  %v6027_v15 = vcombine.high %v298_v8, %v314_v10  ;;  %v6026_v22 = vcombine.low %v298_v8, %v314_v10 }
 0x22e   :  { %v7257_v18 = vpop.f32.mrb[11].mxu1  ;;  %6037 = vmatmul.mubr.msk.bf16.gmra.mrb[8].mxu0 %vm807_vm4, %v8110_v14  ;;  %6039 = vmatmul.mubr.msk.bf16.gmra.mrb[16].mxu1 %vm807_vm4, %v8110_v14  ;;  %v267_v16 = vld [vmem:[%s11359_s2 + $0x60] sm:$0xff]  ;;  %v6030_v38 = vcombine.low %v300_v27, %v316_v28  ;;  %v8332_v54 = vsub.s32 0, %v328_v53  ;;  %v8334_v55 = vsub.s32 1, %v328_v53  ;;  %v8341_v63 = vsub.s32 2, %v328_v53 }
 0x22f   :  { %952 = vmatprep.mubr.bf16.mxu0 %v7949_v39  ;;  %1005 = vmatprep.mubr.bf16.mxu1 %v7949_v39  ;;  %v283_v18 = vld [vmem:[%s11359_s2 + $0xe0] sm:$0xff]  ;;  %v8348_v6 = vsub.s32 3, %v328_v53 }
 0x230   :  { %v5996_v29 = vcombine.low %v267_v16, %v283_v18  ;;  %11503 = vst [vmem:[#allocation7_spill] sm:$0xff] %v8332_v54  ;;  %11504 = vst [vmem:[#allocation8_spill] sm:$0xff] %v8334_v55 }
 0x231   :  { %11505 = vst [vmem:[#allocation9_spill] sm:$0xff] %v8341_v63  ;;  %11506 = vst [vmem:[#allocation10_spill] sm:$0xff] %v8348_v6 }
 0x236   :  { %6040 = vmatmul.mubr.msk.bf16.vlgmr.msra.gmra.mrb[12].mxu0 %vm807_vm4, %v8090_v61  ;;  %6042 = vmatmul.mubr.msk.bf16.vlgmr.msra.gmra.mrb[20].mxu1 %vm807_vm4, %v8090_v61 }
 0x237   :  { %962 = vmatprep.mubr.bf16.mxu0 %v7949_v39  ;;  %1015 = vmatprep.mubr.bf16.mxu1 %v7949_v39 }
 0x238   :  { %1027 = vmatpush1.bf16.msra.mxu0 %v5980_v23  ;;  %1080 = vmatpush1.bf16.msra.mxu1 %v5982_v24  ;;  %v5997_v23 = vcombine.high %v267_v16, %v283_v18  ;;  %v5999_v24 = vcombine.high %v268_v19, %v284_v20  ;;  %v8358_v20 = vsub.s32 5, %v328_v53 }
 0x239   :  { %1028 = vmatprep.subr.bf16.mxu0 %v6013_v25  ;;  %1081 = vmatprep.subr.bf16.mxu1 %v6015_v26  ;;  %v299_v25 = vld [vmem:[%s11359_s2 + $0x160] sm:$0xff] }
 0x23a   :  { %v315_v26 = vld [vmem:[%s11359_s2 + $0x1e0] sm:$0xff]  ;;  %11508 = vst [vmem:[#allocation12_spill] sm:$0xff] %v8358_v20 }
 0x23b   :  { %v6028_v37 = vcombine.low %v299_v25, %v315_v26 }
 0x23c   :  { %1029 = vmatpush1.bf16.msra.mxu0 %v6012_v31  ;;  %1082 = vmatpush1.bf16.msra.mxu1 %v6014_v32  ;;  %v6029_v31 = vcombine.high %v299_v25, %v315_v26  ;;  %v6031_v32 = vcombine.high %v300_v27, %v316_v28  ;;  %v8366_v27 = vsub.s32 6, %v328_v53 }
 0x23d   :  { %1132 = vmatprep.subr.bf16.mxu0 %v5985_v33  ;;  %1185 = vmatprep.subr.bf16.mxu1 %v5987_v34  ;;  %v269_v33 = vld [vmem:[%s11359_s2 + $0x70] sm:$0xff] }
 0x23e   :  { %6041 = vmatmul.mubr.msk.bf16.gmra.mrb[16].mxu0 %vm807_vm4, %v8110_v14  ;;  %6043 = vmatmul.mubr.msk.bf16.gmra.mrb[24].mxu1 %vm807_vm4, %v8110_v14  ;;  %v285_v34 = vld [vmem:[%s11359_s2 + $0xf0] sm:$0xff]  ;;  %11509 = vst [vmem:[#allocation13_spill] sm:$0xff] %v8366_v27 }
 0x23f   :  { %1058 = vmatprep.mubr.bf16.mxu0 %v7949_v39  ;;  %1111 = vmatprep.mubr.bf16.mxu1 %v7949_v39  ;;  %v6000_v46 = vcombine.low %v269_v33, %v285_v34 }
 0x246   :  { %6044 = vmatmul.mubr.msk.bf16.vlgmr.msra.gmra.mrb[20].mxu0 %vm807_vm4, %v8090_v61  ;;  %6046 = vmatmul.mubr.msk.bf16.vlgmr.msra.gmra.mrb[28].mxu1 %vm807_vm4, %v8090_v61 }
 0x247   :  { %1068 = vmatprep.mubr.bf16.mxu0 %v7949_v39  ;;  %1121 = vmatprep.mubr.bf16.mxu1 %v7949_v39 }
 0x248   :  { %1133 = vmatpush1.bf16.msra.mxu0 %v5984_v40  ;;  %1186 = vmatpush1.bf16.msra.mxu1 %v5986_v41  ;;  %v6001_v40 = vcombine.high %v269_v33, %v285_v34  ;;  %v6003_v41 = vcombine.high %v270_v35, %v286_v36  ;;  %v8380_v35 = vsub.s32 7, %v328_v53 }
 0x249   :  { %1134 = vmatprep.subr.bf16.mxu0 %v6017_v42  ;;  %1187 = vmatprep.subr.bf16.mxu1 %v6019_v43  ;;  %v301_v42 = vld [vmem:[%s11359_s2 + $0x170] sm:$0xff] }
 0x24a   :  { %v317_v43 = vld [vmem:[%s11359_s2 + $0x1f0] sm:$0xff]  ;;  %11510 = vst [vmem:[#allocation14_spill] sm:$0xff] %v8380_v35 }
 0x24c   :  { %1135 = vmatpush1.bf16.msra.mxu0 %v6016_v48  ;;  %1188 = vmatpush1.bf16.msra.mxu1 %v6018_v49  ;;  %v6033_v48 = vcombine.high %v301_v42, %v317_v43  ;;  %v6035_v49 = vcombine.high %v302_v44, %v318_v45 }
 0x24d   :  { %1238 = vmatprep.subr.bf16.mxu0 %v5989_v50  ;;  %1291 = vmatprep.subr.bf16.mxu1 %v5991_v51  ;;  %v6032_v50 = vcombine.low %v301_v42, %v317_v43  ;;  %v6034_v51 = vcombine.low %v302_v44, %v318_v45 }
 0x24e   :  { %6045 = vmatmul.mubr.msk.bf16.gmra.mrb[24].mxu0 %vm807_vm4, %v8110_v14  ;;  %6047 = vmatmul.mubr.msk.bf16.gmra.mrb[32].mxu1 %vm807_vm4, %v8110_v14 }
 0x24f   :  { %1164 = vmatprep.mubr.bf16.mxu0 %v7949_v39  ;;  %1217 = vmatprep.mubr.bf16.mxu1 %v7949_v39 }
 0x256   :  { %6048 = vmatmul.mubr.msk.bf16.vlgmr.msra.gmra.mrb[28].mxu0 %vm807_vm4, %v8090_v61  ;;  %6050 = vmatmul.mubr.msk.bf16.vlgmr.msra.gmra.mrb[36].mxu1 %vm807_vm4, %v8090_v61 }
 0x257   :  { %1174 = vmatprep.mubr.bf16.mxu0 %v7949_v39  ;;  %1227 = vmatprep.mubr.bf16.mxu1 %v7949_v39 }
 0x258   :  { %1239 = vmatpush1.bf16.msra.mxu0 %v5988_v56  ;;  %1292 = vmatpush1.bf16.msra.mxu1 %v5990_v57 }
 0x259   :  { %1240 = vmatprep.subr.bf16.mxu0 %v6021_v58  ;;  %1293 = vmatprep.subr.bf16.mxu1 %v6023_v59 }
 0x25c   :  { %1241 = vmatpush1.bf16.msra.mxu0 %v6020_v1  ;;  %1294 = vmatpush1.bf16.msra.mxu1 %v6022_v2 }
 0x25d   :  { %1344 = vmatprep.subr.bf16.mxu0 %v5993_v4  ;;  %1397 = vmatprep.subr.bf16.mxu1 %v5995_v5 }
 0x25e   :  { %6049 = vmatmul.mubr.msk.bf16.gmra.mrb[32].mxu0 %vm807_vm4, %v8110_v14  ;;  %6051 = vmatmul.mubr.msk.bf16.gmra.mrb[40].mxu1 %vm807_vm4, %v8110_v14 }
 0x25f   :  { %1270 = vmatprep.mubr.bf16.mxu0 %v7949_v39  ;;  %1323 = vmatprep.mubr.bf16.mxu1 %v7949_v39 }
 0x266   :  { %6052 = vmatmul.mubr.msk.bf16.vlgmr.msra.gmra.mrb[36].mxu0 %vm807_vm4, %v8090_v61  ;;  %6054 = vmatmul.mubr.msk.bf16.vlgmr.msra.gmra.mrb[44].mxu1 %vm807_vm4, %v8090_v61 }
 0x267   :  { %1280 = vmatprep.mubr.bf16.mxu0 %v7949_v39  ;;  %1333 = vmatprep.mubr.bf16.mxu1 %v7949_v39 }
 0x268   :  { %1345 = vmatpush1.bf16.msra.mxu0 %v5992_v11  ;;  %1398 = vmatpush1.bf16.msra.mxu1 %v5994_v12  ;;  %v8354_v12 = vsub.s32 4, %v328_v53 }
 0x269   :  { %1346 = vmatprep.subr.bf16.mxu0 %v6025_v13  ;;  %1399 = vmatprep.subr.bf16.mxu1 %v6027_v15 }
 0x26a   :  { %11507 = vst [vmem:[#allocation11_spill] sm:$0xff] %v8354_v12 }
 0x26c   :  { %1347 = vmatpush1.bf16.msra.mxu0 %v6024_v21  ;;  %1400 = vmatpush1.bf16.msra.mxu1 %v6026_v22 }
 0x26d   :  { %1450 = vmatprep.subr.bf16.mxu0 %v5997_v23  ;;  %1503 = vmatprep.subr.bf16.mxu1 %v5999_v24 }
 0x26e   :  { %6053 = vmatmul.mubr.msk.bf16.gmra.mrb[40].mxu0 %vm807_vm4, %v8110_v14  ;;  %6055 = vmatmul.mubr.msk.bf16.gmra.mrb[48].mxu1 %vm807_vm4, %v8110_v14 }
 0x26f   :  { %1376 = vmatprep.mubr.bf16.mxu0 %v7949_v39  ;;  %1429 = vmatprep.mubr.bf16.mxu1 %v7949_v39 }
 0x276   :  { %6056 = vmatmul.mubr.msk.bf16.vlgmr.msra.gmra.mrb[44].mxu0 %vm807_vm4, %v8090_v61  ;;  %6058 = vmatmul.mubr.msk.bf16.vlgmr.msra.gmra.mrb[52].mxu1 %vm807_vm4, %v8090_v61 }
 0x277   :  { %1386 = vmatprep.mubr.bf16.mxu0 %v7949_v39  ;;  %1439 = vmatprep.mubr.bf16.mxu1 %v7949_v39 }
 0x278   :  { %1451 = vmatpush1.bf16.msra.mxu0 %v5996_v29  ;;  %1504 = vmatpush1.bf16.msra.mxu1 %v5998_v30 }
 0x279   :  { %1452 = vmatprep.subr.bf16.mxu0 %v6029_v31  ;;  %1505 = vmatprep.subr.bf16.mxu1 %v6031_v32 }
 0x27c   :  { %1453 = vmatpush1.bf16.msra.mxu0 %v6028_v37  ;;  %1506 = vmatpush1.bf16.msra.mxu1 %v6030_v38 }
 0x27d   :  { %1556 = vmatprep.subr.bf16.mxu0 %v6001_v40  ;;  %1609 = vmatprep.subr.bf16.mxu1 %v6003_v41 }
 0x27e   :  { %6057 = vmatmul.mubr.msk.bf16.gmra.mrb[48].mxu0 %vm807_vm4, %v8110_v14  ;;  %6059 = vmatmul.mubr.msk.bf16.gmra.mrb[56].mxu1 %vm807_vm4, %v8110_v14 }
 0x27f   :  { %1482 = vmatprep.mubr.bf16.mxu0 %v7949_v39  ;;  %1535 = vmatprep.mubr.bf16.mxu1 %v7949_v39 }
 0x286   :  { %6060 = vmatmul.mubr.msk.bf16.vlgmr.msra.gmra.mrb[52].mxu0 %vm807_vm4, %v8090_v61  ;;  %6062 = vmatmul.mubr.msk.bf16.vlgmr.msra.gmra.mrb[60].mxu1 %vm807_vm4, %v8090_v61 }
 0x287   :  { %1492 = vmatprep.mubr.bf16.mxu0 %v7949_v39  ;;  %1545 = vmatprep.mubr.bf16.mxu1 %v7949_v39 }
 0x288   :  { %1557 = vmatpush1.bf16.msra.mxu0 %v6000_v46  ;;  %1610 = vmatpush1.bf16.msra.mxu1 %v6002_v47 }
 0x289   :  { %1558 = vmatprep.subr.bf16.mxu0 %v6033_v48  ;;  %1611 = vmatprep.subr.bf16.mxu1 %v6035_v49 }
 0x28c   :  { %1559 = vmatpush1.bf16.msra.mxu0 %v6032_v50  ;;  %1612 = vmatpush1.bf16.msra.mxu1 %v6034_v51 }
 0x28e   :  { %6061 = vmatmul.mubr.msk.bf16.gmra.mrb[56].mxu0 %vm807_vm4, %v8110_v14  ;;  %6063 = vmatmul.mubr.msk.bf16.gmra.mrb[64].mxu1 %vm807_vm4, %v8110_v14 }
 0x28f   :  { %1588 = vmatprep.mubr.bf16.mxu0 %v7949_v39  ;;  %1641 = vmatprep.mubr.bf16.mxu1 %v7949_v39 }
 0x296   :  { %6064 = vmatmul.mubr.msk.bf16.vlgmr.msra.gmra.mrb[60].mxu0 %vm807_vm4, %v8090_v61  ;;  %6066 = vmatmul.mubr.msk.bf16.vlgmr.msra.gmra.mrb[68].mxu1 %vm807_vm4, %v8090_v61  ;;  %v319_v61 = vld [vmem:[%s11360_s3] sm:$0xff] }
 0x297   :  { %1598 = vmatprep.mubr.bf16.mxu0 %v7949_v39  ;;  %1651 = vmatprep.mubr.bf16.mxu1 %v7949_v39  ;;  %v330_v39 = vrot.slane %v319_v61, %v8332_v54  ;;  %v334_v58 = vrot.slane %v319_v61, %v8334_v55  ;;  %v338_v5 = vrot.slane %v319_v61, %v8341_v63 }
 0x298   :  { %v342_v22 = vrot.slane %v319_v61, %v8348_v6  ;;  %v346_v26 = vrot.slane %v319_v61, %v8354_v12  ;;  %v350_v34 = vrot.slane %v319_v61, %v8358_v20  ;;  %v354_v40 = vrot.slane %v319_v61, %v8366_v27 }
 0x299   :  { %v358_v50 = vrot.slane %v319_v61, %v8380_v35 }
 0x29e   :  { %6065 = vmatmul.mubr.msk.bf16.gmra.mrb[64].mxu0 %vm807_vm4, %v8110_v14  ;;  %6067 = vmatmul.mubr.msk.bf16.gmra.mrb[72].mxu1 %vm807_vm4, %v8110_v14 }
 0x2f9   :  { %v848_v56 = vpop.f32.mrb[4].mxu0  ;;  %v901_v57 = vpop.f32.mrb[12].mxu1 }
 0x2fa   :  { %v850_v59 = vpop.f32.mrb[5].mxu0  ;;  %v903_v60 = vpop.f32.mrb[13].mxu1  ;;  %v8343_v2 = vadd.f32 %v848_v56, %v330_v39  ;;  %v8360_v21 = vadd.f32 %v901_v57, %v338_v5 }
 0x2fb   :  { %v852_v62 = vpop.f32.mrb[6].mxu0  ;;  %v905_v14 = vpop.f32.mrb[14].mxu1  ;;  %v8345_v4 = vadd.f32 %v850_v59, %v334_v58  ;;  %v8382_v36 = vadd.f32 %v903_v60, %v342_v22 }
 0x2fc   :  { %v854_v0 = vpop.f32.mrb[7].mxu0  ;;  %v907_v1 = vpop.f32.mrb[15].mxu1  ;;  %v8350_v7 = vadd.f32 %v852_v62, %v330_v39  ;;  %v8369_v29 = vadd.f32 %v905_v14, %v338_v5 }
 0x2fd   :  { %v8352_v8 = vadd.f32 %v854_v0, %v334_v58  ;;  %v1663_v13 = vmax.f32 %v8343_v2, %v8345_v4  ;;  %v8387_v43 = vadd.f32 %v907_v1, %v342_v22 }
 0x2ff   :  { %v1672_v23 = vmax.f32 %v8350_v7, %v8352_v8  ;;  %v1664_v28 = vmax.f32 %v1663_v13, %v8360_v21 }
 0x301   :  { %v858_v10 = vpop.f32.mrb[8].mxu0  ;;  %v911_v11 = vpop.f32.mrb[16].mxu1  ;;  %v1673_v37 = vmax.f32 %v1672_v23, %v8369_v29  ;;  %v1665_v42 = vmax.f32 %v1664_v28, %v8382_v36 }
 0x302   :  { %v860_v15 = vpop.f32.mrb[9].mxu0  ;;  %v913_v16 = vpop.f32.mrb[17].mxu1  ;;  %v8371_v30 = vadd.f32 %v858_v10, %v330_v39  ;;  %v8399_v56 = vadd.f32 %v911_v11, %v338_v5 }
 0x303   :  { %v862_v18 = vpop.f32.mrb[10].mxu0  ;;  %v915_v19 = vpop.f32.mrb[18].mxu1  ;;  %v8373_v31 = vadd.f32 %v860_v15, %v334_v58  ;;  %v1674_v53 = vmax.f32 %v1673_v37, %v8387_v43  ;;  %v8413_v10 = vadd.f32 %v913_v16, %v342_v22 }
 0x304   :  { %v864_v24 = vpop.f32.mrb[11].mxu0  ;;  %v917_v25 = vpop.f32.mrb[19].mxu1  ;;  %v8375_v32 = vadd.f32 %v862_v18, %v330_v39  ;;  %v8404_v60 = vadd.f32 %v915_v19, %v338_v5 }
 0x305   :  { %v8377_v33 = vadd.f32 %v864_v24, %v334_v58  ;;  %v1681_v44 = vmax.f32 %v8371_v30, %v8373_v31  ;;  %v8422_v19 = vadd.f32 %v917_v25, %v342_v22 }
 0x307   :  { %v1690_v48 = vmax.f32 %v8375_v32, %v8377_v33  ;;  %v1682_v14 = vmax.f32 %v1681_v44, %v8399_v56 }
 0x309   :  { %v954_v38 = vpop.f32.mrb[12].mxu0  ;;  %v1007_v41 = vpop.f32.mrb[20].mxu1  ;;  %v1691_v11 = vmax.f32 %v1690_v48, %v8404_v60  ;;  %v1683_v28 = vmax.f32 %v1682_v14, %v8413_v10 }
 0x30a   :  { %v8391_v45 = vadd.f32 %v954_v38, %v346_v26  ;;  %v956_v46 = vpop.f32.mrb[13].mxu0  ;;  %v1009_v47 = vpop.f32.mrb[21].mxu1  ;;  %v8409_v0 = vadd.f32 %v1007_v41, %v354_v40 }
 0x30b   :  { %v8395_v49 = vadd.f32 %v956_v46, %v350_v34  ;;  %v958_v51 = vpop.f32.mrb[14].mxu0  ;;  %v1011_v52 = vpop.f32.mrb[22].mxu1  ;;  %v8416_v13 = vadd.f32 %v1009_v47, %v358_v50  ;;  %v1692_v48 = vmax.f32 %v1691_v11, %v8422_v19 }
 0x30c   :  { %v1666_v57 = vmax.f32 %v1665_v42, %v8391_v45  ;;  %v8402_v39 = vadd.f32 %v958_v51, %v346_v26  ;;  %v960_v58 = vpop.f32.mrb[15].mxu0  ;;  %v1013_v59 = vpop.f32.mrb[23].mxu1  ;;  %v8418_v15 = vadd.f32 %v1011_v52, %v354_v40 }
 0x30d   :  { %v8406_v62 = vadd.f32 %v960_v58, %v350_v34  ;;  %v8432_v22 = vadd.f32 %v1013_v59, %v358_v50 }
 0x30e   :  { %v1667_v61 = vmax.f32 %v1666_v57, %v8395_v49  ;;  %v1675_v1 = vmax.f32 %v1674_v53, %v8402_v39 }
 0x310   :  { %v1676_v5 = vmax.f32 %v1675_v1, %v8406_v62  ;;  %v1668_v18 = vmax.f32 %v1667_v61, %v8409_v0 }
 0x311   :  { %v964_v23 = vpop.f32.mrb[16].mxu0  ;;  %v1017_v24 = vpop.f32.mrb[24].mxu1 }
 0x312   :  { %v8425_v37 = vadd.f32 %v964_v23, %v346_v26  ;;  %v966_v16 = vpop.f32.mrb[17].mxu0  ;;  %v1019_v38 = vpop.f32.mrb[25].mxu1  ;;  %v1669_v41 = vmax.f32 %v1668_v18, %v8416_v13  ;;  %v1677_v42 = vmax.f32 %v1676_v5, %v8418_v15  ;;  %v8439_v58 = vadd.f32 %v1017_v24, %v354_v40 }
 0x313   :  { %v8429_v44 = vadd.f32 %v966_v16, %v350_v34  ;;  %v968_v46 = vpop.f32.mrb[18].mxu0  ;;  %v1021_v47 = vpop.f32.mrb[26].mxu1  ;;  %v8444_v11 = vadd.f32 %v1019_v38, %v358_v50 }
 0x314   :  { %v1684_v25 = vmax.f32 %v1683_v28, %v8425_v37  ;;  %v8435_v51 = vadd.f32 %v968_v46, %v346_v26  ;;  %v970_v52 = vpop.f32.mrb[19].mxu0  ;;  %v1023_v53 = vpop.f32.mrb[27].mxu1  ;;  %1670 = vmax.xlane.f32.xlu1 %v1669_v41  ;;  %v1678_v1 = vmax.f32 %v1677_v42, %v8432_v22  ;;  %v8446_v59 = vadd.f32 %v1021_v47, %v354_v40 }
 0x315   :  { %v8437_v57 = vadd.f32 %v970_v52, %v350_v34  ;;  %v8454_v23 = vadd.f32 %v1023_v53, %v358_v50 }
 0x316   :  { %v1685_v14 = vmax.f32 %v1684_v25, %v8429_v44  ;;  %v1693_v61 = vmax.f32 %v1692_v48, %v8435_v51 }
 0x318   :  { %v1694_v26 = vmax.f32 %v1693_v61, %v8437_v57  ;;  %1679 = vmax.xlane.f32.xlu1 %v1678_v1  ;;  %v1686_v5 = vmax.f32 %v1685_v14, %v8439_v58 }
 0x319   :  { %v8450_v18 = vpop.f32.mrb[20].mxu0  ;;  %v8452_v34 = vpop.f32.mrb[28].mxu1 }
 0x31a   :  { %v8456_v24 = vpop.f32.mrb[21].mxu0  ;;  %v8458_v28 = vpop.f32.mrb[29].mxu1  ;;  %v1687_v16 = vmax.f32 %v1686_v5, %v8444_v11  ;;  %v1695_v40 = vmax.f32 %v1694_v26, %v8446_v59 }
 0x31b   :  { %v8462_v38 = vpop.f32.mrb[22].mxu0  ;;  %v8464_v41 = vpop.f32.mrb[30].mxu1 }
 0x31c   :  { %v8466_v42 = vpop.f32.mrb[23].mxu0  ;;  %v8468_v46 = vpop.f32.mrb[31].mxu1  ;;  %1688 = vmax.xlane.f32.xlu0 %v1687_v16  ;;  %v1696_v50 = vmax.f32 %v1695_v40, %v8454_v23 }
 0x31e   :  { %1697 = vmax.xlane.f32.xlu1 %v1696_v50 }
 0x321   :  { %v8471_v47 = vpop.f32.mrb[24].mxu0  ;;  %v8473_v48 = vpop.f32.mrb[32].mxu1 }
 0x322   :  { %v8475_v25 = vpop.f32.mrb[25].mxu0  ;;  %v8477_v52 = vpop.f32.mrb[33].mxu1 }
 0x323   :  { %11511 = vst [vmem:[#allocation15_spill] sm:$0xff] %v8477_v52  ;;  %v8479_v53 = vpop.f32.mrb[26].mxu0  ;;  %v8481_v14 = vpop.f32.mrb[34].mxu1  ;;  %v7366_v52 = vld [vmem:[%s11361_s4 + $0x88] sm:$0xff]  }
 0x324   :  { %11512 = vst [vmem:[#allocation16_spill] sm:$0xff] %v8481_v14  ;;  %v8483_v61 = vpop.f32.mrb[27].mxu0  ;;  %v8485_v1 = vpop.f32.mrb[35].mxu1 }
 0x325   :  { %11513 = vst [vmem:[#allocation17_spill] sm:$0xff] %v8485_v1 }
 0x329   :  { %v8487_v26 = vpop.f32.mrb[28].mxu0  ;;  %v8489_v5 = vpop.f32.mrb[36].mxu1 }
 0x32a   :  { %11514 = vst [vmem:[#allocation18_spill] sm:$0xff] %v8487_v26  ;;  %11515 = vst [vmem:[#allocation19_spill] sm:$0xff] %v8489_v5  ;;  %v8491_v16 = vpop.f32.mrb[29].mxu0  ;;  %v8493_v40 = vpop.f32.mrb[37].mxu1 }
 0x32b   :  { %11516 = vst [vmem:[#allocation20_spill] sm:$0xff] %v8491_v16  ;;  %11517 = vst [vmem:[#allocation21_spill] sm:$0xff] %v8493_v40  ;;  %v8495_v50 = vpop.f32.mrb[30].mxu0  ;;  %v8497_v9 = vpop.f32.mrb[38].mxu1 }
 0x32c   :  { %11518 = vst [vmem:[#allocation22_spill] sm:$0xff] %v8495_v50  ;;  %11519 = vst [vmem:[#allocation23_spill] sm:$0xff] %v8497_v9  ;;  %v8499_v3 = vpop.f32.mrb[31].mxu0  ;;  %v8501_v17 = vpop.f32.mrb[39].mxu1 }
 0x32d   :  { %11520 = vst [vmem:[#allocation24_spill] sm:$0xff] %v8499_v3  ;;  %11521 = vst [vmem:[#allocation25_spill] sm:$0xff] %v8501_v17 }
 0x331   :  { %v8503_v35 = vpop.f32.mrb[32].mxu0  ;;  %v8505_v27 = vpop.f32.mrb[40].mxu1 }
 0x332   :  { %11522 = vst [vmem:[#allocation26_spill] sm:$0xff] %v8503_v35  ;;  %11523 = vst [vmem:[#allocation27_spill] sm:$0xff] %v8505_v27  ;;  %v8507_v1 = vpop.f32.mrb[33].mxu0  ;;  %v8509_v14 = vpop.f32.mrb[41].mxu1 }
 0x333   :  { %11524 = vst [vmem:[#allocation28_spill] sm:$0xff] %v8507_v1  ;;  %11525 = vst [vmem:[#allocation29_spill] sm:$0xff] %v8509_v14  ;;  %v8511_v5 = vpop.f32.mrb[34].mxu0  ;;  %v8513_v16 = vpop.f32.mrb[42].mxu1 }
 0x334   :  { %11526 = vst [vmem:[#allocation30_spill] sm:$0xff] %v8511_v5  ;;  %11527 = vst [vmem:[#allocation31_spill] sm:$0xff] %v8513_v16  ;;  %v8515_v40 = vpop.f32.mrb[35].mxu0  ;;  %v8517_v50 = vpop.f32.mrb[43].mxu1 }
 0x335   :  { %11528 = vst [vmem:[#allocation32_spill] sm:$0xff] %v8515_v40  ;;  %11529 = vst [vmem:[#allocation33_spill] sm:$0xff] %v8517_v50 }
 0x339   :  { %v8519_v9 = vpop.f32.mrb[36].mxu0  ;;  %v8521_v3 = vpop.f32.mrb[44].mxu1 }
 0x33a   :  { %11530 = vst [vmem:[#allocation34_spill] sm:$0xff] %v8519_v9  ;;  %11531 = vst [vmem:[#allocation35_spill] sm:$0xff] %v8521_v3  ;;  %v8523_v17 = vpop.f32.mrb[37].mxu0  ;;  %v8525_v35 = vpop.f32.mrb[45].mxu1 }
 0x33b   :  { %11532 = vst [vmem:[#allocation36_spill] sm:$0xff] %v8523_v17  ;;  %11533 = vst [vmem:[#allocation37_spill] sm:$0xff] %v8525_v35  ;;  %v8527_v27 = vpop.f32.mrb[38].mxu0  ;;  %v8529_v1 = vpop.f32.mrb[46].mxu1 }
 0x33c   :  { %11534 = vst [vmem:[#allocation38_spill] sm:$0xff] %v8527_v27  ;;  %11535 = vst [vmem:[#allocation39_spill] sm:$0xff] %v8529_v1  ;;  %v8531_v14 = vpop.f32.mrb[39].mxu0  ;;  %v8533_v5 = vpop.f32.mrb[47].mxu1 }
 0x33d   :  { %11536 = vst [vmem:[#allocation40_spill] sm:$0xff] %v8531_v14  ;;  %11537 = vst [vmem:[#allocation41_spill] sm:$0xff] %v8533_v5 }
 0x341   :  { %v8535_v16 = vpop.f32.mrb[40].mxu0  ;;  %v8537_v40 = vpop.f32.mrb[48].mxu1 }
 0x342   :  { %11538 = vst [vmem:[#allocation42_spill] sm:$0xff] %v8535_v16  ;;  %11539 = vst [vmem:[#allocation43_spill] sm:$0xff] %v8537_v40  ;;  %v8539_v50 = vpop.f32.mrb[41].mxu0  ;;  %v8541_v9 = vpop.f32.mrb[49].mxu1 }
 0x343   :  { %11540 = vst [vmem:[#allocation44_spill] sm:$0xff] %v8539_v50  ;;  %11541 = vst [vmem:[#allocation45_spill] sm:$0xff] %v8541_v9  ;;  %v8543_v3 = vpop.f32.mrb[42].mxu0  ;;  %v8545_v17 = vpop.f32.mrb[50].mxu1 }
 0x344   :  { %11542 = vst [vmem:[#allocation46_spill] sm:$0xff] %v8543_v3  ;;  %11543 = vst [vmem:[#allocation47_spill] sm:$0xff] %v8545_v17  ;;  %v8547_v35 = vpop.f32.mrb[43].mxu0  ;;  %v8549_v27 = vpop.f32.mrb[51].mxu1 }
 0x345   :  { %11544 = vst [vmem:[#allocation48_spill] sm:$0xff] %v8547_v35  ;;  %11545 = vst [vmem:[#allocation49_spill] sm:$0xff] %v8549_v27 }
 0x349   :  { %v8551_v1 = vpop.f32.mrb[44].mxu0  ;;  %v8553_v14 = vpop.f32.mrb[52].mxu1 }
 0x34a   :  { %11546 = vst [vmem:[#allocation50_spill] sm:$0xff] %v8551_v1  ;;  %11547 = vst [vmem:[#allocation51_spill] sm:$0xff] %v8553_v14  ;;  %v8555_v5 = vpop.f32.mrb[45].mxu0  ;;  %v8557_v16 = vpop.f32.mrb[53].mxu1 }
 0x34b   :  { %11548 = vst [vmem:[#allocation52_spill] sm:$0xff] %v8555_v5  ;;  %11549 = vst [vmem:[#allocation53_spill] sm:$0xff] %v8557_v16  ;;  %v8559_v40 = vpop.f32.mrb[46].mxu0  ;;  %v8561_v50 = vpop.f32.mrb[54].mxu1 }
 0x34c   :  { %11550 = vst [vmem:[#allocation54_spill] sm:$0xff] %v8559_v40  ;;  %11551 = vst [vmem:[#allocation55_spill] sm:$0xff] %v8561_v50  ;;  %v8563_v9 = vpop.f32.mrb[47].mxu0  ;;  %v8565_v3 = vpop.f32.mrb[55].mxu1 }
 0x34d   :  { %11552 = vst [vmem:[#allocation56_spill] sm:$0xff] %v8563_v9  ;;  %11553 = vst [vmem:[#allocation57_spill] sm:$0xff] %v8565_v3 }
 0x351   :  { %v8567_v17 = vpop.f32.mrb[48].mxu0  ;;  %v8569_v35 = vpop.f32.mrb[56].mxu1 }
 0x352   :  { %11554 = vst [vmem:[#allocation58_spill] sm:$0xff] %v8567_v17  ;;  %11555 = vst [vmem:[#allocation59_spill] sm:$0xff] %v8569_v35  ;;  %v8571_v27 = vpop.f32.mrb[49].mxu0  ;;  %v8573_v1 = vpop.f32.mrb[57].mxu1 }
 0x353   :  { %11556 = vst [vmem:[#allocation60_spill] sm:$0xff] %v8571_v27  ;;  %11557 = vst [vmem:[#allocation61_spill] sm:$0xff] %v8573_v1  ;;  %v8575_v14 = vpop.f32.mrb[50].mxu0  ;;  %v8577_v5 = vpop.f32.mrb[58].mxu1 }
 0x354   :  { %11558 = vst [vmem:[#allocation62_spill] sm:$0xff] %v8575_v14  ;;  %11559 = vst [vmem:[#allocation63_spill] sm:$0xff] %v8577_v5  ;;  %v8579_v16 = vpop.f32.mrb[51].mxu0  ;;  %v8581_v40 = vpop.f32.mrb[59].mxu1 }
 0x355   :  { %11560 = vst [vmem:[#allocation64_spill] sm:$0xff] %v8579_v16  ;;  %11561 = vst [vmem:[#allocation65_spill] sm:$0xff] %v8581_v40  ;;  %v7359_v40 = vld [vmem:[%s11361_s4 + $0x40] sm:$0xff]   ;;  %v7365_v16 = vld [vmem:[%s11361_s4 + $0x8] sm:$0xff]  }
 0x356   :  { %6758 = vmatprep.subr.bf16.mxu0 %v7359_v40 }
 0x359   :  { %v8583_v50 = vpop.f32.mrb[52].mxu0  ;;  %v8585_v9 = vpop.f32.mrb[60].mxu1 }
 0x35a   :  { %11562 = vst [vmem:[#allocation66_spill] sm:$0xff] %v8583_v50  ;;  %11563 = vst [vmem:[#allocation67_spill] sm:$0xff] %v8585_v9  ;;  %v8587_v3 = vpop.f32.mrb[53].mxu0  ;;  %v8589_v17 = vpop.f32.mrb[61].mxu1  ;;  %v7360_v9 = vld [vmem:[%s11361_s4 + $0xc0] sm:$0xff]  }
 0x35b   :  { %11564 = vst [vmem:[#allocation68_spill] sm:$0xff] %v8587_v3  ;;  %11565 = vst [vmem:[#allocation69_spill] sm:$0xff] %v8589_v17  ;;  %v8591_v35 = vpop.f32.mrb[54].mxu0  ;;  %v8593_v27 = vpop.f32.mrb[62].mxu1  ;;  %v7361_v17 = vld [vmem:[%s11361_s4] sm:$0xff]   ;;  %6786 = vmatprep.subr.bf16.mxu1 %v7360_v9  ;;  %v7367_v9 = vld [vmem:[%s11361_s4 + $0x50] sm:$0xff]  }
 0x35c   :  { %11566 = vst [vmem:[#allocation70_spill] sm:$0xff] %v8591_v35  ;;  %11567 = vst [vmem:[#allocation71_spill] sm:$0xff] %v8593_v27  ;;  %v8595_v1 = vpop.f32.mrb[55].mxu0  ;;  %v8597_v14 = vpop.f32.mrb[63].mxu1  ;;  %v7362_v27 = vld [vmem:[%s11361_s4 + $0x80] sm:$0xff]   ;;  %6759 = vmatpush3.bf16.msra.mxu0 %v7361_v17  ;;  %v7368_v17 = vld [vmem:[%s11361_s4 + $0xd0] sm:$0xff]  }
 0x35d   :  { %11568 = vst [vmem:[#allocation72_spill] sm:$0xff] %v8595_v1  ;;  %11569 = vst [vmem:[#allocation73_spill] sm:$0xff] %v8597_v14  ;;  %v7363_v14 = vld [vmem:[%s11361_s4 + $0x48] sm:$0xff]   ;;  %6787 = vmatpush3.bf16.msra.mxu1 %v7362_v27 }
 0x35e   :  { %v7364_v1 = vld [vmem:[%s11361_s4 + $0xc8] sm:$0xff]   ;;  %6760 = vmatprep.subr.bf16.mxu0 %v7363_v14  ;;  %v7370_v14 = vld [vmem:[%s11361_s4 + $0x90] sm:$0xff]  }
 0x35f   :  { %6788 = vmatprep.subr.bf16.mxu1 %v7364_v1  ;;  %v7371_v1 = vld [vmem:[%s11361_s4 + $0x58] sm:$0xff]  }
 0x360   :  { %6761 = vmatpush3.bf16.msra.mxu0 %v7365_v16 }
 0x361   :  { %v8617_v35 = vpop.f32.mrb[56].mxu0  ;;  %v8619_v3 = vpop.f32.mrb[64].mxu1  ;;  %6789 = vmatpush3.bf16.msra.mxu1 %v7366_v52  ;;  %6762 = vmatprep.subr.bf16.mxu0 %v7367_v9 }
 0x362   :  { %11570 = vst [vmem:[#allocation74_spill] sm:$0xff] %v8617_v35  ;;  %11571 = vst [vmem:[#allocation75_spill] sm:$0xff] %v8619_v3  ;;  %v8621_v50 = vpop.f32.mrb[57].mxu0  ;;  %v8623_v5 = vpop.f32.mrb[65].mxu1  ;;  %6790 = vmatprep.subr.bf16.mxu1 %v7368_v17 }
 0x363   :  { %11572 = vst [vmem:[#allocation76_spill] sm:$0xff] %v8621_v50  ;;  %11573 = vst [vmem:[#allocation77_spill] sm:$0xff] %v8623_v5  ;;  %v8631_v26 = vpop.f32.mrb[58].mxu0  ;;  %v8633_v35 = vpop.f32.mrb[66].mxu1 }
 0x364   :  { %11574 = vst [vmem:[#allocation78_spill] sm:$0xff] %v8631_v26  ;;  %11575 = vst [vmem:[#allocation79_spill] sm:$0xff] %v8633_v35  ;;  %v8641_v27 = vpop.f32.mrb[59].mxu0  ;;  %v8643_v40 = vpop.f32.mrb[67].mxu1  ;;  %v7369_v35 = vld [vmem:[%s11361_s4 + $0x10] sm:$0xff]  }
 0x365   :  { %11576 = vst [vmem:[#allocation80_spill] sm:$0xff] %v8641_v27  ;;  %11577 = vst [vmem:[#allocation81_spill] sm:$0xff] %v8643_v40  ;;  %v7372_v40 = vld [vmem:[%s11361_s4 + $0xd8] sm:$0xff]   ;;  %6763 = vmatpush3.bf16.msra.mxu0 %v7369_v35  ;;  %6791 = vmatpush3.bf16.msra.mxu1 %v7370_v14 }
 0x366   :  { %6764 = vmatprep.subr.bf16.mxu0 %v7371_v1  ;;  %6792 = vmatprep.subr.bf16.mxu1 %v7372_v40 }
 0x369   :  { %v8657_v16 = vpop.f32.mrb[60].mxu0  ;;  %v8659_v52 = vpop.f32.mrb[68].mxu1 }
 0x36a   :  { %11578 = vst [vmem:[#allocation82_spill] sm:$0xff] %v8657_v16  ;;  %11579 = vst [vmem:[#allocation83_spill] sm:$0xff] %v8659_v52  ;;  %v8661_v5 = vpop.f32.mrb[61].mxu0  ;;  %v8663_v3 = vpop.f32.mrb[69].mxu1 }
 0x36b   :  { %11580 = vst [vmem:[#allocation84_spill] sm:$0xff] %v8661_v5  ;;  %11581 = vst [vmem:[#allocation85_spill] sm:$0xff] %v8663_v3  ;;  %v8665_v9 = vpop.f32.mrb[62].mxu0  ;;  %v8667_v17 = vpop.f32.mrb[70].mxu1 }
 0x36c   :  { %11582 = vst [vmem:[#allocation86_spill] sm:$0xff] %v8665_v9  ;;  %11583 = vst [vmem:[#allocation87_spill] sm:$0xff] %v8667_v17  ;;  %v8669_v27 = vpop.f32.mrb[63].mxu0  ;;  %v8671_v26 = vpop.f32.mrb[71].mxu1 }
 0x36d   :  { %11584 = vst [vmem:[#allocation88_spill] sm:$0xff] %v8669_v27  ;;  %11585 = vst [vmem:[#allocation89_spill] sm:$0xff] %v8671_v26 }
 0x371   :  { %v8673_v50 = vpop.f32.mrb[64].mxu0  ;;  %v8675_v16 = vpop.f32.mrb[72].mxu1 }
 0x372   :  { %11586 = vst [vmem:[#allocation90_spill] sm:$0xff] %v8673_v50  ;;  %11587 = vst [vmem:[#allocation91_spill] sm:$0xff] %v8675_v16  ;;  %v8677_v52 = vpop.f32.mrb[65].mxu0  ;;  %v8679_v5 = vpop.f32.mrb[73].mxu1 }
 0x373   :  { %11588 = vst [vmem:[#allocation92_spill] sm:$0xff] %v8677_v52  ;;  %11589 = vst [vmem:[#allocation93_spill] sm:$0xff] %v8679_v5  ;;  %v8681_v35 = vpop.f32.mrb[66].mxu0  ;;  %v8683_v14 = vpop.f32.mrb[74].mxu1  ;;  %v8700_v5 = vld [vmem:[%s11360_s3 + $0x8] sm:$0xff] }
 0x374   :  { %11590 = vst [vmem:[#allocation94_spill] sm:$0xff] %v8681_v35  ;;  %11591 = vst [vmem:[#allocation95_spill] sm:$0xff] %v8683_v14  ;;  %v8685_v3 = vpop.f32.mrb[67].mxu0  ;;  %v8687_v1 = vpop.f32.mrb[75].mxu1 }
 0x375   :  { %11592 = vst [vmem:[#allocation96_spill] sm:$0xff] %v8685_v3  ;;  %11593 = vst [vmem:[#allocation97_spill] sm:$0xff] %v8687_v1 }
 0x3a1   :  { %v8689_v40 = vpop.xlane.xlu1 %1670 }
 0x3a2   :  { %v1699_v26 = vsub.f32 %v8343_v2, %v8689_v40  ;;  %v1700_v17 = vsub.f32 %v8345_v4, %v8689_v40  ;;  %v1701_v16 = vsub.f32 %v8360_v21, %v8689_v40  ;;  %v1702_v14 = vsub.f32 %v8382_v36, %v8689_v40 }
 0x3a3   :  { %v8712_v21 = vrot.slane %v8700_v5, %v8332_v54 }
 0x3a4   :  { %v1731_v1 = vmul.f32 1.442695, %v1699_v26  ;;  %v1733_v3 = vmul.f32 1.442695, %v1700_v17  ;;  %v1735_v52 = vmul.f32 1.442695, %v1701_v16  ;;  %v8718_v26 = vrot.slane %v8700_v5, %v8334_v55 }
 0x3a5   :  { %v8704_v35 = vpop.xlane.xlu1 %1679  ;;  %v1737_v17 = vmul.f32 1.442695, %v1702_v14  ;;  %v8742_v9 = vadd.f32 %v8450_v18, %v8712_v21 }
 0x3a6   :  { %7635 = vpow2.f32 %v1731_v1  ;;  %v1707_v2 = vsub.f32 %v8350_v7, %v8704_v35  ;;  %v1708_v4 = vsub.f32 %v8352_v8, %v8704_v35  ;;  %v1709_v36 = vsub.f32 %v8369_v29, %v8704_v35 }
 0x3a7   :  { %7637 = vpow2.f32 %v1733_v3  ;;  %v8722_v7 = vrot.slane %v8700_v5, %v8341_v63  ;;  %v8726_v8 = vrot.slane %v8700_v5, %v8348_v6  ;;  %v8730_v3 = vrot.slane %v8700_v5, %v8354_v12 }
 0x3a8   :  { %v1747_v16 = vmul.f32 1.442695, %v1707_v2  ;;  %v1749_v29 = vmul.f32 1.442695, %v1708_v4  ;;  %v8746_v12 = vrot.slane %v8700_v5, %v8358_v20  ;;  %7639 = vpow2.f32 %v1735_v52 }
 0x3a9   :  { %v8732_v1 = vpop.xlane.xlu0 %1688  ;;  %v1751_v2 = vmul.f32 1.442695, %v1709_v36  ;;  %7641 = vpow2.f32 %v1737_v17  ;;  %v8762_v36 = vadd.f32 %v8452_v34, %v8722_v7  ;;  %v1710_v34 = vsub.f32 %v8387_v43, %v8704_v35 }
 0x3aa   :  { %v1715_v50 = vsub.f32 %v8371_v30, %v8732_v1  ;;  %v1716_v14 = vsub.f32 %v8373_v31, %v8732_v1  ;;  %v1717_v27 = vsub.f32 %v8399_v56, %v8732_v1  ;;  %v8752_v30 = vadd.f32 %v8456_v24, %v8718_v26 }
 0x3ab   :  { %v8748_v4 = vpop.xlane.xlu1 %1697  ;;  %v1703_v56 = vsub.f32 %v8391_v45, %v8689_v40  ;;  %7643 = vpow2.f32 %v1747_v16  ;;  %v8768_v45 = vadd.f32 %v8458_v28, %v8726_v8  ;;  %v1711_v43 = vsub.f32 %v8402_v39, %v8704_v35 }
 0x3ac   :  { %v1763_v31 = vmul.f32 1.442695, %v1715_v50  ;;  %v1765_v18 = vmul.f32 1.442695, %v1716_v14  ;;  %v1723_v6 = vsub.f32 %v8375_v32, %v8748_v4  ;;  %v1724_v52 = vsub.f32 %v8377_v33, %v8748_v4 }
 0x3ad   :  { %7645 = vpow2.f32 %v1749_v29  ;;  %v1767_v24 = vmul.f32 1.442695, %v1717_v27  ;;  %v1704_v50 = vsub.f32 %v8395_v49, %v8689_v40  ;;  %v1705_v32 = vsub.f32 %v8409_v0, %v8689_v40 }
 0x3ae   :  { %7647 = vpow2.f32 %v1751_v2  ;;  %v1779_v17 = vmul.f32 1.442695, %v1723_v6  ;;  %v8776_v33 = vadd.f32 %v8462_v38, %v8712_v21  ;;  %v1739_v49 = vmul.f32 1.442695, %v1703_v56 }
 0x3af   :  { %7649 = vpow2.f32 %v1763_v31  ;;  %v2674_v28 = vmax.f32 %v8742_v9, %v8752_v30  ;;  %v1781_v6 = vmul.f32 1.442695, %v1724_v52  ;;  %v1706_v0 = vsub.f32 %v8416_v13, %v8689_v40 }
 0x3b0   :  { %v8772_v16 = vpop.eup %7635  ;;  %7651 = vpow2.f32 %v1765_v18  ;;  %v8788_v29 = vadd.f32 %v8464_v41, %v8722_v7  ;;  %v1741_v38 = vmul.f32 1.442695, %v1704_v50  ;;  %v1725_v14 = vsub.f32 %v8404_v60, %v8748_v4 }
 0x3b1   :  { %v8780_v27 = vpop.eup %7637  ;;  %7653 = vpow2.f32 %v1767_v24  ;;  %v1743_v2 = vmul.f32 1.442695, %v1705_v32  ;;  %v8798_v13 = vadd.f32 %v8466_v42, %v8718_v26  ;;  %v1753_v40 = vmul.f32 1.442695, %v1710_v34 }
 0x3b2   :  { %7655 = vpow2.f32 %v1779_v17  ;;  %v1795_v31 = vadd.f32 %v8780_v27, %v8772_v16  ;;  %v1712_v41 = vsub.f32 %v8406_v62, %v8704_v35  ;;  %v8802_v56 = vpop.eup %7639  ;;  %v8805_v39 = vmax.f32 %v2674_v28, %v8762_v36 }
 0x3b3   :  { %7657 = vpow2.f32 %v1739_v49  ;;  %v1718_v60 = vsub.f32 %v8413_v10, %v8732_v1  ;;  %v1745_v18 = vmul.f32 1.442695, %v1706_v0  ;;  %v8809_v52 = vpop.eup %7641  ;;  %v8813_v42 = vadd.f32 %v8468_v46, %v8726_v8 }
 0x3b4   :  { %7659 = vpow2.f32 %v1781_v6  ;;  %v1713_v62 = vsub.f32 %v8418_v15, %v8704_v35  ;;  %v1755_v24 = vmul.f32 1.442695, %v1711_v43  ;;  %v1783_v17 = vmul.f32 1.442695, %v1725_v14 }
 0x3b5   :  { %7661 = vpow2.f32 %v1741_v38  ;;  %v8817_v50 = vpop.eup %7643  ;;  %v1796_v32 = vadd.f32 %v8802_v56, %v1795_v31  ;;  %v1719_v10 = vsub.f32 %v8425_v37, %v8732_v1  ;;  %v2683_v46 = vmax.f32 %v8776_v33, %v8798_v13 }
 0x3b6   :  { %7663 = vpow2.f32 %v1743_v2  ;;  %v1714_v49 = vsub.f32 %v8432_v22, %v8704_v35  ;;  %v1757_v15 = vmul.f32 1.442695, %v1712_v41  ;;  %v2676_v6 = vmax.f32 %v8805_v39, %v8768_v45 }
 0x3b7   :  { %v8822_v34 = vpop.eup %7645  ;;  %7665 = vpow2.f32 %v1753_v40  ;;  %v1769_v0 = vmul.f32 1.442695, %v1718_v60  ;;  %v1720_v37 = vsub.f32 %v8429_v44, %v8732_v1  ;;  %v1726_v43 = vsub.f32 %v8422_v19, %v8748_v4 }
 0x3b8   :  { %v8828_v28 = vpop.eup %7647  ;;  %7667 = vpow2.f32 %v1745_v18  ;;  %v1759_v14 = vmul.f32 1.442695, %v1713_v62  ;;  %v1721_v22 = vsub.f32 %v8439_v58, %v8732_v1  ;;  %v1797_v2 = vadd.f32 %v8809_v52, %v1796_v32 }
 0x3b9   :  { %v8834_v38 = vpop.eup %7649  ;;  %7669 = vpow2.f32 %v1755_v24  ;;  %v1804_v31 = vadd.f32 %v8822_v34, %v8817_v50  ;;  %v1771_v40 = vmul.f32 1.442695, %v1719_v10  ;;  %v8849_v41 = vadd.f32 %v8471_v47, %v8712_v21 }
 0x3ba   :  { %11594 = vst [vmem:[#allocation98_spill] sm:$0xff] %v8834_v38  ;;  %v8840_v35 = vpop.eup %7651  ;;  %7671 = vpow2.f32 %v1783_v17  ;;  %v1761_v19 = vmul.f32 1.442695, %v1714_v49  ;;  %v1727_v58 = vsub.f32 %v8435_v51, %v8748_v4  ;;  %v8857_v18 = vadd.f32 %v8473_v48, %v8722_v7 }
 0x3bb   :  { %v8845_v44 = vpop.eup %7653  ;;  %7673 = vpow2.f32 %v1757_v15  ;;  %v1722_v62 = vsub.f32 %v8444_v11, %v8732_v1  ;;  %v1773_v24 = vmul.f32 1.442695, %v1720_v37  ;;  %v8865_v47 = vadd.f32 %v8475_v25, %v8718_v26 }
 0x3bc   :  { %11595 = vst [vmem:[#allocation99_spill] sm:$0xff] %v8845_v44  ;;  %v8853_v60 = vpop.eup %7655  ;;  %7675 = vpow2.f32 %v1769_v0  ;;  %v1785_v32 = vmul.f32 1.442695, %v1726_v43  ;;  %v1728_v51 = vsub.f32 %v8437_v57, %v8748_v4  ;;  %v1805_v49 = vadd.f32 %v8828_v28, %v1804_v31 }
 0x3bd   :  { %v8861_v17 = vpop.eup %7657  ;;  %7677 = vpow2.f32 %v1759_v14  ;;  %v1775_v11 = vmul.f32 1.442695, %v1721_v22  ;;  %v1813_v25 = vadd.f32 %v8840_v35, %v8834_v38  ;;  %v1729_v15 = vsub.f32 %v8446_v59, %v8748_v4 }
 0x3be   :  { %11596 = vst [vmem:[#allocation100_spill] sm:$0xff] %v8861_v17  ;;  %v8869_v10 = vpop.eup %7659  ;;  %v1798_v48 = vadd.f32 %v8861_v17, %v1797_v2  ;;  %7679 = vpow2.f32 %v1771_v40  ;;  %v1787_v0 = vmul.f32 1.442695, %v1727_v58  ;;  %v8883_v57 = vadd.f32 %v8479_v53, %v8712_v21 }
 0x3bf   :  { %v8873_v1 = vpop.eup %7661  ;;  %7681 = vpow2.f32 %v1761_v19  ;;  %v1777_v14 = vmul.f32 1.442695, %v1722_v62  ;;  %v2692_v2 = vmax.f32 %v8849_v41, %v8865_v47  ;;  %v1730_v31 = vsub.f32 %v8454_v23, %v8748_v4  ;;  %v11599_v62 = vld [vmem:[#allocation18_spill] sm:$0xff] }
 0x3c0   :  { %v8879_v37 = vpop.eup %7663  ;;  %v1799_v43 = vadd.f32 %v8873_v1, %v1798_v48  ;;  %7683 = vpow2.f32 %v1773_v24  ;;  %v1789_v59 = vmul.f32 1.442695, %v1728_v51  ;;  %v8896_v53 = vadd.f32 %v8483_v61, %v8718_v26 }
 0x3c1   :  { %11597 = vst [vmem:[#allocation101_spill] sm:$0xff] %v8879_v37  ;;  %v8886_v22 = vpop.eup %7665  ;;  %7685 = vpow2.f32 %v1785_v32  ;;  %v8904_v24 = vadd.f32 %v11599_v62, %v8730_v3  ;;  %v1814_v23 = vadd.f32 %v8845_v44, %v1813_v25  ;;  %v1791_v4 = vmul.f32 1.442695, %v1729_v15 }
 0x3c2   :  { %v8892_v40 = vpop.eup %7667  ;;  %v1800_v21 = vadd.f32 %v8879_v37, %v1799_v43  ;;  %v1806_v19 = vadd.f32 %v8886_v22, %v1805_v49  ;;  %7687 = vpow2.f32 %v1775_v11  ;;  %v1822_v51 = vadd.f32 %v8869_v10, %v8853_v60 }
 0x3c3   :  { %v8900_v58 = vpop.eup %7669  ;;  %7689 = vpow2.f32 %v1787_v0  ;;  %v2684_v49 = vmax.f32 %v2683_v46, %v8788_v29  ;;  %v2693_v11 = vmax.f32 %v2692_v2, %v8857_v18  ;;  %v1793_v25 = vmul.f32 1.442695, %v1730_v31  ;;  %v11601_v0 = vld [vmem:[#allocation15_spill] sm:$0xff]  ;;  %v11605_v31 = vld [vmem:[#allocation26_spill] sm:$0xff] }
 0x3c4   :  { %11598 = vst [vmem:[#allocation102_spill] sm:$0xff] %v8900_v58  ;;  %v8907_v32 = vpop.eup %7671  ;;  %v1801_v61 = vadd.f32 %v8892_v40, %v1800_v21  ;;  %v1807_v26 = vadd.f32 %v8900_v58, %v1806_v19  ;;  %7691 = vpow2.f32 %v1777_v14  ;;  %v8924_v43 = vadd.f32 %v11601_v0, %v8726_v8  ;;  %v11603_v21 = vld [vmem:[#allocation20_spill] sm:$0xff] }
 0x3c5   :  { %v8913_v48 = vpop.eup %7673  ;;  %7693 = vpow2.f32 %v1789_v59  ;;  %v2701_v14 = vmax.f32 %v8883_v57, %v8896_v53  ;;  %v8930_v19 = vadd.f32 %v11603_v21, %v8746_v12  ;;  %v2677_v2 = vmax.f32 %v2676_v6, %v8904_v24 }
 0x3c6   :  { %11600 = vst [vmem:[#allocation18_spill] sm:$0xff] %v8913_v48  ;;  %v8920_v15 = vpop.eup %7675  ;;  %11602 = vst [vmem:[#allocation15_spill] sm:$0xff] %v8924_v43  ;;  %1802 = vadd.xlane.f32.xlu0 %v1801_v61  ;;  %v1808_v46 = vadd.f32 %v8913_v48, %v1807_v26  ;;  %v8941_v59 = vadd.f32 %v11605_v31, %v8730_v3  ;;  %7695 = vpow2.f32 %v1791_v4  ;;  %v11608_v61 = vld [vmem:[#allocation16_spill] sm:$0xff]  ;;  %v11609_v26 = vld [vmem:[#allocation22_spill] sm:$0xff] }
 0x3c7   :  { %v8933_v62 = vpop.eup %7677  ;;  %v1815_v0 = vadd.f32 %v8920_v15, %v1814_v23  ;;  %v8948_v21 = vadd.f32 %v11608_v61, %v8722_v7  ;;  %v8952_v17 = vadd.f32 %v11609_v26, %v8730_v3  ;;  %v1823_v6 = vadd.f32 %v8907_v32, %v1822_v51  ;;  %v11612_v23 = vld [vmem:[#allocation13_spill] sm:$0xff] }
 0x3c8   :  { %11604 = vst [vmem:[#allocation20_spill] sm:$0xff] %v8933_v62  ;;  %11606 = vst [vmem:[#allocation26_spill] sm:$0xff] %v8941_v59  ;;  %v8944_v37 = vpop.eup %7679  ;;  %v1809_v39 = vadd.f32 %v8933_v62, %v1808_v46  ;;  %v2694_v31 = vmax.f32 %v2693_v11, %v8924_v43  ;;  %v386_v4 = vrot.slane %v8700_v5, %v11612_v23  ;;  %7697 = vpow2.f32 %v1793_v25  ;;  %v11614_v26 = vld [vmem:[#allocation17_spill] sm:$0xff]  ;;  %v11616_v25 = vld [vmem:[#allocation28_spill] sm:$0xff] }
 0x3c9   :  { %11607 = vst [vmem:[#allocation103_spill] sm:$0xff] %v8944_v37  ;;  %11610 = vst [vmem:[#allocation16_spill] sm:$0xff] %v8952_v17  ;;  %v8956_v58 = vpop.eup %7681  ;;  %v1816_v44 = vadd.f32 %v8944_v37, %v1815_v0  ;;  %v2685_v61 = vmax.f32 %v2684_v49, %v8813_v42  ;;  %v8967_v48 = vadd.f32 %v11614_v26, %v8726_v8 }
 0x3ca   :  { %11611 = vst [vmem:[#allocation22_spill] sm:$0xff] %v8956_v58  ;;  %v8962_v7 = vpop.eup %7683  ;;  %v2702_v51 = vmax.f32 %v2701_v14, %v8948_v21  ;;  %v1810_v46 = vadd.f32 %v8956_v58, %v1809_v39  ;;  %v2678_v11 = vmax.f32 %v2677_v2, %v8930_v19  ;;  %v2695_v43 = vmax.f32 %v2694_v31, %v8941_v59  ;;  %v11619_v14 = vld [vmem:[#allocation24_spill] sm:$0xff]  ;;  %v11620_v39 = vld [vmem:[#allocation30_spill] sm:$0xff] }
 0x3cb   :  { %11613 = vst [vmem:[#allocation104_spill] sm:$0xff] %v8962_v7  ;;  %11615 = vst [vmem:[#allocation17_spill] sm:$0xff] %v8967_v48  ;;  %v8971_v62 = vpop.eup %7685  ;;  %v8977_v0 = vadd.f32 %v11616_v25, %v8746_v12  ;;  %v1817_v49 = vadd.f32 %v8962_v7, %v1816_v44  ;;  %v2686_v8 = vmax.f32 %v2685_v61, %v8952_v17  ;;  %v11622_v25 = vld [vmem:[#allocation19_spill] sm:$0xff]  ;;  %v11623_v44 = vld [vmem:[#allocation14_spill] sm:$0xff] }
 0x3cc   :  { %v8980_v37 = vpop.eup %7687  ;;  %v8985_v26 = vadd.f32 %v11619_v14, %v8746_v12  ;;  %v8989_v58 = vadd.f32 %v11620_v39, %v8730_v3  ;;  %1811 = vadd.xlane.f32.xlu1 %v1810_v46  ;;  %v1824_v2 = vadd.f32 %v8971_v62, %v1823_v6  ;;  %v8995_v59 = vadd.f32 %v11622_v25, %v386_v4 }
 0x3cd   :  { %11617 = vst [vmem:[#allocation28_spill] sm:$0xff] %v8977_v0  ;;  %11618 = vst [vmem:[#allocation105_spill] sm:$0xff] %v8980_v37  ;;  %v8992_v31 = vpop.eup %7689  ;;  %v390_v7 = vrot.slane %v8700_v5, %v11623_v44  ;;  %v1818_v61 = vadd.f32 %v8980_v37, %v1817_v49  ;;  %v2703_v14 = vmax.f32 %v2702_v51, %v8967_v48  ;;  %v11626_v49 = vld [vmem:[#allocation32_spill] sm:$0xff] }
 0x3ce   :  { %11621 = vst [vmem:[#allocation24_spill] sm:$0xff] %v8992_v31  ;;  %v9000_v17 = vpop.eup %7691  ;;  %v1825_v3 = vadd.f32 %v8992_v31, %v1824_v2  ;;  %v2696_v6 = vmax.f32 %v2695_v43, %v8977_v0  ;;  %v2679_v25 = vmax.f32 %v2678_v11, %v8995_v59  ;;  %v2687_v38 = vmax.f32 %v2686_v8, %v8985_v26  ;;  %v11629_v2 = vld [vmem:[#allocation21_spill] sm:$0xff]  ;;  %v11630_v43 = vld [vmem:[#allocation27_spill] sm:$0xff] }
 0x3cf   :  { %11624 = vst [vmem:[#allocation30_spill] sm:$0xff] %v9000_v17  ;;  %v9004_v39 = vpop.eup %7693  ;;  %v1819_v46 = vadd.f32 %v9000_v17, %v1818_v61  ;;  %v2704_v5 = vmax.f32 %v2703_v14, %v8989_v58  ;;  %v9013_v37 = vadd.f32 %v11626_v49, %v8746_v12  ;;  %v9019_v31 = vadd.f32 %v11629_v2, %v390_v7  ;;  %v11631_v11 = vld [vmem:[#allocation23_spill] sm:$0xff] }
 0x3d0   :  { %11625 = vst [vmem:[#allocation19_spill] sm:$0xff] %v9004_v39  ;;  %v1826_v51 = vadd.f32 %v9004_v39, %v1825_v3  ;;  %v9016_v48 = vpop.eup %7695  ;;  %v9022_v0 = vadd.f32 %v11630_v43, %v386_v4  ;;  %v9025_v61 = vadd.f32 %v11631_v11, %v386_v4  ;;  %v11633_v43 = vld [vmem:[#allocation29_spill] sm:$0xff] }
 0x3d1   :  { %11627 = vst [vmem:[#allocation32_spill] sm:$0xff] %v9013_v37  ;;  %11628 = vst [vmem:[#allocation106_spill] sm:$0xff] %v9016_v48  ;;  %1820 = vadd.xlane.f32.xlu0 %v1819_v46  ;;  %v2680_v12 = vmax.f32 %v2679_v25, %v9019_v31  ;;  %v2705_v49 = vmax.f32 %v2704_v5, %v9013_v37  ;;  %v7373_v46 = vld [vmem:[%s11361_s4 + $0x18] sm:$0xff]   ;;  %v7375_v25 = vld [vmem:[%s11361_s4 + $0x60] sm:$0xff]  }
 0x3d2   :  { %v1827_v8 = vadd.f32 %v9016_v48, %v1826_v51  ;;  %v9028_v14 = vpop.eup %7697  ;;  %v2697_v3 = vmax.f32 %v2696_v6, %v9022_v0  ;;  %v2688_v17 = vmax.f32 %v2687_v38, %v9025_v61  ;;  %v7374_v51 = vld [vmem:[%s11361_s4 + $0x98] sm:$0xff]   ;;  %v9045_v6 = vadd.f32 %v11633_v43, %v390_v7  ;;  %v7376_v38 = vld [vmem:[%s11361_s4 + $0xe0] sm:$0xff]   ;;  %v11635_v5 = vld [vmem:[#allocation25_spill] sm:$0xff]  ;;  %6765 = vmatpush3.bf16.msra.mxu0 %v7373_v46 }
 0x3d3   :  { %11632 = vst [vmem:[#allocation21_spill] sm:$0xff] %v9028_v14  ;;  %v9051_v11 = vadd.f32 %v11635_v5, %v390_v7  ;;  %6793 = vmatpush3.bf16.msra.mxu1 %v7374_v51  ;;  %6766 = vmatprep.subr.bf16.mxu0 %v7375_v25  ;;  %v11638_v39 = vld [vmem:[#allocation33_spill] sm:$0xff]  ;;  %v7384_v46 = vld [vmem:[%s11361_s4 + $0xf0] sm:$0xff]   ;;  %v7388_v5 = vld [vmem:[%s11361_s4 + $0xf8] sm:$0xff]  }
 0x3d4   :  { %v1828_v2 = vadd.f32 %v9028_v14, %v1827_v8  ;;  %11634 = vst [vmem:[#allocation27_spill] sm:$0xff] %v9045_v6  ;;  %v11636_v8 = vld [vmem:[#allocation31_spill] sm:$0xff]  ;;  %v2698_v14 = vmax.f32 %v2697_v3, %v9045_v6  ;;  %6794 = vmatprep.subr.bf16.mxu1 %v7376_v38  ;;  %v9060_v37 = vadd.f32 %v11638_v39, %v390_v7  ;;  %v7378_v3 = vld [vmem:[%s11361_s4 + $0xa0] sm:$0xff]   ;;  %v7381_v39 = vld [vmem:[%s11361_s4 + $0x28] sm:$0xff]  }
 0x3d5   :  { %2681 = vmax.xlane.f32.xlu0 %v2680_v12  ;;  %v9054_v48 = vadd.f32 %v11636_v8, %v386_v4  ;;  %v2689_v43 = vmax.f32 %v2688_v17, %v9051_v11  ;;  %v7377_v4 = vld [vmem:[%s11361_s4 + $0x20] sm:$0xff]   ;;  %v7379_v17 = vld [vmem:[%s11361_s4 + $0x68] sm:$0xff]   ;;  %v7385_v51 = vld [vmem:[%s11361_s4 + $0x30] sm:$0xff]  }
 0x3d6   :  { %1829 = vadd.xlane.f32.xlu1 %v1828_v2  ;;  %11639 = vst [vmem:[#allocation29_spill] sm:$0xff] %v9060_v37  ;;  %6767 = vmatpush3.bf16.msra.mxu0 %v7377_v4  ;;  %v7383_v2 = vld [vmem:[%s11361_s4 + $0x70] sm:$0xff]   ;;  %v7387_v38 = vld [vmem:[%s11361_s4 + $0x78] sm:$0xff]   ;;  %v7392_v4 = vld [vmem:[%s11361_s4 + $0x1c0] sm:$0xff]  }
 0x3d7   :  { %11637 = vst [vmem:[#allocation23_spill] sm:$0xff] %v9054_v48  ;;  %v2706_v12 = vmax.f32 %v2705_v49, %v9054_v48  ;;  %6795 = vmatpush3.bf16.msra.mxu1 %v7378_v3  ;;  %6768 = vmatprep.subr.bf16.mxu0 %v7379_v17  ;;  %v7382_v49 = vld [vmem:[%s11361_s4 + $0xa8] sm:$0xff]   ;;  %v7386_v25 = vld [vmem:[%s11361_s4 + $0xb0] sm:$0xff]   ;;  %v7389_v8 = vld [vmem:[%s11361_s4 + $0x38] sm:$0xff]  }
 0x3d8   :  { %v321_v3 = vld [vmem:[%s11360_s3 + $0x10] sm:$0xff] }
 0x3d9   :  { %2699 = vmax.xlane.f32.xlu0 %v2698_v14  ;;  %v7380_v14 = vld [vmem:[%s11361_s4 + $0xe8] sm:$0xff]   ;;  %v2707_v7 = vmax.f32 %v2706_v12, %v9060_v37  ;;  %v7391_v12 = vld [vmem:[%s11361_s4 + $0x140] sm:$0xff]   ;;  %v394_v17 = vrot.slane %v321_v3, %v8332_v54  ;;  %v11651_v54 = vld [vmem:[#allocation39_spill] sm:$0xff] }
 0x3da   :  { %2690 = vmax.xlane.f32.xlu1 %v2689_v43  ;;  %6796 = vmatprep.subr.bf16.mxu1 %v7380_v14  ;;  %v7390_v43 = vld [vmem:[%s11361_s4 + $0xb8] sm:$0xff]   ;;  %v398_v14 = vrot.slane %v321_v3, %v8334_v55  ;;  %v11650_v55 = vld [vmem:[#allocation10_spill] sm:$0xff] }
 0x3db   :  { %6769 = vmatpush3.bf16.msra.mxu0 %v7381_v39  ;;  %6797 = vmatpush3.bf16.msra.mxu1 %v7382_v49  ;;  %v11640_v39 = vld [vmem:[#allocation34_spill] sm:$0xff] }
 0x3dc   :  { %6770 = vmatprep.subr.bf16.mxu0 %v7383_v2  ;;  %6798 = vmatprep.subr.bf16.mxu1 %v7384_v46  ;;  %v9117_v49 = vadd.f32 %v11640_v39, %v394_v17  ;;  %v11642_v2 = vld [vmem:[#allocation36_spill] sm:$0xff]  ;;  %v11648_v39 = vld [vmem:[#allocation35_spill] sm:$0xff]  ;;  %v11653_v37 = vld [vmem:[#allocation42_spill] sm:$0xff] }
 0x3dd   :  { %v9120_v46 = vadd.f32 %v11642_v2, %v398_v14 }
 0x3de   :  { %2708 = vmax.xlane.f32.xlu1 %v2707_v7  ;;  %11641 = vst [vmem:[#allocation25_spill] sm:$0xff] %v9117_v49 }
 0x3df   :  { %6771 = vmatpush3.bf16.msra.mxu0 %v7385_v51  ;;  %6799 = vmatpush3.bf16.msra.mxu1 %v7386_v25  ;;  %11643 = vst [vmem:[#allocation31_spill] sm:$0xff] %v9120_v46  ;;  %v11644_v51 = vld [vmem:[#allocation38_spill] sm:$0xff] }
 0x3e0   :  { %6772 = vmatprep.subr.bf16.mxu0 %v7387_v38  ;;  %6800 = vmatprep.subr.bf16.mxu1 %v7388_v5  ;;  %v9123_v25 = vadd.f32 %v11644_v51, %v394_v17  ;;  %v11646_v38 = vld [vmem:[#allocation40_spill] sm:$0xff]  ;;  %v9137_v51 = vrot.slane %v321_v3, %v11650_v55 }
 0x3e1   :  { %v9126_v5 = vadd.f32 %v11646_v38, %v398_v14 }
 0x3e2   :  { %11645 = vst [vmem:[#allocation33_spill] sm:$0xff] %v9123_v25 }
 0x3e3   :  { %6773 = vmatpush3.bf16.msra.mxu0 %v7389_v8  ;;  %6801 = vmatpush3.bf16.msra.mxu1 %v7390_v43  ;;  %11647 = vst [vmem:[#allocation34_spill] sm:$0xff] %v9126_v5  ;;  %v402_v8 = vrot.slane %v321_v3, %v8341_v63  ;;  %v9143_v63 = vadd.f32 %v11653_v37, %v394_v17 }
 0x3e4   :  { %6814 = vmatprep.subr.bf16.mxu0 %v7391_v12  ;;  %6842 = vmatprep.subr.bf16.mxu1 %v7392_v4  ;;  %v3681_v12 = vmax.f32 %v9117_v49, %v9120_v46  ;;  %v3690_v4 = vmax.f32 %v9123_v25, %v9126_v5  ;;  %v11658_v5 = vld [vmem:[#allocation37_spill] sm:$0xff] }
 0x3e5   :  { %v9134_v2 = vadd.f32 %v11648_v39, %v402_v8  ;;  %v9140_v38 = vadd.f32 %v11651_v54, %v402_v8  ;;  %11654 = vst [vmem:[#allocation40_spill] sm:$0xff] %v9143_v63  ;;  %v9156_v25 = vadd.f32 %v11658_v5, %v9137_v51  ;;  %v11660_v54 = vld [vmem:[#allocation41_spill] sm:$0xff] }
 0x3e6   :  { %v9160_v49 = vadd.f32 %v11660_v54, %v9137_v51 }
 0x3e7   :  { %11649 = vst [vmem:[#allocation36_spill] sm:$0xff] %v9134_v2  ;;  %11652 = vst [vmem:[#allocation38_spill] sm:$0xff] %v9140_v38  ;;  %v9149_v46 = vmax.f32 %v3681_v12, %v9134_v2  ;;  %v9168_v12 = vrot.slane %v321_v3, %v11612_v23  ;;  %v11664_v2 = vld [vmem:[#allocation43_spill] sm:$0xff]  ;;  %v11666_v23 = vld [vmem:[#allocation45_spill] sm:$0xff] }
 0x3e8   :  { %11659 = vst [vmem:[#allocation42_spill] sm:$0xff] %v9156_v25  ;;  %v9180_v6 = vadd.f32 %v11664_v2, %v402_v8  ;;  %v11667_v2 = vld [vmem:[#allocation46_spill] sm:$0xff] }
 0x3e9   :  { %11663 = vst [vmem:[#allocation37_spill] sm:$0xff] %v9168_v12 }
 0x453   :  { %v1803_v7 = vpop.xlane.xlu0 %1802 }
 0x454   :  { %7699 = vrcp.f32 %v1803_v7  ;;  %v11655_v7 = vld [vmem:[#allocation44_spill] sm:$0xff] }
 0x455   :  { %v9146_v48 = vadd.f32 %v11655_v7, %v398_v14  ;;  %11661 = vst [vmem:[#allocation44_spill] sm:$0xff] %v9160_v49  ;;  %v11662_v7 = vld [vmem:[#allocation11_spill] sm:$0xff]  ;;  %v9198_v49 = vadd.f32 %v11667_v2, %v394_v17 }
 0x456   :  { %v9165_v55 = vrot.slane %v321_v3, %v11662_v7 }
 0x457   :  { %11656 = vst [vmem:[#allocation35_spill] sm:$0xff] %v9146_v48  ;;  %v3699_v37 = vmax.f32 %v9143_v63, %v9146_v48  ;;  %v9183_v48 = vrot.slane %v321_v3, %v11623_v44 }
 0x459   :  { %v1812_v43 = vpop.xlane.xlu1 %1811  ;;  %11665 = vst [vmem:[#allocation41_spill] sm:$0xff] %v9183_v48  ;;  %v11669_v48 = vld [vmem:[#allocation48_spill] sm:$0xff] }
 0x45a   :  { %7701 = vrcp.f32 %v1812_v43  ;;  %v9152_v43 = vmax.f32 %v3690_v4, %v9140_v38  ;;  %v9171_v4 = vrot.slane %v321_v3, %v8358_v20  ;;  %v9189_v20 = vadd.f32 %v11666_v23, %v9137_v51  ;;  %v11668_v3 = vld [vmem:[#allocation47_spill] sm:$0xff] }
 0x45b   :  { %v9201_v44 = vadd.f32 %v11668_v3, %v402_v8 }
 0x45c   :  { %11657 = vst [vmem:[#allocation39_spill] sm:$0xff] %v9152_v43 }
 0x45e   :  { %v1821_v39 = vpop.xlane.xlu0 %1820  ;;  %v9173_v38 = vpop.eup %7699 }
 0x45f   :  { %7703 = vrcp.f32 %v1821_v39  ;;  %v9206_v39 = vmax.f32 %v3699_v37, %v9180_v6 }
 0x462   :  { %v9185_v63 = vpop.xlane.xlu0 %2681 }
 0x463   :  { %v1830_v7 = vpop.xlane.xlu1 %1829  ;;  %v2710_v5 = vsub.f32 %v8742_v9, %v9185_v63  ;;  %v2711_v54 = vsub.f32 %v8752_v30, %v9185_v63  ;;  %v2712_v23 = vsub.f32 %v8762_v36, %v9185_v63  ;;  %v9209_v9 = vadd.f32 %v11669_v48, %v398_v14 }
 0x464   :  { %v9195_v12 = vpop.eup %7701  ;;  %7705 = vrcp.f32 %v1830_v7  ;;  %v1836_v30 = vmul.f32 %v9173_v38, %v8780_v27  ;;  %v1838_v7 = vmul.f32 %v9173_v38, %v8809_v52  ;;  %v1835_v36 = vmul.f32 %v9173_v38, %v8772_v16 }
 0x465   :  { %v2742_v43 = vmul.f32 1.442695, %v2710_v5  ;;  %v2744_v25 = vmul.f32 1.442695, %v2711_v54  ;;  %v1844_v8 = vmul.f32 %v9195_v12, %v8822_v34  ;;  %v1837_v27 = vmul.f32 %v9173_v38, %v8802_v56 }
 0x466   :  { %v9213_v17 = vpop.xlane.xlu0 %2699  ;;  %v9229_v14 = vmul.f32 %v9173_v38, %v8873_v1  ;;  %v9233_v34 = vmul.f32 %v9173_v38, %v8892_v40  ;;  %v2713_v52 = vsub.f32 %v8768_v45, %v9185_v63  ;;  %v2746_v16 = vmul.f32 1.442695, %v2712_v23 }
 0x467   :  { %v9221_v37 = vpop.xlane.xlu1 %2690  ;;  %v2726_v48 = vsub.f32 %v8849_v41, %v9213_v17  ;;  %7707 = vpow2.f32 %v2742_v43  ;;  %v1846_v1 = vmul.f32 %v9195_v12, %v8886_v22  ;;  %v1843_v40 = vmul.f32 %v9195_v12, %v8817_v50 }
 0x468   :  { %v2718_v5 = vsub.f32 %v8776_v33, %v9221_v37  ;;  %v2719_v41 = vsub.f32 %v8798_v13, %v9221_v37  ;;  %v2720_v56 = vsub.f32 %v8788_v29, %v9221_v37  ;;  %7709 = vpow2.f32 %v2744_v25 }
 0x469   :  { %v2727_v45 = vsub.f32 %v8865_v47, %v9213_v17  ;;  %v2774_v54 = vmul.f32 1.442695, %v2726_v48  ;;  %v1868_v2 = vpack.c.bf16 %v1844_v8, %v1836_v30  ;;  %v2728_v13 = vsub.f32 %v8857_v18, %v9213_v17  ;;  %v9263_v18 = vpop.eup %7703  ;;  %v7393_v8 = vld [vmem:[%s11361_s4 + $0x100] sm:$0xff]  }
 0x46a   :  { %v2758_v33 = vmul.f32 1.442695, %v2718_v5  ;;  %v1845_v29 = vmul.f32 %v9195_v12, %v8828_v28  ;;  %v2714_v22 = vsub.f32 %v8904_v24, %v9185_v63  ;;  %v2721_v50 = vsub.f32 %v8813_v42, %v9221_v37 }
 0x46b   :  { %v9251_v43 = vpop.xlane.xlu1 %2708  ;;  %v2760_v25 = vmul.f32 1.442695, %v2719_v41  ;;  %2427 = vmatprep.mubr.bf16.mxu0 %v1868_v2  ;;  %v2715_v47 = vsub.f32 %v8930_v19, %v9185_v63  ;;  %v2716_v3 = vsub.f32 %v8995_v59, %v9185_v63  ;;  %7711 = vpow2.f32 %v2746_v16  ;;  %v7394_v41 = vld [vmem:[%s11361_s4 + $0x180] sm:$0xff]   ;;  %v11675_v59 = vld [vmem:[#allocation15_spill] sm:$0xff] }
 0x46c   :  { %v2748_v23 = vmul.f32 1.442695, %v2713_v52  ;;  %v2762_v30 = vmul.f32 1.442695, %v2720_v56  ;;  %v1870_v28 = vpack.c.bf16 %v1846_v1, %v1838_v7  ;;  %7713 = vpow2.f32 %v2774_v54  ;;  %v7395_v7 = vld [vmem:[%s11361_s4 + $0x148] sm:$0xff]  }
 0x46d   :  { %v2776_v42 = vmul.f32 1.442695, %v2727_v45  ;;  %v2734_v19 = vsub.f32 %v8883_v57, %v9251_v43  ;;  %v1867_v5 = vpack.c.bf16 %v1843_v40, %v1835_v36  ;;  %7715 = vpow2.f32 %v2758_v33  ;;  %v7396_v57 = vld [vmem:[%s11361_s4 + $0x1c8] sm:$0xff]   ;;  %v7399_v33 = vld [vmem:[%s11361_s4 + $0x150] sm:$0xff]  }
 0x46e   :  { %v9268_v48 = vpop.eup %7705  ;;  %v2778_v52 = vmul.f32 1.442695, %v2728_v13  ;;  %v2735_v16 = vsub.f32 %v8896_v53, %v9251_v43  ;;  %2476 = vmatprep.mubr.bf16.mxu1 %v1870_v28  ;;  %v1869_v56 = vpack.c.bf16 %v1845_v29, %v1837_v27  ;;  %7717 = vpow2.f32 %v2760_v25  ;;  %v7397_v27 = vld [vmem:[%s11361_s4 + $0x108] sm:$0xff]   ;;  %v11670_v28 = vld [vmem:[#allocation98_spill] sm:$0xff] }
 0x46f   :  { %v9283_v36 = vmul.f32 1.442695, %v2721_v50  ;;  %2428 = vmatmul.mubr.bf16.vlgmr.msra.gmra.mrb[68].mxu0 %v1867_v5  ;;  %v1852_v1 = vmul.f32 %v9263_v18, %v8840_v35  ;;  %v1860_v40 = vmul.f32 %v9268_v48, %v8869_v10  ;;  %7719 = vpow2.f32 %v2762_v30  ;;  %v7398_v10 = vld [vmem:[%s11361_s4 + $0x188] sm:$0xff]   ;;  %v7400_v50 = vld [vmem:[%s11361_s4 + $0x1d0] sm:$0xff]   ;;  %v11672_v5 = vld [vmem:[#allocation99_spill] sm:$0xff] }
 0x470   :  { %v2736_v53 = vsub.f32 %v8948_v21, %v9251_v43  ;;  %2477 = vmatmul.mubr.bf16.vlgmr.msra.gmra.mrb[76].mxu1 %v1869_v56  ;;  %6815 = vmatpush3.bf16.msra.mxu0 %v7393_v8  ;;  %v1854_v45 = vmul.f32 %v9263_v18, %v8920_v15  ;;  %v1862_v54 = vmul.f32 %v9268_v48, %v8971_v62  ;;  %7721 = vpow2.f32 %v2776_v42  ;;  %v7408_v21 = vld [vmem:[%s11361_s4 + $0x1e0] sm:$0xff]  }
 0x471   :  { %v2790_v35 = vmul.f32 1.442695, %v2734_v19  ;;  %6843 = vmatpush3.bf16.msra.mxu1 %v7394_v41  ;;  %6816 = vmatprep.subr.bf16.mxu0 %v7395_v7  ;;  %v1876_v2 = vpack.c.bf16 %v1860_v40, %v1852_v1  ;;  %v1859_v13 = vmul.f32 %v9268_v48, %v8853_v60  ;;  %v9306_v15 = vpop.eup %7707  ;;  %7723 = vpow2.f32 %v2778_v52  ;;  %v11671_v60 = vld [vmem:[#allocation18_spill] sm:$0xff]  ;;  %v11674_v1 = vld [vmem:[#allocation16_spill] sm:$0xff] }
 0x472   :  { %v2792_v62 = vmul.f32 1.442695, %v2735_v16  ;;  %6844 = vmatprep.subr.bf16.mxu1 %v7396_v57  ;;  %v1878_v29 = vpack.c.bf16 %v1862_v54, %v1854_v45  ;;  %v1861_v25 = vmul.f32 %v9268_v48, %v8907_v32  ;;  %v9313_v30 = vpop.eup %7709  ;;  %v1851_v8 = vmul.f32 %v9263_v18, %v11670_v28  ;;  %v7401_v32 = vld [vmem:[%s11361_s4 + $0x110] sm:$0xff]  }
 0x473   :  { %2435 = vmatprep.mubr.bf16.mxu0 %v1876_v2  ;;  %v1848_v42 = vmul.f32 %v9195_v12, %v11671_v60  ;;  %v2717_v19 = vsub.f32 %v9019_v31, %v9185_v63  ;;  %7725 = vpow2.f32 %v2748_v23  ;;  %v1853_v41 = vmul.f32 %v9263_v18, %v11672_v5  ;;  %v11673_v7 = vld [vmem:[#allocation22_spill] sm:$0xff] }
 0x474   :  { %6817 = vmatpush3.bf16.msra.mxu0 %v7397_v27  ;;  %2484 = vmatprep.mubr.bf16.mxu1 %v1878_v29  ;;  %v1850_v52 = vmul.f32 %v9195_v12, %v11673_v7  ;;  %v2750_v16 = vmul.f32 1.442695, %v2714_v22  ;;  %v2752_v56 = vmul.f32 1.442695, %v2715_v47  ;;  %7727 = vpow2.f32 %v2790_v35  ;;  %v7402_v23 = vld [vmem:[%s11361_s4 + $0x190] sm:$0xff]   ;;  %v7403_v22 = vld [vmem:[%s11361_s4 + $0x158] sm:$0xff]  }
 0x475   :  { %6845 = vmatpush3.bf16.msra.mxu1 %v7398_v10  ;;  %6818 = vmatprep.subr.bf16.mxu0 %v7399_v33  ;;  %v1875_v31 = vpack.c.bf16 %v1859_v13, %v1851_v8  ;;  %v2754_v57 = vmul.f32 1.442695, %v2716_v3  ;;  %v2722_v40 = vsub.f32 %v11674_v1, %v9221_v37  ;;  %v9339_v27 = vpop.eup %7711  ;;  %v1877_v24 = vpack.c.bf16 %v1861_v25, %v1853_v41  ;;  %v7404_v35 = vld [vmem:[%s11361_s4 + $0x1d8] sm:$0xff]   ;;  %v11676_v29 = vld [vmem:[#allocation49_spill] sm:$0xff]  ;;  %v11677_v28 = vld [vmem:[#allocation26_spill] sm:$0xff] }
 0x476   :  { %6846 = vmatprep.subr.bf16.mxu1 %v7400_v50  ;;  %7729 = vpow2.f32 %v2750_v16  ;;  %v2806_v47 = vadd.f32 %v9313_v30, %v9306_v15  ;;  %v2723_v45 = vsub.f32 %v8985_v26, %v9221_v37  ;;  %v9348_v63 = vpop.eup %7713  ;;  %v2729_v3 = vsub.f32 %v11675_v59, %v9213_v17  ;;  %v7405_v33 = vld [vmem:[%s11361_s4 + $0x118] sm:$0xff]  }
 0x477   :  { %7731 = vpow2.f32 %v2792_v62  ;;  %2436 = vmatmul.mubr.bf16.gmra.mrb[72].mxu0 %v1875_v31  ;;  %v1872_v54 = vpack.c.bf16 %v1848_v42, %v9229_v14  ;;  %v2756_v10 = vmul.f32 1.442695, %v2717_v19  ;;  %v9356_v2 = vpop.eup %7715  ;;  %v1874_v26 = vpack.c.bf16 %v1850_v52, %v9233_v34  ;;  %v7406_v34 = vld [vmem:[%s11361_s4 + $0x198] sm:$0xff]  }
 0x478   :  { %2485 = vmatmul.mubr.bf16.gmra.mrb[80].mxu1 %v1877_v24  ;;  %6819 = vmatpush3.bf16.msra.mxu0 %v7401_v32  ;;  %7733 = vpow2.f32 %v2752_v56  ;;  %v2724_v13 = vsub.f32 %v9025_v61, %v9221_v37  ;;  %v2766_v14 = vmul.f32 1.442695, %v2722_v40  ;;  %v9364_v62 = vpop.eup %7717  ;;  %v9368_v50 = vadd.f32 %v11676_v29, %v9137_v51  ;;  %v7407_v61 = vld [vmem:[%s11361_s4 + $0x160] sm:$0xff]  }
 0x479   :  { %v2794_v25 = vmul.f32 1.442695, %v2736_v53  ;;  %6847 = vmatpush3.bf16.msra.mxu1 %v7402_v23  ;;  %2525 = vmatprep.mubr.bf16.mxu0 %v1872_v54  ;;  %7735 = vpow2.f32 %v2754_v57  ;;  %v2730_v8 = vsub.f32 %v11677_v28, %v9213_v17  ;;  %v9381_v51 = vpop.eup %7719  ;;  %v2807_v53 = vadd.f32 %v9339_v27, %v2806_v47  ;;  %v11679_v32 = vld [vmem:[#allocation28_spill] sm:$0xff]  ;;  %v7411_v57 = vld [vmem:[%s11361_s4 + $0x168] sm:$0xff]   ;;  %v11682_v54 = vld [vmem:[#allocation50_spill] sm:$0xff] }
 0x47a   :  { %11678 = vst [vmem:[#allocation43_spill] sm:$0xff] %v9381_v51  ;;  %2574 = vmatprep.mubr.bf16.mxu1 %v1874_v26  ;;  %6820 = vmatprep.subr.bf16.mxu0 %v7403_v22  ;;  %v2725_v60 = vsub.f32 %v9051_v11, %v9221_v37  ;;  %7737 = vpow2.f32 %v9283_v36  ;;  %v2768_v42 = vmul.f32 1.442695, %v2723_v45  ;;  %v9390_v19 = vpop.eup %7721  ;;  %v3708_v5 = vmax.f32 %v9198_v49, %v9209_v9  ;;  %v11681_v11 = vld [vmem:[#allocation17_spill] sm:$0xff]  ;;  %v7409_v36 = vld [vmem:[%s11361_s4 + $0x120] sm:$0xff]  }
 0x47b   :  { %v2780_v41 = vmul.f32 1.442695, %v2729_v3  ;;  %6848 = vmatprep.subr.bf16.mxu1 %v7404_v35  ;;  %7739 = vpow2.f32 %v2756_v10  ;;  %v2731_v7 = vsub.f32 %v11679_v32, %v9213_v17  ;;  %v9396_v52 = vpop.eup %7723  ;;  %v2737_v37 = vsub.f32 %v11681_v11, %v9251_v43  ;;  %v7410_v23 = vld [vmem:[%s11361_s4 + $0x1a0] sm:$0xff]   ;;  %v7412_v22 = vld [vmem:[%s11361_s4 + $0x1e8] sm:$0xff]   ;;  %v11686_v32 = vld [vmem:[#allocation23_spill] sm:$0xff] }
 0x47c   :  { %11680 = vst [vmem:[#allocation45_spill] sm:$0xff] %v9396_v52  ;;  %6821 = vmatpush3.bf16.msra.mxu0 %v7405_v33  ;;  %7741 = vpow2.f32 %v2766_v14  ;;  %v2770_v56 = vmul.f32 1.442695, %v2724_v13  ;;  %v2815_v1 = vadd.f32 %v9364_v62, %v9356_v2  ;;  %v2732_v40 = vsub.f32 %v9022_v0, %v9213_v17  ;;  %v11683_v0 = vld [vmem:[#allocation27_spill] sm:$0xff]  ;;  %v11684_v13 = vld [vmem:[#allocation52_spill] sm:$0xff] }
 0x47d   :  { %v9405_v31 = vpop.eup %7725  ;;  %7743 = vpow2.f32 %v2794_v25  ;;  %6849 = vmatpush3.bf16.msra.mxu1 %v7406_v34  ;;  %6822 = vmatprep.subr.bf16.mxu0 %v7407_v61  ;;  %v2782_v24 = vmul.f32 1.442695, %v2730_v8  ;;  %v2772_v45 = vmul.f32 1.442695, %v2725_v60  ;;  %v2738_v59 = vsub.f32 %v8989_v58, %v9251_v43  ;;  %v7413_v58 = vld [vmem:[%s11361_s4 + $0x128] sm:$0xff]   ;;  %v11685_v25 = vld [vmem:[#allocation32_spill] sm:$0xff] }
 0x47e   :  { %6850 = vmatprep.subr.bf16.mxu1 %v7408_v21  ;;  %v2808_v47 = vadd.f32 %v9405_v31, %v2807_v53  ;;  %7745 = vpow2.f32 %v2768_v42  ;;  %v9423_v3 = vpop.eup %7727  ;;  %v9427_v35 = vadd.f32 %v11682_v54, %v9165_v55  ;;  %v2733_v10 = vsub.f32 %v11683_v0, %v9213_v17  ;;  %v7414_v17 = vld [vmem:[%s11361_s4 + $0x1a8] sm:$0xff]   ;;  %v7415_v8 = vld [vmem:[%s11361_s4 + $0x170] sm:$0xff]  }
 0x47f   :  { %7747 = vpow2.f32 %v2780_v41  ;;  %v2784_v26 = vmul.f32 1.442695, %v2731_v7  ;;  %v9435_v14 = vadd.f32 %v11684_v13, %v9171_v4  ;;  %v2796_v29 = vmul.f32 1.442695, %v2737_v37  ;;  %v7416_v42 = vld [vmem:[%s11361_s4 + $0x1f0] sm:$0xff]  }
 0x480   :  { %v9431_v33 = vpop.eup %7729  ;;  %6823 = vmatpush3.bf16.msra.mxu0 %v7409_v36  ;;  %7749 = vpow2.f32 %v2770_v56  ;;  %v2739_v34 = vsub.f32 %v11685_v25, %v9251_v43  ;;  %v2816_v21 = vadd.f32 %v9381_v51, %v2815_v1  ;;  %v2786_v53 = vmul.f32 1.442695, %v2732_v40  ;;  %v11687_v36 = vld [vmem:[#allocation42_spill] sm:$0xff]  ;;  %v7419_v25 = vld [vmem:[%s11361_s4 + $0x178] sm:$0xff]  }
 0x481   :  { %v9442_v61 = vpop.eup %7731  ;;  %6851 = vmatpush3.bf16.msra.mxu1 %v7410_v23  ;;  %6824 = vmatprep.subr.bf16.mxu0 %v7411_v57  ;;  %v2809_v28 = vadd.f32 %v9431_v33, %v2808_v47  ;;  %7751 = vpow2.f32 %v2782_v24  ;;  %v2824_v41 = vadd.f32 %v9390_v19, %v9348_v63  ;;  %v2740_v7 = vsub.f32 %v11686_v32, %v9251_v43  ;;  %v11690_v24 = vld [vmem:[#allocation54_spill] sm:$0xff]  ;;  %v11694_v32 = vld [vmem:[#allocation39_spill] sm:$0xff] }
 0x482   :  { %v9452_v60 = vpop.eup %7733  ;;  %6852 = vmatprep.subr.bf16.mxu1 %v7412_v22  ;;  %7753 = vpow2.f32 %v2772_v45  ;;  %v2798_v11 = vmul.f32 1.442695, %v2738_v59  ;;  %v11688_v56 = vmax.f32 %v9149_v46, %v11687_v36  ;;  %v2788_v1 = vmul.f32 1.442695, %v2733_v10  ;;  %v7417_v47 = vld [vmem:[%s11361_s4 + $0x130] sm:$0xff]   ;;  %v11691_v45 = vld [vmem:[#allocation29_spill] sm:$0xff] }
 0x483   :  { %v9461_v37 = vpop.eup %7735  ;;  %v2810_v57 = vadd.f32 %v9452_v60, %v2809_v28  ;;  %7755 = vpow2.f32 %v2784_v26  ;;  %v9474_v22 = vadd.f32 %v11690_v24, %v9165_v55  ;;  %v2741_v46 = vsub.f32 %v11691_v45, %v9251_v43  ;;  %v7418_v43 = vld [vmem:[%s11361_s4 + $0x1b0] sm:$0xff]  }
 0x484   :  { %v9467_v23 = vmax.f32 %v11688_v56, %v9427_v35  ;;  %v9470_v40 = vpop.eup %7737  ;;  %6825 = vmatpush3.bf16.msra.mxu0 %v7413_v58  ;;  %7757 = vpow2.f32 %v2796_v29  ;;  %v2800_v59 = vmul.f32 1.442695, %v2739_v34  ;;  %v9487_v0 = vmax.f32 %v3708_v5, %v9201_v44  ;;  %v11692_v29 = vld [vmem:[#allocation56_spill] sm:$0xff]  ;;  %v7420_v34 = vld [vmem:[%s11361_s4 + $0x1f8] sm:$0xff]   ;;  %v11698_v45 = vld [vmem:[#allocation58_spill] sm:$0xff] }
 0x485   :  { %11689 = vst [vmem:[#allocation46_spill] sm:$0xff] %v9470_v40  ;;  %v9481_v54 = vpop.eup %7739  ;;  %6853 = vmatpush3.bf16.msra.mxu1 %v7414_v17  ;;  %v2811_v10 = vadd.f32 %v9461_v37, %v2810_v57  ;;  %6826 = vmatprep.subr.bf16.mxu0 %v7415_v8  ;;  %v2817_v26 = vadd.f32 %v9470_v40, %v2816_v21  ;;  %7759 = vpow2.f32 %v2786_v53  ;;  %v2802_v17 = vmul.f32 1.442695, %v2740_v7  ;;  %v11695_v56 = vld [vmem:[#allocation44_spill] sm:$0xff]  ;;  %v11711_v51 = vld [vmem:[#allocation30_spill] sm:$0xff] }
 0x486   :  { %v9494_v13 = vpop.eup %7741  ;;  %v9498_v58 = vadd.f32 %v11692_v29, %v9171_v4  ;;  %6854 = vmatprep.subr.bf16.mxu1 %v7416_v42  ;;  %v2825_v5 = vadd.f32 %v9396_v52, %v2824_v41  ;;  %7761 = vpow2.f32 %v2798_v11  ;;  %v2833_v53 = vadd.f32 %v9442_v61, %v9423_v3 }
 0x487   :  { %v9507_v28 = vpop.eup %7743  ;;  %v2812_v8 = vadd.f32 %v9481_v54, %v2811_v10  ;;  %v2818_v21 = vadd.f32 %v9494_v13, %v2817_v26  ;;  %7763 = vpow2.f32 %v2788_v1  ;;  %v11696_v11 = vmax.f32 %v11694_v32, %v11695_v56  ;;  %v7421_v1 = vld [vmem:[%s11361_s4 + $0x138] sm:$0xff]  }
 0x488   :  { %11693 = vst [vmem:[#allocation47_spill] sm:$0xff] %v9507_v28  ;;  %v9513_v42 = vpop.eup %7745  ;;  %6827 = vmatpush3.bf16.msra.mxu0 %v7417_v47  ;;  %7765 = vpow2.f32 %v2800_v59  ;;  %v2804_v57 = vmul.f32 1.442695, %v2741_v46  ;;  %v9530_v10 = vadd.f32 %v11698_v45, %v9165_v55  ;;  %v7422_v47 = vld [vmem:[%s11361_s4 + $0x1b8] sm:$0xff]   ;;  %v11699_v59 = vld [vmem:[#allocation102_spill] sm:$0xff]  ;;  %v2834_v16 = vadd.f32 %v9507_v28, %v2833_v53  ;;  %v11710_v53 = vld [vmem:[#allocation60_spill] sm:$0xff] }
 0x489   :  { %v9521_v7 = vmax.f32 %v11696_v11, %v9474_v22  ;;  %v9526_v24 = vpop.eup %7747  ;;  %2813 = vadd.xlane.f32.xlu0 %v2812_v8  ;;  %v2819_v26 = vadd.f32 %v9513_v42, %v2818_v21  ;;  %6855 = vmatpush3.bf16.msra.mxu1 %v7418_v43  ;;  %v1847_v46 = vmul.f32 %v9195_v12, %v11699_v59  ;;  %7767 = vpow2.f32 %v2802_v17  ;;  %v11701_v11 = vld [vmem:[#allocation20_spill] sm:$0xff]  ;;  %v11702_v45 = vld [vmem:[#allocation19_spill] sm:$0xff] }
 0x48a   :  { %11697 = vst [vmem:[#allocation48_spill] sm:$0xff] %v9526_v24  ;;  %v9538_v29 = vpop.eup %7749  ;;  %v2826_v32 = vadd.f32 %v9526_v24, %v2825_v5  ;;  %6828 = vmatprep.subr.bf16.mxu0 %v7419_v25  ;;  %6856 = vmatprep.subr.bf16.mxu1 %v7420_v34  ;;  %v1849_v8 = vmul.f32 %v9195_v12, %v11701_v11  ;;  %v7423_v21 = vld [vmem:[%s11361_s4 + $0x240] sm:$0xff]   ;;  %v11705_v34 = vld [vmem:[#allocation21_spill] sm:$0xff]  ;;  %7769 = vpow2.f32 %v2804_v57 }
 0x48b   :  { %11700 = vst [vmem:[#allocation98_spill] sm:$0xff] %v9538_v29  ;;  %v1864_v43 = vmul.f32 %v9268_v48, %v11702_v45  ;;  %v9548_v41 = vpop.eup %7751  ;;  %v2820_v59 = vadd.f32 %v9538_v29, %v2819_v26  ;;  %v11704_v5 = vld [vmem:[#allocation100_spill] sm:$0xff]  ;;  %v1866_v17 = vmul.f32 %v9268_v48, %v11705_v34  ;;  %v11707_v45 = vld [vmem:[#allocation101_spill] sm:$0xff]  ;;  %v1858_v57 = vmul.f32 %v9263_v18, %v11711_v51 }
 0x48c   :  { %11703 = vst [vmem:[#allocation18_spill] sm:$0xff] %v9548_v41  ;;  %v1839_v25 = vmul.f32 %v9173_v38, %v11704_v5  ;;  %v9556_v12 = vpop.eup %7753  ;;  %v2827_v11 = vadd.f32 %v9548_v41, %v2826_v32  ;;  %6829 = vmatpush3.bf16.msra.mxu0 %v7421_v1  ;;  %v1841_v52 = vmul.f32 %v9173_v38, %v11707_v45  ;;  %v11708_v24 = vld [vmem:[#allocation104_spill] sm:$0xff]  ;;  %v7425_v51 = vld [vmem:[%s11361_s4 + $0x248] sm:$0xff]  }
 0x48d   :  { %11706 = vst [vmem:[#allocation99_spill] sm:$0xff] %v9556_v12  ;;  %v1856_v26 = vmul.f32 %v9263_v18, %v11708_v24  ;;  %v9563_v29 = vpop.eup %7755  ;;  %v9567_v5 = vadd.f32 %v11710_v53, %v9171_v4  ;;  %v2821_v34 = vadd.f32 %v9556_v12, %v2820_v59  ;;  %6857 = vmatpush3.bf16.msra.mxu1 %v7422_v47  ;;  %v7424_v38 = vld [vmem:[%s11361_s4 + $0x200] sm:$0xff]  }
 0x48e   :  { %11709 = vst [vmem:[#allocation22_spill] sm:$0xff] %v9563_v29  ;;  %v1871_v28 = vpack.c.bf16 %v1847_v46, %v1839_v25  ;;  %v9575_v1 = vpop.eup %7757  ;;  %v11713_v24 = vmax.f32 %v9206_v39, %v9189_v20  ;;  %v2828_v45 = vadd.f32 %v9563_v29, %v2827_v11  ;;  %v1873_v53 = vpack.c.bf16 %v1849_v8, %v1841_v52  ;;  %v11715_v46 = vld [vmem:[#allocation62_spill] sm:$0xff]  ;;  %v11717_v8 = vld [vmem:[#allocation37_spill] sm:$0xff] }
 0x48f   :  { %11712 = vst [vmem:[#allocation16_spill] sm:$0xff] %v9575_v1  ;;  %v1880_v59 = vpack.c.bf16 %v1864_v43, %v1856_v26  ;;  %6874 = vmatprep.subr.bf16.mxu1 %v7423_v21  ;;  %v9585_v47 = vpop.eup %7759  ;;  %v9589_v25 = vadd.f32 %v11715_v46, %v9165_v55  ;;  %2822 = vadd.xlane.f32.xlu1 %v2821_v34  ;;  %v11718_v43 = vld [vmem:[#allocation51_spill] sm:$0xff] }
 0x490   :  { %v3702_v32 = vmax.f32 %v11713_v24, %v9530_v10  ;;  %11714 = vst [vmem:[#allocation15_spill] sm:$0xff] %v9585_v47  ;;  %v2835_v41 = vadd.f32 %v9575_v1, %v2834_v16  ;;  %2526 = vmatmul.mubr.bf16.vlgmr.msra.gmra.mrb[76].mxu0 %v1871_v28  ;;  %v1882_v39 = vpack.c.bf16 %v1866_v17, %v1858_v57  ;;  %v9592_v24 = vpop.eup %7761  ;;  %v11720_v17 = vld [vmem:[#allocation24_spill] sm:$0xff] }
 0x491   :  { %11716 = vst [vmem:[#allocation49_spill] sm:$0xff] %v9592_v24  ;;  %v3710_v52 = vmax.f32 %v9487_v0, %v9368_v50  ;;  %v9598_v21 = vadd.f32 %v11718_v43, %v11717_v8  ;;  %v2829_v11 = vadd.f32 %v9585_v47, %v2828_v45  ;;  %2575 = vmatmul.mubr.bf16.vlgmr.msra.gmra.mrb[84].mxu1 %v1873_v53  ;;  %v9601_v55 = vpop.eup %7763  ;;  %v7426_v0 = vld [vmem:[%s11361_s4 + $0x208] sm:$0xff]   ;;  %v11723_v53 = vld [vmem:[#allocation106_spill] sm:$0xff] }
 0x492   :  { %2533 = vmatprep.mubr.bf16.mxu0 %v1880_v59  ;;  %11719 = vst [vmem:[#allocation26_spill] sm:$0xff] %v9601_v55  ;;  %v3694_v16 = vmax.f32 %v9521_v7, %v9498_v58  ;;  %v2836_v28 = vadd.f32 %v9592_v24, %v2835_v41  ;;  %2582 = vmatprep.mubr.bf16.mxu1 %v1882_v39  ;;  %v9611_v34 = vpop.eup %7765  ;;  %v11724_v39 = vld [vmem:[#allocation64_spill] sm:$0xff] }
 0x493   :  { %v1863_v26 = vmul.f32 %v9268_v48, %v11720_v17  ;;  %6875 = vmatpush3.bf16.msra.mxu1 %v7424_v38  ;;  %11721 = vst [vmem:[#allocation28_spill] sm:$0xff] %v9611_v34  ;;  %v3703_v57 = vmax.f32 %v3702_v32, %v9567_v5  ;;  %v2830_v45 = vadd.f32 %v9601_v55, %v2829_v11  ;;  %v7427_v38 = vld [vmem:[%s11361_s4 + $0x250] sm:$0xff]   ;;  %v11725_v11 = vld [vmem:[#allocation103_spill] sm:$0xff]  ;;  %v9632_v17 = vpop.eup %7767 }
 0x494   :  { %v11722_v7 = vmax.f32 %v9467_v23, %v9435_v14  ;;  %v1865_v59 = vmul.f32 %v9268_v48, %v11723_v53  ;;  %6876 = vmatprep.subr.bf16.mxu1 %v7425_v51  ;;  %v3711_v46 = vmax.f32 %v3710_v52, %v9589_v25  ;;  %v9627_v32 = vadd.f32 %v11724_v39, %v9171_v4  ;;  %v11728_v48 = vld [vmem:[#allocation53_spill] sm:$0xff]  ;;  %v11729_v53 = vld [vmem:[#allocation59_spill] sm:$0xff]  ;;  %v9652_v55 = vpop.eup %7769 }
 0x495   :  { %v2837_v43 = vadd.f32 %v9611_v34, %v2836_v28  ;;  %v1855_v23 = vmul.f32 %v9263_v18, %v11725_v11  ;;  %11726 = vst [vmem:[#allocation17_spill] sm:$0xff] %v9632_v17  ;;  %v9640_v24 = vadd.f32 %v11729_v53, %v11717_v8  ;;  %2831 = vadd.xlane.f32.xlu0 %v2830_v45  ;;  %v11730_v52 = vld [vmem:[#allocation105_spill] sm:$0xff]  ;;  %v11731_v39 = vld [vmem:[#allocation55_spill] sm:$0xff]  ;;  %11732 = vst [vmem:[#allocation50_spill] sm:$0xff] %v9652_v55 }
 0x496   :  { %v3686_v41 = vmax.f32 %v11722_v7, %v9598_v21  ;;  %v11727_v7 = vld [vmem:[#allocation41_spill] sm:$0xff]  ;;  %v1857_v4 = vmul.f32 %v9263_v18, %v11730_v52  ;;  %v9646_v28 = vadd.f32 %v11731_v39, %v11717_v8  ;;  %v7429_v18 = vld [vmem:[%s11361_s4 + $0x258] sm:$0xff]  }
 0x497   :  { %v9636_v51 = vadd.f32 %v11728_v48, %v11727_v7  ;;  %v2838_v11 = vadd.f32 %v9632_v17, %v2837_v43  ;;  %v1879_v47 = vpack.c.bf16 %v1863_v26, %v1855_v23  ;;  %6877 = vmatpush3.bf16.msra.mxu1 %v7426_v0  ;;  %v7428_v48 = vld [vmem:[%s11361_s4 + $0x210] sm:$0xff]   ;;  %v3704_v45 = vmax.f32 %v3703_v57, %v9640_v24  ;;  %v11733_v23 = vld [vmem:[#allocation61_spill] sm:$0xff] }
 0x498   :  { %v1881_v12 = vpack.c.bf16 %v1865_v59, %v1857_v4  ;;  %6878 = vmatprep.subr.bf16.mxu1 %v7427_v38  ;;  %v3712_v43 = vmax.f32 %v3711_v46, %v9627_v32  ;;  %v3695_v0 = vmax.f32 %v3694_v16, %v9646_v28  ;;  %v9664_v52 = vadd.f32 %v11733_v23, %v11727_v7  ;;  %v11734_v57 = vld [vmem:[#allocation57_spill] sm:$0xff]  ;;  %v11735_v59 = vld [vmem:[#allocation63_spill] sm:$0xff]  ;;  %v7455_v23 = vld [vmem:[%s11362_s5] sm:$0xff]  }
 0x499   :  { %v3687_v53 = vmax.f32 %v3686_v41, %v9636_v51  ;;  %v2839_v26 = vadd.f32 %v9652_v55, %v2838_v11  ;;  %2534 = vmatmul.mubr.bf16.gmra.mrb[80].mxu0 %v1879_v47  ;;  %v9668_v41 = vadd.f32 %v11734_v57, %v11727_v7  ;;  %v9672_v38 = vadd.f32 %v11735_v59, %v11717_v8  ;;  %v7430_v47 = vld [vmem:[%s11361_s4 + $0x218] sm:$0xff]   ;;  %v11736_v8 = vld [vmem:[#allocation65_spill] sm:$0xff]  ;;  %v7432_v11 = vld [vmem:[%s11361_s4 + $0x220] sm:$0xff]  }
 0x49a   :  { %2583 = vmatmul.mubr.bf16.gmra.mrb[88].mxu1 %v1881_v12  ;;  %v3705_v16 = vmax.f32 %v3704_v45, %v9664_v52  ;;  %v7431_v12 = vld [vmem:[%s11361_s4 + $0x260] sm:$0xff]   ;;  %v9685_v39 = vadd.f32 %v11736_v8, %v11727_v7  ;;  %v7434_v7 = vld [vmem:[%s11361_s4 + $0x228] sm:$0xff]   ;;  %v7435_v45 = vld [vmem:[%s11361_s4 + $0x270] sm:$0xff]   ;;  %7258 = vmatprep.subr.bf16.mxu0 %v7455_v23 }
 0x49b   :  { %3688 = vmax.xlane.f32.xlu0 %v3687_v53  ;;  %2840 = vadd.xlane.f32.xlu1 %v2839_v26  ;;  %v3696_v46 = vmax.f32 %v3695_v0, %v9668_v41  ;;  %v3713_v4 = vmax.f32 %v3712_v43, %v9672_v38  ;;  %v7433_v53 = vld [vmem:[%s11361_s4 + $0x268] sm:$0xff]   ;;  %v7437_v43 = vld [vmem:[%s11361_s4 + $0x278] sm:$0xff]   ;;  %v7439_v0 = vld [vmem:[%s11361_s4 + $0x340] sm:$0xff]  }
 0x49c   :  { %6879 = vmatpush3.bf16.msra.mxu1 %v7428_v48  ;;  %v7438_v26 = vld [vmem:[%s11361_s4 + $0x238] sm:$0xff]   ;;  %7259 = vmatpush3.bf16.msra.mxu0 %v7455_v23  ;;  %v7456_v57 = vld [vmem:[%s11362_s5 + $0x8] sm:$0xff]   ;;  %v7457_v59 = vld [vmem:[%s11361_s4 + $0x2c0] sm:$0xff]  }
 0x49d   :  { %6880 = vmatprep.subr.bf16.mxu1 %v7429_v18  ;;  %v3714_v48 = vmax.f32 %v3713_v4, %v9685_v39  ;;  %v7436_v18 = vld [vmem:[%s11361_s4 + $0x230] sm:$0xff]   ;;  %7260 = vmatprep.subr.bf16.mxu0 %v7456_v57 }
 0x49e   :  { %v11740_v8 = vld [vmem:[#allocation66_spill] sm:$0xff] }
 0x49f   :  { %3706 = vmax.xlane.f32.xlu0 %v3705_v16  ;;  %3697 = vmax.xlane.f32.xlu1 %v3696_v46  ;;  %v11738_v16 = vld [vmem:[#allocation7_spill] sm:$0xff]  ;;  %v11739_v46 = vld [vmem:[#allocation8_spill] sm:$0xff] }
 0x4a0   :  { %6881 = vmatpush3.bf16.msra.mxu1 %v7430_v47  ;;  %7261 = vmatpush3.bf16.msra.mxu0 %v7456_v57  ;;  %v9724_v47 = vld [vmem:[%s11360_s3 + $0x18] sm:$0xff] }
 0x4a1   :  { %6882 = vmatprep.subr.bf16.mxu1 %v7431_v12  ;;  %6902 = vmatprep.subr.bf16.mxu0 %v7457_v59  ;;  %11737 = vst [vmem:[#allocation27_spill] sm:$0xff] %v9724_v47  ;;  %v426_v12 = vrot.slane %v9724_v47, %v11738_v16  ;;  %v430_v4 = vrot.slane %v9724_v47, %v11739_v46  ;;  %v11749_v59 = vld [vmem:[#allocation74_spill] sm:$0xff]  ;;  %v11751_v46 = vld [vmem:[#allocation76_spill] sm:$0xff] }
 0x4a3   :  { %3715 = vmax.xlane.f32.xlu1 %v3714_v48  ;;  %v11742_v48 = vld [vmem:[#allocation68_spill] sm:$0xff]  ;;  %v9747_v16 = vadd.f32 %v11749_v59, %v426_v12 }
 0x4a4   :  { %6883 = vmatpush3.bf16.msra.mxu1 %v7432_v11  ;;  %v9731_v11 = vadd.f32 %v11740_v8, %v426_v12  ;;  %v9750_v8 = vadd.f32 %v11751_v46, %v430_v4 }
 0x4a5   :  { %6884 = vmatprep.subr.bf16.mxu1 %v7433_v53  ;;  %v9734_v53 = vadd.f32 %v11742_v48, %v430_v4  ;;  %11750 = vst [vmem:[#allocation54_spill] sm:$0xff] %v9747_v16  ;;  %v11753_v48 = vld [vmem:[#allocation67_spill] sm:$0xff] }
 0x4a6   :  { %11741 = vst [vmem:[#allocation52_spill] sm:$0xff] %v9731_v11  ;;  %11752 = vst [vmem:[#allocation29_spill] sm:$0xff] %v9750_v8  ;;  %v4706_v46 = vmax.f32 %v9747_v16, %v9750_v8 }
 0x4a7   :  { %11743 = vst [vmem:[#allocation32_spill] sm:$0xff] %v9734_v53 }
 0x4a8   :  { %6885 = vmatpush3.bf16.msra.mxu1 %v7434_v7  ;;  %v11744_v7 = vld [vmem:[#allocation9_spill] sm:$0xff] }
 0x4a9   :  { %6886 = vmatprep.subr.bf16.mxu1 %v7435_v45  ;;  %v434_v45 = vrot.slane %v9724_v47, %v11744_v7  ;;  %v11755_v7 = vld [vmem:[#allocation10_spill] sm:$0xff] }
 0x4aa   :  { %v438_v55 = vrot.slane %v9724_v47, %v11755_v7  ;;  %v11762_v7 = vld [vmem:[#allocation69_spill] sm:$0xff] }
 0x4ab   :  { %v9753_v17 = vadd.f32 %v11753_v48, %v434_v45  ;;  %v11760_v48 = vld [vmem:[#allocation80_spill] sm:$0xff] }
 0x4ac   :  { %6887 = vmatpush3.bf16.msra.mxu1 %v7436_v18  ;;  %v4688_v18 = vmax.f32 %v9731_v11, %v9734_v53  ;;  %v11756_v53 = vld [vmem:[#allocation11_spill] sm:$0xff]  ;;  %v11758_v11 = vld [vmem:[#allocation78_spill] sm:$0xff]  ;;  %v9770_v34 = vadd.f32 %v11760_v48, %v430_v4  ;;  %v9773_v40 = vadd.f32 %v11762_v7, %v438_v55 }
 0x4ad   :  { %6888 = vmatprep.subr.bf16.mxu1 %v7437_v43  ;;  %v11745_v43 = vld [vmem:[#allocation70_spill] sm:$0xff]  ;;  %11754 = vst [vmem:[#allocation56_spill] sm:$0xff] %v9753_v17  ;;  %v9767_v1 = vadd.f32 %v11758_v11, %v426_v12 }
 0x4ae   :  { %11761 = vst [vmem:[#allocation58_spill] sm:$0xff] %v9770_v34  ;;  %11763 = vst [vmem:[#allocation102_spill] sm:$0xff] %v9773_v40 }
 0x4af   :  { %11759 = vst [vmem:[#allocation44_spill] sm:$0xff] %v9767_v1 }
 0x4b0   :  { %6889 = vmatpush3.bf16.msra.mxu1 %v7438_v26  ;;  %v9741_v26 = vadd.f32 %v11745_v43, %v426_v12  ;;  %v9759_v43 = vrot.slane %v9724_v47, %v11756_v53  ;;  %v11764_v53 = vld [vmem:[#allocation71_spill] sm:$0xff] }
 0x4b1   :  { %6930 = vmatprep.subr.bf16.mxu1 %v7439_v0  ;;  %v11747_v0 = vld [vmem:[#allocation72_spill] sm:$0xff]  ;;  %v9776_v29 = vadd.f32 %v11764_v53, %v434_v45  ;;  %v11770_v12 = vld [vmem:[#allocation75_spill] sm:$0xff]  ;;  %v4715_v53 = vmax.f32 %v9767_v1, %v9770_v34 }
 0x4b2   :  { %11746 = vst [vmem:[#allocation23_spill] sm:$0xff] %v9741_v26  ;;  %v9744_v23 = vadd.f32 %v11747_v0, %v430_v4  ;;  %11757 = vst [vmem:[#allocation39_spill] sm:$0xff] %v9759_v43  ;;  %v4689_v0 = vmax.f32 %v4688_v18, %v9753_v17  ;;  %v11766_v18 = vld [vmem:[#allocation82_spill] sm:$0xff]  ;;  %v9787_v11 = vadd.f32 %v11770_v12, %v434_v45  ;;  %v11775_v12 = vld [vmem:[#allocation84_spill] sm:$0xff] }
 0x4b3   :  { %11765 = vst [vmem:[#allocation20_spill] sm:$0xff] %v9776_v29 }
 0x4b4   :  { %11748 = vst [vmem:[#allocation42_spill] sm:$0xff] %v9744_v23  ;;  %v4697_v59 = vmax.f32 %v9741_v26, %v9744_v23  ;;  %v11768_v23 = vld [vmem:[#allocation12_spill] sm:$0xff]  ;;  %11771 = vst [vmem:[#allocation21_spill] sm:$0xff] %v9787_v11  ;;  %v4690_v4 = vmax.f32 %v4689_v0, %v9773_v40  ;;  %v9792_v7 = vmax.f32 %v4706_v46, %v9787_v11  ;;  %v11780_v11 = vld [vmem:[#allocation79_spill] sm:$0xff] }
 0x4b5   :  { %v9784_v26 = vrot.slane %v9724_v47, %v11768_v23  ;;  %v9814_v40 = vadd.f32 %v11780_v11, %v434_v45 }
 0x4b6   :  { %v4698_v48 = vmax.f32 %v4697_v59, %v9776_v29  ;;  %v11779_v59 = vld [vmem:[#allocation77_spill] sm:$0xff] }
 0x4b7   :  { %11769 = vst [vmem:[#allocation100_spill] sm:$0xff] %v9784_v26  ;;  %v9804_v17 = vadd.f32 %v11775_v12, %v9784_v26  ;;  %v9811_v46 = vadd.f32 %v11779_v59, %v438_v55  ;;  %11781 = vst [vmem:[#allocation62_spill] sm:$0xff] %v9814_v40  ;;  %v9823_v29 = vmax.f32 %v4715_v53, %v9814_v40  ;;  %v11792_v53 = vld [vmem:[#allocation92_spill] sm:$0xff]  ;;  %v11794_v40 = vld [vmem:[#allocation25_spill] sm:$0xff] }
 0x4b9   :  { %11776 = vst [vmem:[#allocation60_spill] sm:$0xff] %v9804_v17  ;;  %11784 = vst [vmem:[#allocation51_spill] sm:$0xff] %v9823_v29 }
 0x516   :  { %v2814_v57 = vpop.xlane.xlu0 %2813 }
 0x517   :  { %7771 = vrcp.f32 %v2814_v57  ;;  %v9780_v57 = vadd.f32 %v11766_v18, %v9759_v43  ;;  %v11772_v18 = vld [vmem:[#allocation73_spill] sm:$0xff] }
 0x518   :  { %v9797_v16 = vadd.f32 %v11772_v18, %v438_v55 }
 0x519   :  { %11767 = vst [vmem:[#allocation19_spill] sm:$0xff] %v9780_v57  ;;  %v9800_v23 = vmax.f32 %v4690_v4, %v9780_v57  ;;  %v11782_v57 = vld [vmem:[#allocation81_spill] sm:$0xff]  ;;  %v9844_v4 = vadd.f32 %v11792_v53, %v9784_v26 }
 0x51a   :  { %11773 = vst [vmem:[#allocation101_spill] sm:$0xff] %v9797_v16  ;;  %v4699_v1 = vmax.f32 %v4698_v48, %v9797_v16  ;;  %v9820_v12 = vadd.f32 %v11782_v57, %v438_v55  ;;  %v11788_v48 = vld [vmem:[#allocation88_spill] sm:$0xff]  ;;  %v11790_v55 = vld [vmem:[#allocation90_spill] sm:$0xff] }
 0x51b   :  { %11774 = vst [vmem:[#allocation104_spill] sm:$0xff] %v9800_v23  ;;  %v9836_v16 = vadd.f32 %v11788_v48, %v9784_v26  ;;  %v9840_v57 = vadd.f32 %v11790_v55, %v9759_v43  ;;  %11793 = vst [vmem:[#allocation41_spill] sm:$0xff] %v9844_v4  ;;  %v11796_v55 = vld [vmem:[#allocation36_spill] sm:$0xff] }
 0x51c   :  { %v2823_v8 = vpop.xlane.xlu1 %2822  ;;  %11783 = vst [vmem:[#allocation37_spill] sm:$0xff] %v9820_v12 }
 0x51d   :  { %7773 = vrcp.f32 %v2823_v8  ;;  %v11777_v8 = vld [vmem:[#allocation86_spill] sm:$0xff]  ;;  %11789 = vst [vmem:[#allocation64_spill] sm:$0xff] %v9836_v16  ;;  %11791 = vst [vmem:[#allocation103_spill] sm:$0xff] %v9840_v57 }
 0x51e   :  { %v9808_v0 = vadd.f32 %v11777_v8, %v9759_v43  ;;  %v11785_v8 = vld [vmem:[#allocation13_spill] sm:$0xff] }
 0x51f   :  { %v9827_v59 = vrot.slane %v9724_v47, %v11785_v8 }
 0x520   :  { %11778 = vst [vmem:[#allocation30_spill] sm:$0xff] %v9808_v0  ;;  %v9832_v11 = vmax.f32 %v4699_v1, %v9808_v0 }
 0x521   :  { %v7772_v18 = vpop.eup %7771  ;;  %11786 = vst [vmem:[#allocation24_spill] sm:$0xff] %v9827_v59 }
 0x522   :  { %v2832_v34 = vpop.xlane.xlu0 %2831  ;;  %11787 = vst [vmem:[#allocation106_spill] sm:$0xff] %v9832_v11  ;;  %v2847_v45 = vmul.f32 %v7772_v18, %v9313_v30  ;;  %v2846_v1 = vmul.f32 %v7772_v18, %v9306_v15  ;;  %v11795_v11 = vld [vmem:[#allocation31_spill] sm:$0xff]  ;;  %v9857_v53 = vmul.f32 %v7772_v18, %v9452_v60  ;;  %v9862_v30 = vmul.f32 %v7772_v18, %v9431_v33 }
 0x523   :  { %7775 = vrcp.f32 %v2832_v34  ;;  %v9865_v15 = vmul.f32 %v7772_v18, %v9405_v31 }
 0x527   :  { %v9859_v34 = vpop.eup %7773 }
 0x528   :  { %v9846_v8 = vpop.xlane.xlu0 %3688  ;;  %v2841_v0 = vpop.xlane.xlu1 %2840  ;;  %v2855_v33 = vmul.f32 %v9859_v34, %v9364_v62  ;;  %v11799_v62 = vld [vmem:[#allocation33_spill] sm:$0xff] }
 0x529   :  { %v3717_v48 = vsub.f32 %v11794_v40, %v9846_v8  ;;  %v3718_v16 = vsub.f32 %v11795_v11, %v9846_v8  ;;  %v3719_v17 = vsub.f32 %v11796_v55, %v9846_v8  ;;  %7777 = vrcp.f32 %v2841_v0  ;;  %v11798_v0 = vld [vmem:[#allocation35_spill] sm:$0xff] }
 0x52a   :  { %v9868_v40 = vmul.f32 %v7772_v18, %v9339_v27  ;;  %v9871_v55 = vmul.f32 %v7772_v18, %v9481_v54  ;;  %v3720_v60 = vsub.f32 %v11687_v36, %v9846_v8  ;;  %v3721_v31 = vsub.f32 %v9427_v35, %v9846_v8  ;;  %v11797_v54 = vld [vmem:[#allocation40_spill] sm:$0xff]  ;;  %v11800_v35 = vld [vmem:[#allocation34_spill] sm:$0xff] }
 0x52b   :  { %v3749_v26 = vmul.f32 1.442695, %v3717_v48  ;;  %v3751_v11 = vmul.f32 1.442695, %v3718_v16  ;;  %v3753_v23 = vmul.f32 1.442695, %v3719_v17  ;;  %v9882_v27 = vmul.f32 %v7772_v18, %v9461_v37 }
 0x52c   :  { %v9875_v4 = vpop.xlane.xlu0 %3706  ;;  %v9884_v16 = vpop.xlane.xlu1 %3697  ;;  %v2879_v59 = vpack.c.bf16 %v2855_v33, %v2847_v45 }
 0x52d   :  { %7779 = vpow2.f32 %v3749_v26  ;;  %v3733_v17 = vsub.f32 %v11797_v54, %v9875_v4  ;;  %v3734_v36 = vsub.f32 %v11798_v0, %v9875_v4  ;;  %v3735_v48 = vsub.f32 %v9180_v6, %v9875_v4  ;;  %v11801_v26 = vld [vmem:[#allocation38_spill] sm:$0xff] }
 0x52e   :  { %7781 = vpow2.f32 %v3751_v11  ;;  %v3725_v29 = vsub.f32 %v11799_v62, %v9884_v16  ;;  %v3726_v37 = vsub.f32 %v11800_v35, %v9884_v16  ;;  %v3727_v18 = vsub.f32 %v11801_v26, %v9884_v16  ;;  %3439 = vmatprep.mubr.bf16.mxu1 %v2879_v59 }
 0x52f   :  { %7783 = vpow2.f32 %v3753_v23  ;;  %v3781_v12 = vmul.f32 1.442695, %v3733_v17  ;;  %v2854_v54 = vmul.f32 %v9859_v34, %v9356_v2  ;;  %v3722_v0 = vsub.f32 %v9435_v14, %v9846_v8  ;;  %v9908_v17 = vpop.eup %7775 }
 0x530   :  { %v3765_v47 = vmul.f32 1.442695, %v3725_v29  ;;  %v3767_v6 = vmul.f32 1.442695, %v3726_v37  ;;  %v3769_v11 = vmul.f32 1.442695, %v3727_v18  ;;  %v3728_v62 = vsub.f32 %v11695_v56, %v9884_v16  ;;  %v9904_v43 = vpop.xlane.xlu1 %3715 }
 0x531   :  { %7785 = vpow2.f32 %v3781_v12  ;;  %v3783_v35 = vmul.f32 1.442695, %v3734_v36  ;;  %v3723_v23 = vsub.f32 %v9598_v21, %v9846_v8  ;;  %v3785_v2 = vmul.f32 1.442695, %v3735_v48  ;;  %v7440_v56 = vld [vmem:[%s11361_s4 + $0x300] sm:$0xff]   ;;  %v7442_v48 = vld [vmem:[%s11361_s4 + $0x308] sm:$0xff]  }
 0x532   :  { %7787 = vpow2.f32 %v3765_v47  ;;  %v3741_v14 = vsub.f32 %v9198_v49, %v9904_v43  ;;  %v3742_v29 = vsub.f32 %v9209_v9, %v9904_v43  ;;  %v3755_v12 = vmul.f32 1.442695, %v3720_v60  ;;  %v7441_v47 = vld [vmem:[%s11361_s4 + $0x348] sm:$0xff]  }
 0x533   :  { %7789 = vpow2.f32 %v3767_v6  ;;  %v3743_v21 = vsub.f32 %v9201_v44, %v9904_v43  ;;  %v2878_v45 = vpack.c.bf16 %v2854_v54, %v2846_v1  ;;  %v9922_v33 = vpop.eup %7777  ;;  %v3736_v49 = vsub.f32 %v9189_v20, %v9875_v4 }
 0x534   :  { %7791 = vpow2.f32 %v3769_v11  ;;  %v3797_v9 = vmul.f32 1.442695, %v3741_v14  ;;  %v3799_v59 = vmul.f32 1.442695, %v3742_v29  ;;  %v2863_v60 = vmul.f32 %v9908_v17, %v9390_v19  ;;  %v7445_v29 = vld [vmem:[%s11361_s4 + $0x358] sm:$0xff]  }
 0x535   :  { %7793 = vpow2.f32 %v3783_v35  ;;  %v3801_v36 = vmul.f32 1.442695, %v3743_v21  ;;  %3440 = vmatmul.mubr.bf16.vlgmr.msra.gmra.mrb[92].mxu1 %v2878_v45  ;;  %v2871_v44 = vmul.f32 %v9922_v33, %v9442_v61  ;;  %v3771_v1 = vmul.f32 1.442695, %v3728_v62  ;;  %v7443_v61 = vld [vmem:[%s11361_s4 + $0x350] sm:$0xff]  }
 0x536   :  { %7795 = vpow2.f32 %v3785_v2  ;;  %6931 = vmatpush3.bf16.msra.mxu1 %v7440_v56  ;;  %v2859_v20 = vmul.f32 %v9859_v34, %v9513_v42  ;;  %v3724_v37 = vsub.f32 %v9636_v51, %v9846_v8  ;;  %v2870_v18 = vmul.f32 %v9922_v33, %v9423_v3 }
 0x537   :  { %v9937_v26 = vpop.eup %7779  ;;  %7797 = vpow2.f32 %v3797_v9  ;;  %v2887_v19 = vpack.c.bf16 %v2871_v44, %v2863_v60  ;;  %6932 = vmatprep.subr.bf16.mxu1 %v7441_v47  ;;  %v3757_v54 = vmul.f32 1.442695, %v3721_v31  ;;  %v9946_v11 = vmul.f32 1.442695, %v3736_v49  ;;  %v7444_v31 = vld [vmem:[%s11361_s4 + $0x310] sm:$0xff]   ;;  %v7446_v47 = vld [vmem:[%s11361_s4 + $0x318] sm:$0xff]  }
 0x538   :  { %v9944_v6 = vpop.eup %7781  ;;  %7799 = vpow2.f32 %v3799_v59  ;;  %v2862_v42 = vmul.f32 %v9908_v17, %v9348_v63  ;;  %v3759_v51 = vmul.f32 1.442695, %v3722_v0  ;;  %v3761_v62 = vmul.f32 1.442695, %v3723_v23 }
 0x539   :  { %v9950_v8 = vpop.eup %7783  ;;  %7801 = vpow2.f32 %v3801_v36  ;;  %3447 = vmatprep.mubr.bf16.mxu1 %v2887_v19  ;;  %v3729_v35 = vsub.f32 %v9474_v22, %v9884_v16  ;;  %v3730_v3 = vsub.f32 %v9498_v58, %v9884_v16  ;;  %v3763_v2 = vmul.f32 1.442695, %v3724_v37  ;;  %v7447_v36 = vld [vmem:[%s11361_s4 + $0x360] sm:$0xff]  }
 0x53a   :  { %6933 = vmatpush3.bf16.msra.mxu1 %v7442_v48  ;;  %7803 = vpow2.f32 %v3755_v12  ;;  %v3731_v63 = vsub.f32 %v9646_v28, %v9884_v16  ;;  %v3732_v0 = vsub.f32 %v9668_v41, %v9884_v16  ;;  %v3744_v22 = vsub.f32 %v9368_v50, %v9904_v43 }
 0x53b   :  { %v9963_v23 = vpop.eup %7785  ;;  %6934 = vmatprep.subr.bf16.mxu1 %v7443_v61  ;;  %v2886_v58 = vpack.c.bf16 %v2870_v18, %v2862_v42  ;;  %v2883_v14 = vpack.c.bf16 %v2859_v20, %v9857_v53  ;;  %7805 = vpow2.f32 %v3757_v54  ;;  %v3813_v28 = vadd.f32 %v9944_v6, %v9937_v26  ;;  %v7448_v20 = vld [vmem:[%s11361_s4 + $0x320] sm:$0xff]   ;;  %v7449_v42 = vld [vmem:[%s11361_s4 + $0x368] sm:$0xff]  }
 0x53c   :  { %11802 = vst [vmem:[#allocation53_spill] sm:$0xff] %v9963_v23  ;;  %v9971_v56 = vpop.eup %7787  ;;  %7807 = vpow2.f32 %v3759_v51  ;;  %v3773_v41 = vmul.f32 1.442695, %v3729_v35  ;;  %v3737_v16 = vsub.f32 %v9530_v10, %v9875_v4  ;;  %v3775_v53 = vmul.f32 1.442695, %v3730_v3 }
 0x53d   :  { %v9977_v50 = vpop.eup %7789  ;;  %3448 = vmatmul.mubr.bf16.gmra.mrb[96].mxu1 %v2886_v58  ;;  %7809 = vpow2.f32 %v3761_v62  ;;  %v3777_v12 = vmul.f32 1.442695, %v3731_v63  ;;  %v3779_v21 = vmul.f32 1.442695, %v3732_v0  ;;  %v3738_v49 = vsub.f32 %v9567_v5, %v9875_v4 }
 0x53e   :  { %v9979_v45 = vpop.eup %7791  ;;  %6935 = vmatpush3.bf16.msra.mxu1 %v7444_v31  ;;  %3537 = vmatprep.mubr.bf16.mxu1 %v2883_v14  ;;  %7811 = vpow2.f32 %v3763_v2  ;;  %v3739_v10 = vsub.f32 %v9640_v24, %v9875_v4  ;;  %v3740_v9 = vsub.f32 %v9664_v52, %v9875_v4  ;;  %v3822_v60 = vadd.f32 %v9977_v50, %v9971_v56  ;;  %v7450_v14 = vld [vmem:[%s11361_s4 + $0x328] sm:$0xff]  }
 0x53f   :  { %11803 = vst [vmem:[#allocation59_spill] sm:$0xff] %v9979_v45  ;;  %v9990_v59 = vpop.eup %7793  ;;  %6936 = vmatprep.subr.bf16.mxu1 %v7445_v29  ;;  %7813 = vpow2.f32 %v3771_v1  ;;  %v3745_v5 = vsub.f32 %v9589_v25, %v9904_v43  ;;  %v3746_v24 = vsub.f32 %v9627_v32, %v9904_v43  ;;  %v3803_v52 = vmul.f32 1.442695, %v3744_v22 }
 0x540   :  { %v10001_v44 = vpop.eup %7795  ;;  %7815 = vpow2.f32 %v3773_v41  ;;  %v3831_v4 = vadd.f32 %v9990_v59, %v9963_v23  ;;  %v3747_v48 = vsub.f32 %v9672_v38, %v9904_v43  ;;  %v3814_v25 = vadd.f32 %v9950_v8, %v3813_v28  ;;  %v11807_v28 = vld [vmem:[#allocation22_spill] sm:$0xff] }
 0x541   :  { %11804 = vst [vmem:[#allocation105_spill] sm:$0xff] %v10001_v44  ;;  %v10007_v1 = vpop.eup %7797  ;;  %7817 = vpow2.f32 %v3775_v53  ;;  %v3789_v32 = vmul.f32 1.442695, %v3737_v16  ;;  %v3748_v37 = vsub.f32 %v9685_v39, %v9904_v43  ;;  %v3791_v61 = vmul.f32 1.442695, %v3738_v49  ;;  %v11808_v16 = vld [vmem:[#allocation46_spill] sm:$0xff] }
 0x542   :  { %v10015_v19 = vpop.eup %7799  ;;  %6937 = vmatpush3.bf16.msra.mxu1 %v7446_v47  ;;  %7819 = vpow2.f32 %v3777_v12  ;;  %v3793_v18 = vmul.f32 1.442695, %v3739_v10  ;;  %v3795_v38 = vmul.f32 1.442695, %v3740_v9  ;;  %v3823_v51 = vadd.f32 %v9979_v45, %v3822_v60  ;;  %v6774_v58 = vpop.f32.mrb[68].mxu0  ;;  %v11809_v12 = vld [vmem:[#allocation43_spill] sm:$0xff] }
 0x543   :  { %v10017_v54 = vpop.eup %7801  ;;  %6938 = vmatprep.subr.bf16.mxu1 %v7447_v36  ;;  %7821 = vpow2.f32 %v3779_v21  ;;  %v3805_v62 = vmul.f32 1.442695, %v3745_v5  ;;  %v3807_v35 = vmul.f32 1.442695, %v3746_v24  ;;  %v10027_v43 = vadd.f32 %v10001_v44, %v3831_v4  ;;  %v6775_v29 = vpop.f32.mrb[69].mxu0  ;;  %v7451_v10 = vld [vmem:[%s11361_s4 + $0x370] sm:$0xff]  }
 0x544   :  { %11805 = vst [vmem:[#allocation55_spill] sm:$0xff] %v10017_v54  ;;  %v10023_v39 = vpop.eup %7803  ;;  %7823 = vpow2.f32 %v9946_v11  ;;  %v3809_v3 = vmul.f32 1.442695, %v3747_v48  ;;  %v10031_v31 = vmul.f32 %v9859_v34, %v9494_v13  ;;  %v10036_v0 = vmul.f32 1.442695, %v3748_v37  ;;  %v6802_v13 = vpop.f32.mrb[76].mxu1 }
 0x545   :  { %v10033_v2 = vpop.eup %7805  ;;  %v3815_v63 = vadd.f32 %v10023_v39, %v3814_v25  ;;  %7825 = vpow2.f32 %v3789_v32  ;;  %v3840_v22 = vadd.f32 %v10015_v19, %v10007_v1  ;;  %v10047_v41 = vmul.f32 %v9908_v17, %v11807_v28  ;;  %v6803_v36 = vpop.f32.mrb[77].mxu1  ;;  %v11810_v5 = vld [vmem:[#allocation28_spill] sm:$0xff]  ;;  %v11856_v23 = vld [vmem:[#allocation18_spill] sm:$0xff] }
 0x546   :  { %11806 = vst [vmem:[#allocation61_spill] sm:$0xff] %v10033_v2  ;;  %v10040_v11 = vpop.eup %7807  ;;  %6939 = vmatpush3.bf16.msra.mxu1 %v7448_v20  ;;  %7827 = vpow2.f32 %v3791_v61  ;;  %v10051_v53 = vmul.f32 %v9859_v34, %v11808_v16  ;;  %v10055_v21 = vmul.f32 %v9859_v34, %v11809_v12  ;;  %v6776_v9 = vadd.f32 %v6775_v29, %v6774_v58  ;;  %v6777_v60 = vpop.f32.mrb[70].mxu0  ;;  %v7452_v29 = vld [vmem:[%s11361_s4 + $0x330] sm:$0xff]  }
 0x547   :  { %v10057_v47 = vpop.eup %7809  ;;  %v3816_v49 = vadd.f32 %v10033_v2, %v3815_v63  ;;  %6940 = vmatprep.subr.bf16.mxu1 %v7449_v42  ;;  %7829 = vpow2.f32 %v3793_v18  ;;  %v10065_v24 = vmul.f32 %v9922_v33, %v11810_v5  ;;  %v6804_v48 = vadd.f32 %v6803_v36, %v6802_v13  ;;  %v6805_v20 = vpop.f32.mrb[78].mxu1  ;;  %v11817_v5 = vld [vmem:[#allocation47_spill] sm:$0xff] }
 0x548   :  { %v10067_v4 = vpop.eup %7811  ;;  %7831 = vpow2.f32 %v3795_v38  ;;  %v6778_v25 = vpop.f32.mrb[71].mxu0  ;;  %v10077_v42 = vadd.f32 %v10017_v54, %v3840_v22  ;;  %v7453_v22 = vld [vmem:[%s11361_s4 + $0x378] sm:$0xff]  }
 0x549   :  { %v10073_v61 = vpop.eup %7813  ;;  %v3817_v18 = vadd.f32 %v10040_v11, %v3816_v49  ;;  %7833 = vpow2.f32 %v3803_v52  ;;  %v6779_v63 = vadd.f32 %v6778_v25, %v6777_v60  ;;  %v6806_v58 = vpop.f32.mrb[79].mxu1  ;;  %v10085_v28 = vadd.f32 %v6804_v48, %v6776_v9  ;;  %v11814_v49 = vld [vmem:[#allocation16_spill] sm:$0xff] }
 0x54a   :  { %11811 = vst [vmem:[#allocation57_spill] sm:$0xff] %v10073_v61  ;;  %v10079_v38 = vpop.eup %7815  ;;  %6941 = vmatpush3.bf16.msra.mxu1 %v7450_v14  ;;  %v3824_v13 = vadd.f32 %v10073_v61, %v3823_v51  ;;  %7835 = vpow2.f32 %v3805_v62  ;;  %v6807_v16 = vadd.f32 %v6806_v58, %v6805_v20  ;;  %v11813_v14 = vld [vmem:[#allocation48_spill] sm:$0xff]  ;;  %v10099_v62 = vmul.f32 %v9922_v33, %v11814_v49  ;;  %v7454_v49 = vld [vmem:[%s11361_s4 + $0x338] sm:$0xff]  }
 0x54b   :  { %11812 = vst [vmem:[#allocation63_spill] sm:$0xff] %v10079_v38  ;;  %v10087_v12 = vpop.eup %7817  ;;  %v3818_v52 = vadd.f32 %v10057_v47, %v3817_v18  ;;  %6942 = vmatprep.subr.bf16.mxu1 %v7451_v10  ;;  %7837 = vpow2.f32 %v3807_v35  ;;  %v10095_v51 = vmul.f32 %v9908_v17, %v11813_v14  ;;  %v11816_v10 = vld [vmem:[#allocation45_spill] sm:$0xff]  ;;  %v10112_v48 = vmul.f32 %v9922_v33, %v11817_v5  ;;  %v6780_v18 = vpop.f32.mrb[72].mxu0  ;;  %v11821_v5 = vld [vmem:[#allocation98_spill] sm:$0xff]  ;;  %v11827_v61 = vld [vmem:[#allocation15_spill] sm:$0xff] }
 0x54c   :  { %v10101_v9 = vpop.eup %7819  ;;  %v3825_v36 = vadd.f32 %v10079_v38, %v3824_v13  ;;  %v10104_v60 = vadd.f32 %v6807_v16, %v6779_v63  ;;  %v10108_v35 = vmul.f32 %v9908_v17, %v11816_v10  ;;  %7839 = vpow2.f32 %v3809_v3  ;;  %v11819_v13 = vld [vmem:[#allocation99_spill] sm:$0xff]  ;;  %v6808_v10 = vpop.f32.mrb[80].mxu1 }
 0x54d   :  { %11815 = vst [vmem:[#allocation65_spill] sm:$0xff] %v10101_v9  ;;  %v10114_v20 = vpop.eup %7821  ;;  %v3819_v25 = vadd.f32 %v10067_v4, %v3818_v52  ;;  %v10121_v63 = vmul.f32 %v9859_v34, %v11819_v13  ;;  %v6781_v52 = vpop.f32.mrb[73].mxu0  ;;  %v10133_v58 = vmul.f32 %v9859_v34, %v11821_v5  ;;  %v11822_v13 = vld [vmem:[#allocation26_spill] sm:$0xff]  ;;  %7841 = vpow2.f32 %v10036_v0  ;;  %v7489_v5 = vld [vmem:[%s11361_s4 + $0x440] sm:$0xff]  }
 0x54e   :  { %11818 = vst [vmem:[#allocation7_spill] sm:$0xff] %v10114_v20  ;;  %v10123_v16 = vpop.eup %7823  ;;  %v3826_v14 = vadd.f32 %v10087_v12, %v3825_v36  ;;  %6943 = vmatpush3.bf16.msra.mxu1 %v7452_v29  ;;  %v10137_v37 = vmul.f32 %v9908_v17, %v11822_v13  ;;  %v6782_v36 = vadd.f32 %v6781_v52, %v6780_v18  ;;  %v6809_v2 = vpop.f32.mrb[81].mxu1 }
 0x54f   :  { %11820 = vst [vmem:[#allocation8_spill] sm:$0xff] %v10123_v16  ;;  %v10139_v32 = vpop.eup %7825  ;;  %3820 = vadd.xlane.f32.xlu0 %v3819_v25  ;;  %v3833_v29 = vadd.f32 %v10123_v16, %v10027_v43  ;;  %6944 = vmatprep.subr.bf16.mxu1 %v7453_v22  ;;  %v6783_v3 = vpop.f32.mrb[74].mxu0  ;;  %v6810_v54 = vadd.f32 %v6809_v2, %v6808_v10  ;;  %v11825_v22 = vld [vmem:[#allocation50_spill] sm:$0xff]  ;;  %v11828_v2 = vld [vmem:[#allocation17_spill] sm:$0xff] }
 0x550   :  { %11823 = vst [vmem:[#allocation66_spill] sm:$0xff] %v10139_v32  ;;  %v10149_v13 = vpop.eup %7827  ;;  %v3827_v25 = vadd.f32 %v10101_v9, %v3826_v14  ;;  %v6811_v44 = vpop.f32.mrb[82].mxu1  ;;  %v10156_v18 = vmul.f32 %v9922_v33, %v11825_v22  ;;  %v10163_v38 = vmul.f32 %v9908_v17, %v11827_v61  ;;  %v10167_v14 = vmul.f32 %v9922_v33, %v11828_v2  ;;  %v7490_v61 = vld [vmem:[%s11361_s4 + $0x400] sm:$0xff]  }
 0x551   :  { %11824 = vst [vmem:[#allocation68_spill] sm:$0xff] %v10149_v13  ;;  %v6784_v43 = vpop.f32.mrb[75].mxu0  ;;  %v10158_v52 = vpop.eup %7829  ;;  %v3834_v34 = vadd.f32 %v10139_v32, %v3833_v29  ;;  %v10172_v22 = vadd.f32 %v6810_v54, %v6782_v36  ;;  %v2882_v54 = vpack.c.bf16 %v10031_v31, %v9862_v30  ;;  %v11833_v36 = vld [vmem:[#allocation39_spill] sm:$0xff]  ;;  %v2891_v30 = vpack.c.bf16 %v10065_v24, %v10047_v41  ;;  %v7492_v41 = vld [vmem:[%s11361_s4 + $0x408] sm:$0xff]  }
 0x552   :  { %11826 = vst [vmem:[#allocation9_spill] sm:$0xff] %v10158_v52  ;;  %v6785_v16 = vadd.f32 %v6784_v43, %v6783_v3  ;;  %v6812_v45 = vpop.f32.mrb[83].mxu1  ;;  %v10169_v10 = vpop.eup %7831  ;;  %v3828_v0 = vadd.f32 %v10114_v20, %v3827_v25  ;;  %6945 = vmatpush3.bf16.msra.mxu1 %v7454_v49  ;;  %v11831_v43 = vmax.f32 %v9792_v7, %v9811_v46  ;;  %v11834_v3 = vld [vmem:[#allocation94_spill] sm:$0xff]  ;;  %v11840_v20 = vld [vmem:[#allocation27_spill] sm:$0xff] }
 0x553   :  { %11829 = vst [vmem:[#allocation70_spill] sm:$0xff] %v10169_v10  ;;  %v6813_v9 = vadd.f32 %v6812_v45, %v6811_v44  ;;  %v10179_v29 = vpop.eup %7833  ;;  %v3835_v25 = vadd.f32 %v10149_v13, %v3834_v34  ;;  %6990 = vmatprep.subr.bf16.mxu1 %v7489_v5  ;;  %v7491_v45 = vld [vmem:[%s11361_s4 + $0x448] sm:$0xff]   ;;  %v10197_v32 = vadd.f32 %v11834_v3, %v11833_v36  ;;  %v11837_v5 = vld [vmem:[#allocation24_spill] sm:$0xff]  ;;  %v11839_v13 = vld [vmem:[#allocation14_spill] sm:$0xff] }
 0x554   :  { %11830 = vst [vmem:[#allocation72_spill] sm:$0xff] %v10179_v29  ;;  %v4709_v2 = vmax.f32 %v11831_v43, %v9840_v57  ;;  %v10193_v49 = vpop.eup %7835  ;;  %3829 = vadd.xlane.f32.xlu1 %v3828_v0  ;;  %v3842_v7 = vadd.f32 %v10179_v29, %v10077_v42  ;;  %v11838_v43 = vld [vmem:[#allocation83_spill] sm:$0xff]  ;;  %v454_v57 = vrot.slane %v11840_v20, %v11839_v13  ;;  %v11841_v0 = vld [vmem:[#allocation37_spill] sm:$0xff]  ;;  %v11845_v13 = vld [vmem:[#allocation104_spill] sm:$0xff] }
 0x555   :  { %11832 = vst [vmem:[#allocation74_spill] sm:$0xff] %v10193_v49  ;;  %11835 = vst [vmem:[#allocation76_spill] sm:$0xff] %v10197_v32  ;;  %v10203_v31 = vadd.f32 %v6813_v9, %v6785_v16  ;;  %v10205_v34 = vpop.eup %7837  ;;  %v10209_v44 = vadd.f32 %v11838_v43, %v11837_v5  ;;  %v3836_v3 = vadd.f32 %v10158_v52, %v3835_v25  ;;  %3538 = vmatmul.mubr.bf16.vlgmr.msra.gmra.mrb[100].mxu1 %v2882_v54  ;;  %v11842_v36 = vld [vmem:[#allocation51_spill] sm:$0xff]  ;;  %v11844_v9 = vld [vmem:[#allocation41_spill] sm:$0xff] }
 0x556   :  { %11836 = vst [vmem:[#allocation67_spill] sm:$0xff] %v10205_v34  ;;  %v4717_v42 = vmax.f32 %v11842_v36, %v11841_v0  ;;  %v3843_v29 = vadd.f32 %v10193_v49, %v3842_v7  ;;  %3545 = vmatprep.mubr.bf16.mxu1 %v2891_v30  ;;  %6991 = vmatpush3.bf16.msra.mxu1 %v7490_v61  ;;  %v10220_v24 = vpop.eup %7839  ;;  %v11846_v25 = vld [vmem:[#allocation60_spill] sm:$0xff]  ;;  %v11848_v36 = vld [vmem:[#allocation49_spill] sm:$0xff]  ;;  %v7493_v61 = vld [vmem:[%s11361_s4 + $0x450] sm:$0xff]  }
 0x557   :  { %11843 = vst [vmem:[#allocation10_spill] sm:$0xff] %v10220_v24  ;;  %v4710_v16 = vmax.f32 %v4709_v2, %v11844_v9  ;;  %v3837_v20 = vadd.f32 %v10169_v10, %v3836_v3  ;;  %v11847_v54 = vmax.f32 %v11845_v13, %v11846_v25  ;;  %v2874_v7 = vmul.f32 %v9922_v33, %v11848_v36  ;;  %v11849_v30 = vld [vmem:[#allocation64_spill] sm:$0xff]  ;;  %v11850_v49 = vld [vmem:[#allocation106_spill] sm:$0xff]  ;;  %v11854_v0 = vld [vmem:[#allocation85_spill] sm:$0xff] }
 0x558   :  { %6992 = vmatprep.subr.bf16.mxu1 %v7491_v45  ;;  %v4701_v52 = vmax.f32 %v11850_v49, %v11849_v30  ;;  %v4718_v2 = vmax.f32 %v4717_v42, %v10197_v32  ;;  %v11851_v9 = vld [vmem:[#allocation100_spill] sm:$0xff]  ;;  %v3844_v13 = vadd.f32 %v10205_v34, %v3843_v29  ;;  %v10244_v33 = vadd.f32 %v11854_v0, %v454_v57  ;;  %v11855_v45 = vld [vmem:[#allocation91_spill] sm:$0xff]  ;;  %v7494_v29 = vld [vmem:[%s11361_s4 + $0x410] sm:$0xff]  }
 0x559   :  { %v4693_v43 = vmax.f32 %v11847_v54, %v10209_v44  ;;  %v11852_v3 = vld [vmem:[#allocation96_spill] sm:$0xff]  ;;  %v10241_v54 = vpop.eup %7841  ;;  %v10248_v36 = vadd.f32 %v11855_v45, %v11837_v5  ;;  %3838 = vadd.xlane.f32.xlu0 %v3837_v20  ;;  %v2866_v49 = vmul.f32 %v9908_v17, %v11856_v23  ;;  %v11857_v42 = vld [vmem:[#allocation87_spill] sm:$0xff] }
 0x55a   :  { %v10238_v10 = vadd.f32 %v11852_v3, %v11851_v9  ;;  %11853 = vst [vmem:[#allocation11_spill] sm:$0xff] %v10241_v54  ;;  %v10254_v32 = vadd.f32 %v11857_v42, %v11837_v5  ;;  %v3845_v9 = vadd.f32 %v10220_v24, %v3844_v13  ;;  %6993 = vmatpush3.bf16.msra.mxu1 %v7492_v41  ;;  %v7495_v17 = vld [vmem:[%s11361_s4 + $0x458] sm:$0xff]   ;;  %v11858_v13 = vld [vmem:[#allocation93_spill] sm:$0xff] }
 0x55b   :  { %v4694_v0 = vmax.f32 %v4693_v43, %v10244_v33  ;;  %v4711_v3 = vmax.f32 %v4710_v16, %v10248_v36  ;;  %v2890_v45 = vpack.c.bf16 %v2874_v7, %v2866_v49  ;;  %6994 = vmatprep.subr.bf16.mxu1 %v7493_v61  ;;  %v10269_v42 = vadd.f32 %v11858_v13, %v454_v57  ;;  %v11859_v43 = vld [vmem:[#allocation89_spill] sm:$0xff]  ;;  %v11860_v16 = vld [vmem:[#allocation95_spill] sm:$0xff] }
 0x55c   :  { %v4719_v23 = vmax.f32 %v4718_v2, %v10238_v10  ;;  %v3846_v20 = vadd.f32 %v10241_v54, %v3845_v9  ;;  %v4702_v41 = vmax.f32 %v4701_v52, %v10254_v32  ;;  %v10272_v24 = vadd.f32 %v11859_v43, %v454_v57  ;;  %v7496_v61 = vld [vmem:[%s11361_s4 + $0x418] sm:$0xff]   ;;  %v7497_v2 = vld [vmem:[%s11361_s4 + $0x460] sm:$0xff]  }
 0x55d   :  { %4695 = vmax.xlane.f32.xlu0 %v4694_v0  ;;  %3546 = vmatmul.mubr.bf16.gmra.mrb[104].mxu1 %v2890_v45  ;;  %v10276_v7 = vadd.f32 %v11860_v16, %v11837_v5  ;;  %v4712_v52 = vmax.f32 %v4711_v3, %v10269_v42  ;;  %v11861_v5 = vld [vmem:[#allocation97_spill] sm:$0xff] }
 0x55e   :  { %3847 = vadd.xlane.f32.xlu1 %v3846_v20  ;;  %6995 = vmatpush3.bf16.msra.mxu1 %v7494_v29  ;;  %v4703_v49 = vmax.f32 %v4702_v41, %v10272_v24  ;;  %v10288_v0 = vadd.f32 %v11861_v5, %v454_v57  ;;  %v7498_v29 = vld [vmem:[%s11361_s4 + $0x420] sm:$0xff]   ;;  %v7499_v57 = vld [vmem:[%s11361_s4 + $0x468] sm:$0xff]  }
 0x55f   :  { %6996 = vmatprep.subr.bf16.mxu1 %v7495_v17  ;;  %v4720_v9 = vmax.f32 %v4719_v23, %v10276_v7 }
 0x560   :  { %11862 = vst [vmem:[#allocation78_spill] sm:$0xff] %v10288_v0 }
 0x561   :  { %4713 = vmax.xlane.f32.xlu0 %v4712_v52  ;;  %v4721_v3 = vmax.f32 %v4720_v9, %v10288_v0 }
 0x562   :  { %4704 = vmax.xlane.f32.xlu1 %v4703_v49  ;;  %6997 = vmatpush3.bf16.msra.mxu1 %v7496_v61 }
 0x563   :  { %6998 = vmatprep.subr.bf16.mxu1 %v7497_v2  ;;  %v6830_v45 = vpop.f32.mrb[76].mxu0 }
 0x564   :  { %v6858_v17 = vpop.f32.mrb[84].mxu1  ;;  %v6831_v20 = vpop.f32.mrb[77].mxu0 }
 0x565   :  { %v6832_v41 = vadd.f32 %v6831_v20, %v6830_v45  ;;  %v6859_v23 = vpop.f32.mrb[85].mxu1  ;;  %v6833_v13 = vpop.f32.mrb[78].mxu0 }
 0x566   :  { %4722 = vmax.xlane.f32.xlu1 %v4721_v3  ;;  %6999 = vmatpush3.bf16.msra.mxu1 %v7498_v29  ;;  %v6860_v43 = vadd.f32 %v6859_v23, %v6858_v17  ;;  %v6861_v16 = vpop.f32.mrb[86].mxu1  ;;  %v6834_v61 = vpop.f32.mrb[79].mxu0  ;;  %v7500_v29 = vld [vmem:[%s11361_s4 + $0x428] sm:$0xff]  }
 0x567   :  { %v2528_v52 = vadd.f32 %v6832_v41, %v10085_v28  ;;  %v6835_v2 = vadd.f32 %v6834_v61, %v6833_v13  ;;  %v6862_v49 = vpop.f32.mrb[87].mxu1  ;;  %7000 = vmatprep.subr.bf16.mxu1 %v7499_v57  ;;  %v7501_v61 = vld [vmem:[%s11361_s4 + $0x470] sm:$0xff]  }
 0x568   :  { %v6863_v9 = vadd.f32 %v6862_v49, %v6861_v16 }
 0x569   :  { %v2577_v5 = vadd.f32 %v6860_v43, %v2528_v52  ;;  %v2531_v3 = vadd.f32 %v6835_v2, %v10104_v60 }
 0x56a   :  { %7001 = vmatpush3.bf16.msra.mxu1 %v7500_v29  ;;  %v7461_v29 = vld [vmem:[%s11361_s4 + $0x2d0] sm:$0xff]  }
 0x56b   :  { %v2580_v45 = vadd.f32 %v6863_v9, %v2531_v3  ;;  %7002 = vmatprep.subr.bf16.mxu1 %v7501_v61  ;;  %v7459_v9 = vld [vmem:[%s11361_s4 + $0x2c8] sm:$0xff]   ;;  %v7473_v61 = vld [vmem:[%s11361_s4 + $0x3c0] sm:$0xff]  }
 0x56c   :  { %v6836_v20 = vpop.f32.mrb[80].mxu0  ;;  %v7460_v3 = vld [vmem:[%s11361_s4 + $0x288] sm:$0xff]  }
 0x56d   :  { %v6864_v54 = vpop.f32.mrb[88].mxu1  ;;  %v6837_v34 = vpop.f32.mrb[81].mxu0  ;;  %v2591_v17 = vpack.c.bf16 %v2580_v45, %v2577_v5  ;;  %v11863_v5 = vpack.c.bf16 %v10051_v53, %v9865_v15  ;;  %v7504_v45 = vld [vmem:[%s11361_s4 + $0x438] sm:$0xff]   ;;  %v7462_v15 = vld [vmem:[%s11361_s4 + $0x290] sm:$0xff]  }
 0x56e   :  { %v6838_v23 = vadd.f32 %v6837_v34, %v6836_v20  ;;  %v6865_v0 = vpop.f32.mrb[89].mxu1  ;;  %v6839_v28 = vpop.f32.mrb[82].mxu0  ;;  %v7505_v20 = vld [vmem:[%s11361_s4 + $0x540] sm:$0xff]   ;;  %v7463_v53 = vld [vmem:[%s11361_s4 + $0x2d8] sm:$0xff]  }
 0x56f   :  { %v6866_v41 = vadd.f32 %v6865_v0, %v6864_v54  ;;  %v6867_v13 = vpop.f32.mrb[90].mxu1  ;;  %v6840_v57 = vpop.f32.mrb[83].mxu0  ;;  %7262 = vmatprep.mubr.msk.bf16.mxu0 %vm807_vm4, %v2591_v17  ;;  %v7458_v54 = vld [vmem:[%s11361_s4 + $0x280] sm:$0xff]   ;;  %v7464_v17 = vld [vmem:[%s11361_s4 + $0x298] sm:$0xff]  }
 0x570   :  { %v2536_v43 = vadd.f32 %v6838_v23, %v10172_v22  ;;  %v6841_v16 = vadd.f32 %v6840_v57, %v6839_v28  ;;  %v6868_v60 = vpop.f32.mrb[91].mxu1  ;;  %v7502_v22 = vld [vmem:[%s11361_s4 + $0x430] sm:$0xff]   ;;  %v7465_v23 = vld [vmem:[%s11361_s4 + $0x2e0] sm:$0xff]  }
 0x571   :  { %v6869_v52 = vadd.f32 %v6868_v60, %v6867_v13  ;;  %7003 = vmatpush3.bf16.msra.mxu1 %v7502_v22  ;;  %v7466_v28 = vld [vmem:[%s11361_s4 + $0x2a0] sm:$0xff]   ;;  %v7468_v13 = vld [vmem:[%s11361_s4 + $0x2a8] sm:$0xff]   ;;  %v7469_v57 = vld [vmem:[%s11361_s4 + $0x2f0] sm:$0xff]  }
 0x572   :  { %v2585_v2 = vadd.f32 %v6866_v41, %v2536_v43  ;;  %v2539_v49 = vadd.f32 %v6841_v16, %v10203_v31  ;;  %v7503_v31 = vld [vmem:[%s11361_s4 + $0x478] sm:$0xff]   ;;  %v7467_v41 = vld [vmem:[%s11361_s4 + $0x2e8] sm:$0xff]   ;;  %v7470_v43 = vld [vmem:[%s11361_s4 + $0x2b0] sm:$0xff]  }
 0x573   :  { %7004 = vmatprep.subr.bf16.mxu1 %v7503_v31  ;;  %v7471_v16 = vld [vmem:[%s11361_s4 + $0x2f8] sm:$0xff]   ;;  %v7477_v22 = vld [vmem:[%s11361_s4 + $0x3d0] sm:$0xff]  }
 0x574   :  { %v2588_v34 = vadd.f32 %v6869_v52, %v2539_v49  ;;  %v7472_v60 = vld [vmem:[%s11361_s4 + $0x2b8] sm:$0xff]   ;;  %v7474_v52 = vld [vmem:[%s11361_s4 + $0x380] sm:$0xff]   ;;  %v11864_v49 = vpack.c.bf16 %v10055_v21, %v9868_v40  ;;  %v7478_v40 = vld [vmem:[%s11361_s4 + $0x390] sm:$0xff]  }
 0x575   :  { %7005 = vmatpush3.bf16.msra.mxu1 %v7504_v45  ;;  %v7479_v21 = vld [vmem:[%s11361_s4 + $0x3d8] sm:$0xff]   ;;  %v7486_v31 = vld [vmem:[%s11361_s4 + $0x3b0] sm:$0xff]   ;;  %v11869_v45 = vpack.c.bf16 %v10156_v18, %v10137_v37  ;;  %v11872_v37 = vld [vmem:[#allocation32_spill] sm:$0xff] }
 0x576   :  { %v2592_v0 = vpack.c.bf16 %v2588_v34, %v2585_v2  ;;  %7046 = vmatprep.subr.bf16.mxu1 %v7505_v20  ;;  %v7475_v2 = vld [vmem:[%s11361_s4 + $0x3c8] sm:$0xff]   ;;  %v11865_v34 = vpack.c.bf16 %v10099_v62, %v10095_v51  ;;  %v11866_v51 = vpack.c.bf16 %v10112_v48, %v10108_v35  ;;  %v11867_v62 = vpack.c.bf16 %v10121_v63, %v9871_v55  ;;  %v7482_v35 = vld [vmem:[%s11361_s4 + $0x3a0] sm:$0xff]   ;;  %v7485_v63 = vld [vmem:[%s11361_s4 + $0x3f0] sm:$0xff]  }
 0x577   :  { %v7483_v55 = vld [vmem:[%s11361_s4 + $0x3e8] sm:$0xff]   ;;  %v11870_v20 = vpack.c.bf16 %v10167_v14, %v10163_v38  ;;  %v11873_v38 = vld [vmem:[#allocation56_spill] sm:$0xff] }
 0x578   :  { %7263 = vmatmul.mubr.msk.bf16.vlgmr.msra.gmra.mrb[84].mxu0 %vm807_vm4, %v2592_v0  ;;  %v7480_v0 = vld [vmem:[%s11361_s4 + $0x398] sm:$0xff]   ;;  %v7484_v48 = vld [vmem:[%s11361_s4 + $0x3a8] sm:$0xff]  }
 0x579   :  { %6903 = vmatpush3.bf16.msra.mxu0 %v7458_v54  ;;  %3488 = vmatprep.mubr.bf16.mxu0 %v11863_v5  ;;  %v7476_v54 = vld [vmem:[%s11361_s4 + $0x388] sm:$0xff]   ;;  %v7487_v5 = vld [vmem:[%s11361_s4 + $0x3f8] sm:$0xff]  }
 0x57a   :  { %6904 = vmatprep.subr.bf16.mxu0 %v7459_v9  ;;  %v7481_v9 = vld [vmem:[%s11361_s4 + $0x3e0] sm:$0xff]  }
 0x57d   :  { %6905 = vmatpush3.bf16.msra.mxu0 %v7460_v3  ;;  %v7488_v3 = vld [vmem:[%s11361_s4 + $0x3b8] sm:$0xff]  }
 0x57e   :  { %6906 = vmatprep.subr.bf16.mxu0 %v7461_v29  ;;  %v11868_v29 = vpack.c.bf16 %v10133_v58, %v9882_v27  ;;  %v11871_v58 = vld [vmem:[#allocation52_spill] sm:$0xff] }
 0x581   :  { %6907 = vmatpush3.bf16.msra.mxu0 %v7462_v15 }
 0x582   :  { %6908 = vmatprep.subr.bf16.mxu0 %v7463_v53 }
 0x585   :  { %6909 = vmatpush3.bf16.msra.mxu0 %v7464_v17 }
 0x586   :  { %6910 = vmatprep.subr.bf16.mxu0 %v7465_v23 }
 0x589   :  { %6911 = vmatpush3.bf16.msra.mxu0 %v7466_v28 }
 0x58a   :  { %6912 = vmatprep.subr.bf16.mxu0 %v7467_v41 }
 0x58d   :  { %6913 = vmatpush3.bf16.msra.mxu0 %v7468_v13 }
 0x58e   :  { %6914 = vmatprep.subr.bf16.mxu0 %v7469_v57 }
 0x591   :  { %6915 = vmatpush3.bf16.msra.mxu0 %v7470_v43 }
 0x592   :  { %6916 = vmatprep.subr.bf16.mxu0 %v7471_v16 }
 0x595   :  { %6917 = vmatpush3.bf16.msra.mxu0 %v7472_v60 }
 0x596   :  { %6958 = vmatprep.subr.bf16.mxu0 %v7473_v61 }
 0x598   :  { %3489 = vmatmul.mubr.bf16.vlgmr.msra.gmra.mrb[88].mxu0 %v11864_v49 }
 0x599   :  { %3496 = vmatprep.mubr.bf16.mxu0 %v11865_v34  ;;  %6959 = vmatpush3.bf16.msra.mxu0 %v7474_v52 }
 0x59a   :  { %6960 = vmatprep.subr.bf16.mxu0 %v7475_v2 }
 0x59d   :  { %6961 = vmatpush3.bf16.msra.mxu0 %v7476_v54  ;;  %v11874_v54 = vld [vmem:[#allocation54_spill] sm:$0xff] }
 0x59e   :  { %6962 = vmatprep.subr.bf16.mxu0 %v7477_v22 }
 0x5a0   :  { %3497 = vmatmul.mubr.bf16.gmra.mrb[92].mxu0 %v11866_v51 }
 0x5a1   :  { %6963 = vmatpush3.bf16.msra.mxu0 %v7478_v40  ;;  %3586 = vmatprep.mubr.bf16.mxu0 %v11867_v62 }
 0x5a2   :  { %6964 = vmatprep.subr.bf16.mxu0 %v7479_v21 }
 0x5a5   :  { %6965 = vmatpush3.bf16.msra.mxu0 %v7480_v0  ;;  %v11879_v0 = vld [vmem:[#allocation102_spill] sm:$0xff] }
 0x5a6   :  { %6966 = vmatprep.subr.bf16.mxu0 %v7481_v9 }
 0x5a9   :  { %6967 = vmatpush3.bf16.msra.mxu0 %v7482_v35  ;;  %v11880_v35 = vld [vmem:[#allocation21_spill] sm:$0xff] }
 0x5aa   :  { %6968 = vmatprep.subr.bf16.mxu0 %v7483_v55 }
 0x5ad   :  { %6969 = vmatpush3.bf16.msra.mxu0 %v7484_v48 }
 0x5ae   :  { %6970 = vmatprep.subr.bf16.mxu0 %v7485_v63 }
 0x5b1   :  { %6971 = vmatpush3.bf16.msra.mxu0 %v7486_v31 }
 0x5b2   :  { %6972 = vmatprep.subr.bf16.mxu0 %v7487_v5 }
 0x5b5   :  { %6973 = vmatpush3.bf16.msra.mxu0 %v7488_v3 }
 0x5b8   :  { %3587 = vmatmul.mubr.bf16.vlgmr.msra.gmra.mrb[96].mxu0 %v11868_v29 }
 0x5b9   :  { %3594 = vmatprep.mubr.bf16.mxu0 %v11869_v45 }
 0x5c0   :  { %3595 = vmatmul.mubr.bf16.gmra.mrb[100].mxu0 %v11870_v20 }
 0x5dc   :  { %v3821_v15 = vpop.xlane.xlu0 %3820 }
 0x5dd   :  { %7843 = vrcp.f32 %v3821_v15  ;;  %v11882_v15 = vld [vmem:[#allocation19_spill] sm:$0xff] }
 0x5e1   :  { %v3830_v53 = vpop.xlane.xlu1 %3829 }
 0x5e2   :  { %7845 = vrcp.f32 %v3830_v53 }
 0x5e6   :  { %v3839_v17 = vpop.xlane.xlu0 %3838 }
 0x5e7   :  { %v10438_v23 = vpop.eup %7843  ;;  %7847 = vrcp.f32 %v3839_v17 }
 0x5e8   :  { %v3854_v57 = vmul.f32 %v10438_v23, %v9944_v6  ;;  %v3853_v60 = vmul.f32 %v10438_v23, %v9937_v26  ;;  %v10456_v61 = vmul.f32 %v10438_v23, %v10040_v11  ;;  %v10464_v49 = vmul.f32 %v10438_v23, %v10023_v39  ;;  %v11876_v39 = vld [vmem:[#allocation23_spill] sm:$0xff] }
 0x5e9   :  { %v10468_v6 = vmul.f32 %v10438_v23, %v9950_v8  ;;  %v10472_v26 = vmul.f32 %v10438_v23, %v10067_v4  ;;  %v11877_v8 = vld [vmem:[#allocation42_spill] sm:$0xff]  ;;  %v11878_v4 = vld [vmem:[#allocation20_spill] sm:$0xff]  ;;  %v10494_v63 = vmul.f32 %v10438_v23, %v10057_v47 }
 0x5ea   :  { %v10440_v28 = vpop.xlane.xlu0 %4695  ;;  %v11883_v47 = vld [vmem:[#allocation44_spill] sm:$0xff] }
 0x5eb   :  { %v3848_v27 = vpop.xlane.xlu1 %3847  ;;  %v4724_v41 = vsub.f32 %v11871_v58, %v10440_v28  ;;  %v4725_v18 = vsub.f32 %v11872_v37, %v10440_v28  ;;  %v4726_v14 = vsub.f32 %v11873_v38, %v10440_v28  ;;  %v4727_v9 = vsub.f32 %v11879_v0, %v10440_v28  ;;  %11881 = vst [vmem:[#allocation80_spill] sm:$0xff] %v10494_v63 }
 0x5ec   :  { %v10448_v13 = vpop.eup %7845  ;;  %7849 = vrcp.f32 %v3848_v27  ;;  %v4728_v53 = vsub.f32 %v11882_v15, %v10440_v28  ;;  %v4729_v17 = vsub.f32 %v11846_v25, %v10440_v28 }
 0x5ed   :  { %v4756_v43 = vmul.f32 1.442695, %v4724_v41  ;;  %v4758_v16 = vmul.f32 1.442695, %v4725_v18  ;;  %v3862_v2 = vmul.f32 %v10448_v13, %v9977_v50  ;;  %v4760_v11 = vmul.f32 1.442695, %v4726_v14 }
 0x5ee   :  { %v10458_v52 = vpop.xlane.xlu0 %4713  ;;  %v11875_v50 = vld [vmem:[#allocation29_spill] sm:$0xff]  ;;  %v3861_v48 = vmul.f32 %v10448_v13, %v9971_v56  ;;  %v11884_v41 = vld [vmem:[#allocation58_spill] sm:$0xff]  ;;  %v7506_v18 = vld [vmem:[%s11361_s4 + $0x500] sm:$0xff]  }
 0x5ef   :  { %7851 = vpow2.f32 %v4756_v43  ;;  %v10474_v34 = vpop.xlane.xlu1 %4704  ;;  %v4740_v22 = vsub.f32 %v11874_v54, %v10458_v52  ;;  %v4741_v40 = vsub.f32 %v11875_v50, %v10458_v52  ;;  %v4742_v55 = vsub.f32 %v11880_v35, %v10458_v52  ;;  %v11885_v14 = vld [vmem:[#allocation62_spill] sm:$0xff]  ;;  %v7507_v43 = vld [vmem:[%s11361_s4 + $0x548] sm:$0xff]  }
 0x5f0   :  { %7853 = vpow2.f32 %v4758_v16  ;;  %v4732_v21 = vsub.f32 %v11876_v39, %v10474_v34  ;;  %v4733_v51 = vsub.f32 %v11877_v8, %v10474_v34  ;;  %v4734_v62 = vsub.f32 %v11878_v4, %v10474_v34  ;;  %v7508_v8 = vld [vmem:[%s11361_s4 + $0x508] sm:$0xff]  }
 0x5f1   :  { %v4788_v3 = vmul.f32 1.442695, %v4740_v22  ;;  %v3886_v29 = vpack.c.bf16 %v3862_v2, %v3854_v57  ;;  %7855 = vpow2.f32 %v4760_v11  ;;  %v4790_v45 = vmul.f32 1.442695, %v4741_v40  ;;  %v10502_v27 = vpop.eup %7847  ;;  %v11886_v2 = vld [vmem:[#allocation101_spill] sm:$0xff] }
 0x5f2   :  { %v4772_v31 = vmul.f32 1.442695, %v4732_v21  ;;  %v4774_v5 = vmul.f32 1.442695, %v4733_v51  ;;  %v4776_v56 = vmul.f32 1.442695, %v4734_v62  ;;  %v3885_v57 = vpack.c.bf16 %v3861_v48, %v3853_v60 }
 0x5f3   :  { %v10496_v20 = vpop.xlane.xlu1 %4722  ;;  %4446 = vmatprep.mubr.bf16.mxu1 %v3886_v29  ;;  %v4792_v38 = vmul.f32 1.442695, %v4742_v55  ;;  %v4735_v11 = vsub.f32 %v11886_v2, %v10474_v34  ;;  %v4730_v22 = vsub.f32 %v10209_v44, %v10440_v28  ;;  %v3870_v60 = vmul.f32 %v10502_v27, %v9990_v59  ;;  %v11887_v35 = vld [vmem:[#allocation53_spill] sm:$0xff] }
 0x5f4   :  { %7857 = vpow2.f32 %v4772_v31  ;;  %v4748_v58 = vsub.f32 %v11883_v47, %v10496_v20  ;;  %v4749_v37 = vsub.f32 %v11884_v41, %v10496_v20  ;;  %v4750_v25 = vsub.f32 %v11885_v14, %v10496_v20  ;;  %4447 = vmatmul.mubr.bf16.vlgmr.msra.gmra.mrb[108].mxu1 %v3885_v57  ;;  %v11888_v31 = vld [vmem:[#allocation30_spill] sm:$0xff]  ;;  %v11890_v47 = vld [vmem:[#allocation37_spill] sm:$0xff]  ;;  %v11891_v14 = vld [vmem:[#allocation103_spill] sm:$0xff] }
 0x5f5   :  { %7859 = vpow2.f32 %v4774_v5  ;;  %v4762_v39 = vmul.f32 1.442695, %v4727_v9  ;;  %v4743_v21 = vsub.f32 %v9811_v46, %v10458_v52  ;;  %7047 = vmatpush3.bf16.msra.mxu1 %v7506_v18  ;;  %v3866_v44 = vmul.f32 %v10448_v13, %v10087_v12  ;;  %v11892_v2 = vld [vmem:[#allocation41_spill] sm:$0xff] }
 0x5f6   :  { %v10516_v16 = vpop.eup %7849  ;;  %7861 = vpow2.f32 %v4788_v3  ;;  %v4804_v54 = vmul.f32 1.442695, %v4748_v58  ;;  %v4806_v50 = vmul.f32 1.442695, %v4749_v37  ;;  %v4808_v59 = vmul.f32 1.442695, %v4750_v25  ;;  %7048 = vmatprep.subr.bf16.mxu1 %v7507_v43 }
 0x5f7   :  { %7863 = vpow2.f32 %v4790_v45  ;;  %v3878_v40 = vmul.f32 %v10516_v16, %v10015_v19  ;;  %v7509_v19 = vld [vmem:[%s11361_s4 + $0x550] sm:$0xff]   ;;  %v3877_v46 = vmul.f32 %v10516_v16, %v10007_v1  ;;  %v4778_v0 = vmul.f32 1.442695, %v4735_v11 }
 0x5f8   :  { %7865 = vpow2.f32 %v4776_v56  ;;  %v4731_v12 = vsub.f32 %v10244_v33, %v10440_v28  ;;  %v4764_v9 = vmul.f32 1.442695, %v4728_v53  ;;  %v3869_v55 = vmul.f32 %v10502_v27, %v11887_v35  ;;  %v7510_v1 = vld [vmem:[%s11361_s4 + $0x510] sm:$0xff]   ;;  %v7511_v53 = vld [vmem:[%s11361_s4 + $0x558] sm:$0xff]  }
 0x5f9   :  { %v10533_v51 = vpop.eup %7851  ;;  %7867 = vpow2.f32 %v4792_v38  ;;  %v3894_v4 = vpack.c.bf16 %v3878_v40, %v3870_v60  ;;  %v4766_v48 = vmul.f32 1.442695, %v4729_v17  ;;  %v4736_v5 = vsub.f32 %v11888_v31, %v10474_v34  ;;  %7049 = vmatpush3.bf16.msra.mxu1 %v7508_v8 }
 0x5fa   :  { %v10540_v62 = vpop.eup %7853  ;;  %7869 = vpow2.f32 %v4804_v54  ;;  %v4768_v3 = vmul.f32 1.442695, %v4730_v22  ;;  %v4737_v28 = vsub.f32 %v11849_v30, %v10474_v34  ;;  %v4794_v45 = vmul.f32 1.442695, %v4743_v21  ;;  %7050 = vmatprep.subr.bf16.mxu1 %v7509_v19 }
 0x5fb   :  { %7871 = vpow2.f32 %v4806_v50  ;;  %4454 = vmatprep.mubr.bf16.mxu1 %v3894_v4  ;;  %v4820_v33 = vadd.f32 %v10540_v62, %v10533_v51  ;;  %v10555_v29 = vpop.eup %7855  ;;  %v3893_v15 = vpack.c.bf16 %v3877_v46, %v3869_v55  ;;  %v4738_v17 = vsub.f32 %v10254_v32, %v10474_v34  ;;  %v11895_v55 = vld [vmem:[#allocation78_spill] sm:$0xff] }
 0x5fc   :  { %7873 = vpow2.f32 %v4762_v39  ;;  %11889 = vst [vmem:[#allocation69_spill] sm:$0xff] %v10555_v29  ;;  %v4751_v58 = vsub.f32 %v11890_v47, %v10496_v20  ;;  %v3890_v30 = vpack.c.bf16 %v3866_v44, %v10456_v61  ;;  %v4770_v41 = vmul.f32 1.442695, %v4731_v12  ;;  %v7512_v61 = vld [vmem:[%s11361_s4 + $0x518] sm:$0xff]   ;;  %v11893_v39 = vld [vmem:[#allocation76_spill] sm:$0xff]  ;;  %v7515_v12 = vld [vmem:[%s11361_s4 + $0x568] sm:$0xff]  }
 0x5fd   :  { %7875 = vpow2.f32 %v4808_v59  ;;  %4455 = vmatmul.mubr.bf16.gmra.mrb[112].mxu1 %v3893_v15  ;;  %v4739_v18 = vsub.f32 %v10272_v24, %v10474_v34  ;;  %v4780_v38 = vmul.f32 1.442695, %v4736_v5  ;;  %v4744_v32 = vsub.f32 %v11891_v14, %v10458_v52  ;;  %v7513_v34 = vld [vmem:[%s11361_s4 + $0x560] sm:$0xff]  }
 0x5fe   :  { %v10562_v56 = vpop.eup %7857  ;;  %7877 = vpow2.f32 %v4764_v9  ;;  %7051 = vmatpush3.bf16.msra.mxu1 %v7510_v1  ;;  %4544 = vmatprep.mubr.bf16.mxu1 %v3890_v30  ;;  %v4821_v57 = vadd.f32 %v10555_v29, %v4820_v33  ;;  %v4782_v43 = vmul.f32 1.442695, %v4737_v28  ;;  %v4745_v11 = vsub.f32 %v11892_v2, %v10458_v52 }
 0x5ff   :  { %v10567_v37 = vpop.eup %7859  ;;  %7879 = vpow2.f32 %v4766_v48  ;;  %7052 = vmatprep.subr.bf16.mxu1 %v7511_v53  ;;  %v4784_v54 = vmul.f32 1.442695, %v4738_v17  ;;  %v4746_v22 = vsub.f32 %v10248_v36, %v10458_v52  ;;  %v4747_v50 = vsub.f32 %v10269_v42, %v10458_v52  ;;  %v7514_v36 = vld [vmem:[%s11361_s4 + $0x520] sm:$0xff]  }
 0x600   :  { %v10573_v25 = vpop.eup %7861  ;;  %7881 = vpow2.f32 %v4768_v3  ;;  %v4829_v40 = vadd.f32 %v10567_v37, %v10562_v56  ;;  %v4752_v21 = vsub.f32 %v11893_v39, %v10496_v20  ;;  %v4753_v8 = vsub.f32 %v10238_v10, %v10496_v20 }
 0x601   :  { %v10581_v24 = vpop.eup %7863  ;;  %7883 = vpow2.f32 %v4778_v0  ;;  %v4786_v42 = vmul.f32 1.442695, %v4739_v18  ;;  %v4754_v59 = vsub.f32 %v10276_v7, %v10496_v20  ;;  %v4810_v19 = vmul.f32 1.442695, %v4751_v58  ;;  %v11898_v58 = vld [vmem:[#allocation57_spill] sm:$0xff] }
 0x602   :  { %v10590_v60 = vpop.eup %7865  ;;  %7885 = vpow2.f32 %v4770_v41  ;;  %v4838_v52 = vadd.f32 %v10581_v24, %v10573_v25  ;;  %7053 = vmatpush3.bf16.msra.mxu1 %v7512_v61  ;;  %v4796_v10 = vmul.f32 1.442695, %v4744_v32  ;;  %v4798_v46 = vmul.f32 1.442695, %v4745_v11  ;;  %v11899_v41 = vld [vmem:[#allocation59_spill] sm:$0xff]  ;;  %v7517_v32 = vld [vmem:[%s11361_s4 + $0x570] sm:$0xff]  }
 0x603   :  { %v10598_v44 = vpop.eup %7867  ;;  %7887 = vpow2.f32 %v4780_v38  ;;  %7054 = vmatprep.subr.bf16.mxu1 %v7513_v34  ;;  %v4800_v9 = vmul.f32 1.442695, %v4746_v22  ;;  %v4802_v35 = vmul.f32 1.442695, %v4747_v50  ;;  %v4755_v7 = vsub.f32 %v11895_v55, %v10496_v20  ;;  %v7516_v20 = vld [vmem:[%s11361_s4 + $0x528] sm:$0xff]  }
 0x604   :  { %11894 = vst [vmem:[#allocation71_spill] sm:$0xff] %v10598_v44  ;;  %v10607_v4 = vpop.eup %7869  ;;  %7889 = vpow2.f32 %v4782_v43  ;;  %v4830_v31 = vadd.f32 %v10590_v60, %v4829_v40  ;;  %v4812_v5 = vmul.f32 1.442695, %v4752_v21  ;;  %v4814_v1 = vmul.f32 1.442695, %v4753_v8  ;;  %v11900_v21 = vld [vmem:[#allocation8_spill] sm:$0xff] }
 0x605   :  { %v10609_v0 = vpop.eup %7871  ;;  %7891 = vpow2.f32 %v4784_v54  ;;  %v10623_v28 = vadd.f32 %v10598_v44, %v4838_v52  ;;  %v10625_v15 = vmul.f32 1.442695, %v4754_v59  ;;  %v10638_v30 = vmul.f32 %v10448_v13, %v11898_v58 }
 0x606   :  { %v10616_v48 = vpop.eup %7873  ;;  %7893 = vpow2.f32 %v4794_v45  ;;  %7055 = vmatpush3.bf16.msra.mxu1 %v7514_v36  ;;  %v11897_v45 = vld [vmem:[#allocation63_spill] sm:$0xff]  ;;  %v10642_v18 = vmul.f32 %v10448_v13, %v11899_v41  ;;  %v10650_v61 = vmul.f32 1.442695, %v4755_v7  ;;  %v10667_v8 = vmul.f32 %v10502_v27, %v11900_v21  ;;  %v11901_v36 = vld [vmem:[#allocation72_spill] sm:$0xff] }
 0x607   :  { %v10619_v3 = vpop.eup %7875  ;;  %v4822_v33 = vadd.f32 %v10616_v48, %v4821_v57  ;;  %7895 = vpow2.f32 %v4786_v42  ;;  %v10634_v17 = vmul.f32 %v10448_v13, %v11897_v45  ;;  %7056 = vmatprep.subr.bf16.mxu1 %v7515_v12  ;;  %v4847_v57 = vadd.f32 %v10609_v0, %v10607_v4  ;;  %v11905_v45 = vld [vmem:[#allocation7_spill] sm:$0xff] }
 0x608   :  { %11896 = vst [vmem:[#allocation82_spill] sm:$0xff] %v10619_v3  ;;  %v10627_v53 = vpop.eup %7877  ;;  %7897 = vpow2.f32 %v4796_v10  ;;  %v6890_v47 = vpop.f32.mrb[92].mxu1  ;;  %v10671_v42 = vmul.f32 %v10516_v16, %v11901_v36  ;;  %v7518_v10 = vld [vmem:[%s11361_s4 + $0x530] sm:$0xff]  }
 0x609   :  { %v10644_v38 = vpop.eup %7879  ;;  %v4823_v14 = vadd.f32 %v10627_v53, %v4822_v33  ;;  %7899 = vpow2.f32 %v4798_v46  ;;  %v6891_v43 = vpop.f32.mrb[93].mxu1 }
 0x60a   :  { %v10654_v2 = vpop.eup %7881  ;;  %7901 = vpow2.f32 %v4800_v9  ;;  %v10656_v11 = vadd.f32 %v6891_v43, %v6890_v47  ;;  %v6893_v34 = vpop.f32.mrb[94].mxu1  ;;  %7057 = vmatpush3.bf16.msra.mxu1 %v7516_v20  ;;  %v11904_v9 = vld [vmem:[#allocation55_spill] sm:$0xff]  ;;  %v10699_v47 = vmul.f32 %v10448_v13, %v11905_v45 }
 0x60b   :  { %v10662_v50 = vpop.eup %7883  ;;  %v4824_v40 = vadd.f32 %v10644_v38, %v4823_v14  ;;  %7903 = vpow2.f32 %v4810_v19  ;;  %v6894_v39 = vpop.f32.mrb[95].mxu1  ;;  %v11903_v19 = vld [vmem:[#allocation105_spill] sm:$0xff]  ;;  %v10687_v55 = vmul.f32 %v10516_v16, %v11904_v9  ;;  %7058 = vmatprep.subr.bf16.mxu1 %v7517_v32 }
 0x60c   :  { %v10673_v52 = vpop.eup %7885  ;;  %v4831_v59 = vadd.f32 %v10662_v50, %v4830_v31  ;;  %v10679_v46 = vadd.f32 %v6894_v39, %v6893_v34  ;;  %v10683_v12 = vmul.f32 %v10502_v27, %v11903_v19  ;;  %7905 = vpow2.f32 %v4812_v5  ;;  %v7519_v31 = vld [vmem:[%s11361_s4 + $0x578] sm:$0xff]   ;;  %v11906_v5 = vld [vmem:[#allocation65_spill] sm:$0xff] }
 0x60d   :  { %11902 = vst [vmem:[#allocation12_spill] sm:$0xff] %v10673_v52  ;;  %v10689_v7 = vpop.eup %7887  ;;  %v4825_v33 = vadd.f32 %v10654_v2, %v4824_v40  ;;  %7907 = vpow2.f32 %v4802_v35  ;;  %v10708_v32 = vmul.f32 %v10448_v13, %v11906_v5  ;;  %v11908_v40 = vld [vmem:[#allocation67_spill] sm:$0xff] }
 0x60e   :  { %v10701_v58 = vpop.eup %7889  ;;  %v4832_v41 = vadd.f32 %v10689_v7, %v4831_v59  ;;  %7909 = vpow2.f32 %v4814_v1  ;;  %v3882_v39 = vmul.f32 %v10516_v16, %v11908_v40  ;;  %7059 = vmatpush3.bf16.msra.mxu1 %v7518_v10  ;;  %v7520_v13 = vld [vmem:[%s11361_s4 + $0x538] sm:$0xff]   ;;  %v11910_v1 = vld [vmem:[#allocation70_spill] sm:$0xff]  ;;  %v7521_v40 = vld [vmem:[%s11361_s4 + $0x640] sm:$0xff]  }
 0x60f   :  { %11907 = vst [vmem:[#allocation75_spill] sm:$0xff] %v10708_v32  ;;  %v10710_v43 = vpop.eup %7891  ;;  %v4826_v34 = vadd.f32 %v10673_v52, %v4825_v33  ;;  %v10727_v9 = vmul.f32 %v10502_v27, %v11910_v1  ;;  %v11912_v33 = vld [vmem:[#allocation11_spill] sm:$0xff]  ;;  %7911 = vpow2.f32 %v10625_v15  ;;  %7060 = vmatprep.subr.bf16.mxu1 %v7519_v31  ;;  %v11915_v1 = vld [vmem:[#allocation9_spill] sm:$0xff]  ;;  %v4848_v15 = vadd.f32 %v10619_v3, %v4847_v57 }
 0x610   :  { %v10717_v36 = vpop.eup %7893  ;;  %v4833_v35 = vadd.f32 %v10701_v58, %v4832_v41  ;;  %v6896_v59 = vpop.f32.mrb[96].mxu1  ;;  %v10731_v45 = vmul.f32 %v10516_v16, %v11912_v33  ;;  %v10743_v19 = vmul.f32 %v10502_v27, %v11915_v1  ;;  %v11917_v33 = vld [vmem:[#allocation10_spill] sm:$0xff]  ;;  %7913 = vpow2.f32 %v10650_v61  ;;  %v7522_v61 = vld [vmem:[%s11361_s4 + $0x600] sm:$0xff]  }
 0x611   :  { %11909 = vst [vmem:[#allocation73_spill] sm:$0xff] %v10717_v36  ;;  %11911 = vst [vmem:[#allocation84_spill] sm:$0xff] %v10727_v9  ;;  %v10733_v5 = vpop.eup %7895  ;;  %4827 = vadd.xlane.f32.xlu0 %v4826_v34  ;;  %v4840_v10 = vadd.f32 %v10717_v36, %v10623_v28  ;;  %v6897_v41 = vpop.f32.mrb[97].mxu1  ;;  %v10747_v21 = vmul.f32 %v10516_v16, %v11917_v33  ;;  %v11919_v33 = vld [vmem:[#allocation61_spill] sm:$0xff] }
 0x612   :  { %11913 = vst [vmem:[#allocation86_spill] sm:$0xff] %v10731_v45  ;;  %11914 = vst [vmem:[#allocation77_spill] sm:$0xff] %v10733_v5  ;;  %v10749_v34 = vpop.eup %7897  ;;  %v4834_v28 = vadd.f32 %v10710_v43, %v4833_v35  ;;  %v10753_v31 = vadd.f32 %v6897_v41, %v6896_v59  ;;  %v6899_v14 = vpop.f32.mrb[98].mxu1  ;;  %v3857_v54 = vmul.f32 %v10438_v23, %v11919_v33  ;;  %7061 = vmatpush3.bf16.msra.mxu1 %v7520_v13  ;;  %v11920_v41 = vld [vmem:[#allocation68_spill] sm:$0xff]  ;;  %v7523_v13 = vld [vmem:[%s11361_s4 + $0x648] sm:$0xff]  }
 0x613   :  { %11916 = vst [vmem:[#allocation79_spill] sm:$0xff] %v10743_v19  ;;  %11918 = vst [vmem:[#allocation81_spill] sm:$0xff] %v10747_v21  ;;  %v10757_v22 = vpop.eup %7899  ;;  %v4841_v1 = vadd.f32 %v10749_v34, %v4840_v10  ;;  %v6900_v63 = vpop.f32.mrb[99].mxu1  ;;  %v3874_v20 = vmul.f32 %v10502_v27, %v11920_v41  ;;  %7106 = vmatprep.subr.bf16.mxu1 %v7521_v40 }
 0x614   :  { %v10765_v57 = vpop.eup %7901  ;;  %v4835_v59 = vadd.f32 %v10733_v5, %v4834_v28  ;;  %v10770_v9 = vadd.f32 %v6900_v63, %v6899_v14  ;;  %v3889_v33 = vpack.c.bf16 %v10634_v17, %v3857_v54  ;;  %v7524_v17 = vld [vmem:[%s11361_s4 + $0x608] sm:$0xff]  }
 0x615   :  { %v10775_v10 = vpop.eup %7903  ;;  %v4842_v23 = vadd.f32 %v10757_v22, %v4841_v1  ;;  %v3898_v63 = vpack.c.bf16 %v3882_v39, %v3874_v20  ;;  %v11921_v20 = vld [vmem:[#allocation74_spill] sm:$0xff] }
 0x616   :  { %4836 = vadd.xlane.f32.xlu1 %v4835_v59  ;;  %v4849_v28 = vadd.f32 %v10775_v10, %v4848_v15  ;;  %v10783_v14 = vpop.eup %7905  ;;  %4545 = vmatmul.mubr.bf16.vlgmr.msra.gmra.mrb[116].mxu1 %v3889_v33  ;;  %v3881_v39 = vmul.f32 %v10516_v16, %v11921_v20  ;;  %v7525_v15 = vld [vmem:[%s11361_s4 + $0x650] sm:$0xff]  }
 0x617   :  { %v4843_v41 = vadd.f32 %v10765_v57, %v4842_v23  ;;  %v10786_v35 = vpop.eup %7907  ;;  %4552 = vmatprep.mubr.bf16.mxu1 %v3898_v63  ;;  %7107 = vmatpush3.bf16.msra.mxu1 %v7522_v61  ;;  %v11922_v61 = vld [vmem:[#allocation66_spill] sm:$0xff] }
 0x618   :  { %v4850_v1 = vadd.f32 %v10783_v14, %v4849_v28  ;;  %v10792_v54 = vpop.eup %7909  ;;  %7108 = vmatprep.subr.bf16.mxu1 %v7523_v13  ;;  %v3873_v33 = vmul.f32 %v10502_v27, %v11922_v61  ;;  %v7526_v16 = vld [vmem:[%s11361_s4 + $0x610] sm:$0xff]   ;;  %v7528_v27 = vld [vmem:[%s11361_s4 + $0x618] sm:$0xff]  }
 0x619   :  { %v4844_v40 = vadd.f32 %v10786_v35, %v4843_v41  ;;  %v10801_v23 = vpop.eup %7911  ;;  %v7527_v41 = vld [vmem:[%s11361_s4 + $0x658] sm:$0xff]  }
 0x61a   :  { %v4851_v59 = vadd.f32 %v10792_v54, %v4850_v1  ;;  %v10809_v13 = vpop.eup %7913  ;;  %v3897_v63 = vpack.c.bf16 %v3881_v39, %v3873_v33 }
 0x61b   :  { %4845 = vadd.xlane.f32.xlu0 %v4844_v40  ;;  %7109 = vmatpush3.bf16.msra.mxu1 %v7524_v17  ;;  %v7529_v17 = vld [vmem:[%s11361_s4 + $0x660] sm:$0xff]  }
 0x61c   :  { %v4852_v28 = vadd.f32 %v10801_v23, %v4851_v59  ;;  %7110 = vmatprep.subr.bf16.mxu1 %v7525_v15  ;;  %v7530_v40 = vld [vmem:[%s11361_s4 + $0x620] sm:$0xff]   ;;  %v7531_v15 = vld [vmem:[%s11361_s4 + $0x668] sm:$0xff]  }
 0x61e   :  { %v4853_v1 = vadd.f32 %v10809_v13, %v4852_v28  ;;  %4553 = vmatmul.mubr.bf16.gmra.mrb[120].mxu1 %v3897_v63  ;;  %v7533_v63 = vld [vmem:[%s11361_s4 + $0x670] sm:$0xff]  }
 0x61f   :  { %7111 = vmatpush3.bf16.msra.mxu1 %v7526_v16  ;;  %v7532_v16 = vld [vmem:[%s11361_s4 + $0x628] sm:$0xff]  }
 0x620   :  { %4854 = vadd.xlane.f32.xlu1 %v4853_v1  ;;  %7112 = vmatprep.subr.bf16.mxu1 %v7527_v41  ;;  %v7537_v41 = vld [vmem:[%s11362_s5 + $0x10] sm:$0xff]  }
 0x621   :  { %7266 = vmatprep.subr.bf16.mxu0 %v7537_v41 }
 0x622   :  { %7267 = vmatpush3.bf16.msra.mxu0 %v7537_v41  ;;  %v7547_v41 = vld [vmem:[%s11361_s4 + $0x4c0] sm:$0xff]  }
 0x623   :  { %7113 = vmatpush3.bf16.msra.mxu1 %v7528_v27  ;;  %v7534_v27 = vld [vmem:[%s11361_s4 + $0x630] sm:$0xff]  }
 0x624   :  { %7114 = vmatprep.subr.bf16.mxu1 %v7529_v17 }
 0x627   :  { %7115 = vmatpush3.bf16.msra.mxu1 %v7530_v40  ;;  %v7535_v40 = vld [vmem:[%s11361_s4 + $0x678] sm:$0xff]  }
 0x628   :  { %v6946_v20 = vpop.f32.mrb[100].mxu1  ;;  %7116 = vmatprep.subr.bf16.mxu1 %v7531_v15 }
 0x629   :  { %v6947_v39 = vpop.f32.mrb[101].mxu1 }
 0x62a   :  { %v6948_v59 = vadd.f32 %v6947_v39, %v6946_v20  ;;  %v6949_v61 = vpop.f32.mrb[102].mxu1 }
 0x62b   :  { %v6950_v33 = vpop.f32.mrb[103].mxu1  ;;  %7117 = vmatpush3.bf16.msra.mxu1 %v7532_v16  ;;  %v7538_v16 = vld [vmem:[%s11361_s4 + $0x6c0] sm:$0xff]  }
 0x62c   :  { %v6951_v28 = vadd.f32 %v6950_v33, %v6949_v61  ;;  %7118 = vmatprep.subr.bf16.mxu1 %v7533_v63  ;;  %v7536_v33 = vld [vmem:[%s11361_s4 + $0x638] sm:$0xff]  }
 0x62d   :  { %v7542_v63 = vld [vmem:[%s11362_s5 + $0x18] sm:$0xff]  }
 0x62e   :  { %7268 = vmatprep.subr.bf16.mxu0 %v7542_v63 }
 0x62f   :  { %7119 = vmatpush3.bf16.msra.mxu1 %v7534_v27  ;;  %7269 = vmatpush3.bf16.msra.mxu0 %v7542_v63 }
 0x630   :  { %v6952_v1 = vpop.f32.mrb[104].mxu1  ;;  %7120 = vmatprep.subr.bf16.mxu1 %v7535_v40  ;;  %7018 = vmatprep.subr.bf16.mxu0 %v7547_v41 }
 0x631   :  { %v6953_v17 = vpop.f32.mrb[105].mxu1 }
 0x632   :  { %v6954_v20 = vadd.f32 %v6953_v17, %v6952_v1  ;;  %v6955_v39 = vpop.f32.mrb[106].mxu1 }
 0x633   :  { %v6956_v15 = vpop.f32.mrb[107].mxu1  ;;  %7121 = vmatpush3.bf16.msra.mxu1 %v7536_v33 }
 0x634   :  { %v6957_v61 = vadd.f32 %v6956_v15, %v6955_v39  ;;  %7134 = vmatprep.subr.bf16.mxu1 %v7538_v16 }
 0x66b   :  { %v6918_v1 = vpop.f32.mrb[88].mxu0 }
 0x66c   :  { %v6919_v27 = vpop.f32.mrb[89].mxu0 }
 0x66d   :  { %v6920_v17 = vadd.f32 %v6919_v27, %v6918_v1  ;;  %v6921_v40 = vpop.f32.mrb[90].mxu0 }
 0x66e   :  { %v6922_v39 = vpop.f32.mrb[91].mxu0 }
 0x66f   :  { %v3491_v15 = vadd.f32 %v6920_v17, %v10656_v11  ;;  %v6923_v33 = vadd.f32 %v6922_v39, %v6921_v40 }
 0x671   :  { %v3494_v16 = vadd.f32 %v6923_v33, %v10679_v46  ;;  %v3540_v19 = vadd.f32 %v6948_v59, %v3491_v15 }
 0x673   :  { %v6924_v21 = vpop.f32.mrb[92].mxu0  ;;  %v3543_v45 = vadd.f32 %v6951_v28, %v3494_v16  ;;  %v7556_v16 = vld [vmem:[%s11361_s4 + $0x490] sm:$0xff]  }
 0x674   :  { %v6925_v32 = vpop.f32.mrb[93].mxu0 }
 0x675   :  { %v6926_v63 = vadd.f32 %v6925_v32, %v6924_v21  ;;  %v6927_v52 = vpop.f32.mrb[94].mxu0 }
 0x676   :  { %v6928_v44 = vpop.f32.mrb[95].mxu0 }
 0x677   :  { %v3499_v5 = vadd.f32 %v6926_v63, %v10753_v31  ;;  %v6929_v41 = vadd.f32 %v6928_v44, %v6927_v52  ;;  %v7552_v31 = vld [vmem:[%s11361_s4 + $0x488] sm:$0xff]  }
 0x679   :  { %v3502_v3 = vadd.f32 %v6929_v41, %v10770_v9  ;;  %v3548_v1 = vadd.f32 %v6954_v20, %v3499_v5  ;;  %v7555_v20 = vld [vmem:[%s11361_s4 + $0x4d0] sm:$0xff]   ;;  %v7563_v41 = vld [vmem:[%s11361_s4 + $0x4e0] sm:$0xff]  }
 0x67b   :  { %v3551_v27 = vadd.f32 %v6957_v61, %v3502_v3 }
 0x68b   :  { %v6974_v36 = vpop.f32.mrb[96].mxu0 }
 0x68c   :  { %v6975_v29 = vpop.f32.mrb[97].mxu0 }
 0x68d   :  { %v6976_v11 = vadd.f32 %v6975_v29, %v6974_v36  ;;  %v6977_v17 = vpop.f32.mrb[98].mxu0  ;;  %v7548_v29 = vld [vmem:[%s11361_s4 + $0x480] sm:$0xff]   ;;  %v7551_v36 = vld [vmem:[%s11361_s4 + $0x4c8] sm:$0xff]  }
 0x68e   :  { %v6978_v40 = vpop.f32.mrb[99].mxu0 }
 0x68f   :  { %v3589_v46 = vadd.f32 %v6976_v11, %v3540_v19  ;;  %v6979_v59 = vadd.f32 %v6978_v40, %v6977_v17  ;;  %v7567_v11 = vld [vmem:[%s11361_s4 + $0x4e8] sm:$0xff]  }
 0x691   :  { %v3592_v39 = vadd.f32 %v6979_v59, %v3543_v45  ;;  %v11923_v45 = vpack.c.bf16 %v10638_v30, %v10464_v49  ;;  %v7559_v49 = vld [vmem:[%s11361_s4 + $0x4d8] sm:$0xff]  }
 0x692   :  { %v7560_v30 = vld [vmem:[%s11361_s4 + $0x498] sm:$0xff]  }
 0x693   :  { %v3603_v28 = vpack.c.bf16 %v3592_v39, %v3589_v46  ;;  %v6980_v15 = vpop.f32.mrb[100].mxu0 }
 0x694   :  { %v6981_v32 = vpop.f32.mrb[101].mxu0 }
 0x695   :  { %v6982_v21 = vadd.f32 %v6981_v32, %v6980_v15  ;;  %v6983_v33 = vpop.f32.mrb[102].mxu0  ;;  %7270 = vmatprep.mubr.msk.bf16.mxu0 %vm807_vm4, %v3603_v28  ;;  %v7568_v15 = vld [vmem:[%s11361_s4 + $0x4a8] sm:$0xff]  }
 0x696   :  { %v6984_v44 = vpop.f32.mrb[103].mxu0 }
 0x697   :  { %v3597_v52 = vadd.f32 %v6982_v21, %v3548_v1  ;;  %v6985_v9 = vadd.f32 %v6984_v44, %v6983_v33  ;;  %v7539_v44 = vld [vmem:[%s11361_s4 + $0x680] sm:$0xff]  }
 0x699   :  { %v3600_v5 = vadd.f32 %v6985_v9, %v3551_v27  ;;  %v7564_v27 = vld [vmem:[%s11361_s4 + $0x4a0] sm:$0xff]   ;;  %v7575_v9 = vld [vmem:[%s11361_s4 + $0x4f8] sm:$0xff]  }
 0x69b   :  { %v3604_v3 = vpack.c.bf16 %v3600_v5, %v3597_v52  ;;  %v7572_v52 = vld [vmem:[%s11361_s4 + $0x4b0] sm:$0xff]  }
 0x69d   :  { %7271 = vmatmul.mubr.msk.bf16.vlgmr.msra.gmra.mrb[84].mxu0 %vm807_vm4, %v3604_v3  ;;  %v7543_v3 = vld [vmem:[%s11361_s4 + $0x6d0] sm:$0xff]  }
 0x69e   :  { %v4828_v19 = vpop.xlane.xlu0 %4827  ;;  %7019 = vmatpush3.bf16.msra.mxu0 %v7548_v29  ;;  %4495 = vmatprep.mubr.bf16.mxu0 %v11923_v45  ;;  %v7541_v29 = vld [vmem:[%s11361_s4 + $0x688] sm:$0xff]  }
 0x69f   :  { %7020 = vmatprep.subr.bf16.mxu0 %v7551_v36  ;;  %7915 = vrcp.f32 %v4828_v19  ;;  %v7576_v19 = vld [vmem:[%s11361_s4 + $0x4b8] sm:$0xff]  }
 0x6a2   :  { %7021 = vmatpush3.bf16.msra.mxu0 %v7552_v31 }
 0x6a3   :  { %v4837_v61 = vpop.xlane.xlu1 %4836  ;;  %7022 = vmatprep.subr.bf16.mxu0 %v7555_v20 }
 0x6a4   :  { %7917 = vrcp.f32 %v4837_v61  ;;  %v7579_v61 = vld [vmem:[%s11361_s4 + $0x5c0] sm:$0xff]  }
 0x6a6   :  { %7023 = vmatpush3.bf16.msra.mxu0 %v7556_v16 }
 0x6a7   :  { %7024 = vmatprep.subr.bf16.mxu0 %v7559_v49 }
 0x6a8   :  { %v4846_v63 = vpop.xlane.xlu0 %4845 }
 0x6a9   :  { %v10887_v1 = vpop.eup %7915  ;;  %7919 = vrcp.f32 %v4846_v63 }
 0x6aa   :  { %7025 = vmatpush3.bf16.msra.mxu0 %v7560_v30  ;;  %v4861_v46 = vmul.f32 %v10887_v1, %v10540_v62  ;;  %v4860_v59 = vmul.f32 %v10887_v1, %v10533_v51  ;;  %v10910_v32 = vmul.f32 %v10887_v1, %v10654_v2  ;;  %v10914_v62 = vmul.f32 %v10887_v1, %v10644_v38  ;;  %v7571_v51 = vld [vmem:[%s11361_s4 + $0x4f0] sm:$0xff]  }
 0x6ab   :  { %7026 = vmatprep.subr.bf16.mxu0 %v7563_v41  ;;  %v10929_v2 = vmul.f32 %v10887_v1, %v10627_v53 }
 0x6ad   :  { %v4855_v17 = vpop.xlane.xlu1 %4854 }
 0x6ae   :  { %v10895_v40 = vpop.eup %7917  ;;  %7921 = vrcp.f32 %v4855_v17  ;;  %7027 = vmatpush3.bf16.msra.mxu0 %v7564_v27  ;;  %v4863_v27 = vmul.f32 %v10887_v1, %v10616_v48  ;;  %v7546_v17 = vld [vmem:[%s11361_s4 + $0x698] sm:$0xff]  }
 0x6af   :  { %v4869_v39 = vmul.f32 %v10895_v40, %v10567_v37  ;;  %v4868_v28 = vmul.f32 %v10895_v40, %v10562_v56  ;;  %7028 = vmatprep.subr.bf16.mxu0 %v7567_v11  ;;  %v10921_v56 = vmul.f32 %v10895_v40, %v10710_v43  ;;  %v10925_v37 = vmul.f32 %v10895_v40, %v10701_v58  ;;  %v7540_v43 = vld [vmem:[%s11361_s4 + $0x6c8] sm:$0xff]  }
 0x6b0   :  { %v10933_v38 = vmul.f32 %v10895_v40, %v10689_v7  ;;  %v4871_v36 = vmul.f32 %v10895_v40, %v10662_v50 }
 0x6b1   :  { %v4893_v21 = vpack.c.bf16 %v4869_v39, %v4861_v46  ;;  %v4892_v33 = vpack.c.bf16 %v4868_v28, %v4860_v59  ;;  %v4898_v58 = vpack.c.bf16 %v10921_v56, %v10910_v32  ;;  %v4897_v53 = vpack.c.bf16 %v10925_v37, %v10914_v62  ;;  %v7583_v46 = vld [vmem:[%s11361_s4 + $0x5c8] sm:$0xff]   ;;  %v7549_v59 = vld [vmem:[%s11361_s4 + $0x6e0] sm:$0xff]   ;;  %v7611_v37 = vld [vmem:[%s11361_s4 + $0x758] sm:$0xff]  }
 0x6b2   :  { %v4896_v7 = vpack.c.bf16 %v10933_v38, %v10929_v2  ;;  %7029 = vmatpush3.bf16.msra.mxu0 %v7568_v15  ;;  %v4895_v48 = vpack.c.bf16 %v4871_v36, %v4863_v27  ;;  %v11924_v39 = vpack.c.bf16 %v10642_v18, %v10468_v6  ;;  %v11925_v28 = vpack.c.bf16 %v10671_v42, %v10667_v8  ;;  %v7584_v15 = vld [vmem:[%s11361_s4 + $0x588] sm:$0xff]   ;;  %v7587_v6 = vld [vmem:[%s11361_s4 + $0x5d0] sm:$0xff]   ;;  %v7596_v36 = vld [vmem:[%s11361_s4 + $0x5a0] sm:$0xff]  }
 0x6b3   :  { %5453 = vmatprep.mubr.bf16.mxu1 %v4893_v21  ;;  %7030 = vmatprep.subr.bf16.mxu0 %v7571_v51  ;;  %v10953_v5 = vpop.eup %7919  ;;  %v7550_v51 = vld [vmem:[%s11361_s4 + $0x6a0] sm:$0xff]   ;;  %v7553_v18 = vld [vmem:[%s11361_s4 + $0x6e8] sm:$0xff]   ;;  %v7588_v8 = vld [vmem:[%s11361_s4 + $0x590] sm:$0xff]   ;;  %v11943_v2 = vmov 0.0  }
 0x6b4   :  { %5454 = vmatmul.mubr.bf16.vlgmr.msra.gmra.mrb[124].mxu1 %v4892_v33  ;;  %v4877_v31 = vmul.f32 %v10953_v5, %v10581_v24  ;;  %v4876_v20 = vmul.f32 %v10953_v5, %v10573_v25  ;;  %v10977_v50 = vmul.f32 %v10953_v5, %v10786_v35  ;;  %v10981_v16 = vmul.f32 %v10953_v5, %v10765_v57  ;;  %v7544_v24 = vld [vmem:[%s11361_s4 + $0x690] sm:$0xff]   ;;  %v7554_v42 = vld [vmem:[%s11361_s4 + $0x6a8] sm:$0xff]   ;;  %v7591_v21 = vld [vmem:[%s11361_s4 + $0x5d8] sm:$0xff]  }
 0x6b5   :  { %7135 = vmatpush3.bf16.msra.mxu1 %v7539_v44  ;;  %v10992_v30 = vmul.f32 %v10953_v5, %v10757_v22  ;;  %v10996_v35 = vmul.f32 %v10953_v5, %v10749_v34  ;;  %v7557_v33 = vld [vmem:[%s11361_s4 + $0x6f0] sm:$0xff]   ;;  %v11926_v44 = vpack.c.bf16 %v10687_v55, %v10683_v12  ;;  %v7595_v12 = vld [vmem:[%s11361_s4 + $0x5e0] sm:$0xff]   ;;  %v11929_v27 = vld [vmem:[#allocation73_spill] sm:$0xff] }
 0x6b6   :  { %7136 = vmatprep.subr.bf16.mxu1 %v7540_v43  ;;  %7031 = vmatpush3.bf16.msra.mxu0 %v7572_v52  ;;  %v11927_v43 = vpack.c.bf16 %v10699_v47, %v10472_v26  ;;  %v7592_v52 = vld [vmem:[%s11361_s4 + $0x598] sm:$0xff]   ;;  %v7604_v32 = vld [vmem:[%s11362_s5 + $0x28] sm:$0xff]   ;;  %v7605_v56 = vld [vmem:[%s11361_s4 + $0x740] sm:$0xff]  }
 0x6b7   :  { %7032 = vmatprep.subr.bf16.mxu0 %v7575_v9  ;;  %v7558_v9 = vld [vmem:[%s11361_s4 + $0x6b0] sm:$0xff]   ;;  %v7561_v26 = vld [vmem:[%s11361_s4 + $0x6f8] sm:$0xff]  }
 0x6b8   :  { %v10966_v45 = vpop.eup %7921 }
 0x6b9   :  { %v4885_v49 = vmul.f32 %v10966_v45, %v10609_v0  ;;  %7137 = vmatpush3.bf16.msra.mxu1 %v7541_v29  ;;  %v4884_v25 = vmul.f32 %v10966_v45, %v10607_v4  ;;  %v7545_v0 = vld [vmem:[%s11361_s4 + $0x6d8] sm:$0xff]   ;;  %v11003_v4 = vmul.f32 %v10966_v45, %v10809_v13  ;;  %v11007_v57 = vmul.f32 %v10966_v45, %v10801_v23  ;;  %v7580_v23 = vld [vmem:[%s11361_s4 + $0x580] sm:$0xff]  }
 0x6ba   :  { %7138 = vmatprep.subr.bf16.mxu1 %v7543_v3  ;;  %v11011_v22 = vmul.f32 %v10966_v45, %v10792_v54  ;;  %v11015_v34 = vmul.f32 %v10966_v45, %v10783_v14  ;;  %7033 = vmatpush3.bf16.msra.mxu0 %v7576_v19  ;;  %v7562_v19 = vld [vmem:[%s11361_s4 + $0x6b8] sm:$0xff]  }
 0x6bb   :  { %v4901_v63 = vpack.c.bf16 %v4885_v49, %v4877_v31  ;;  %v4900_v41 = vpack.c.bf16 %v4884_v25, %v4876_v20  ;;  %7074 = vmatprep.subr.bf16.mxu0 %v7579_v61  ;;  %v4907_v13 = vpack.c.bf16 %v11003_v4, %v10977_v50  ;;  %v4906_v54 = vpack.c.bf16 %v11007_v57, %v10981_v16  ;;  %v7597_v20 = vld [vmem:[%s11361_s4 + $0x5e8] sm:$0xff]   ;;  %v7565_v49 = vld [vmem:[%s11361_s4 + $0x7c0] sm:$0xff]  }
 0x6bc   :  { %v4905_v14 = vpack.c.bf16 %v11011_v22, %v10992_v30  ;;  %v4904_v11 = vpack.c.bf16 %v11015_v34, %v10996_v35  ;;  %v4870_v61 = vmul.f32 %v10895_v40, %v10590_v60  ;;  %v4879_v60 = vmul.f32 %v10953_v5, %v11929_v27  ;;  %v7589_v27 = vld [vmem:[%s11361_s4 + $0x7f0] sm:$0xff]  }
 0x6bd   :  { %5461 = vmatprep.mubr.bf16.mxu1 %v4901_v63  ;;  %7139 = vmatpush3.bf16.msra.mxu1 %v7544_v24  ;;  %v4887_v24 = vmul.f32 %v10966_v45, %v10775_v10  ;;  %v7569_v10 = vld [vmem:[%s11361_s4 + $0x7c8] sm:$0xff]  }
 0x6be   :  { %5462 = vmatmul.mubr.bf16.gmra.mrb[128].mxu1 %v4900_v41  ;;  %7140 = vmatprep.subr.bf16.mxu1 %v7545_v0  ;;  %v11928_v0 = vld [vmem:[#allocation69_spill] sm:$0xff] }
 0x6bf   :  { %5502 = vmatprep.mubr.bf16.mxu1 %v4895_v48  ;;  %4496 = vmatmul.mubr.bf16.vlgmr.msra.gmra.mrb[104].mxu0 %v11924_v39  ;;  %v4862_v63 = vmul.f32 %v10887_v1, %v11928_v0  ;;  %v7598_v41 = vld [vmem:[%s11361_s4 + $0x5a8] sm:$0xff]   ;;  %v7582_v0 = vld [vmem:[%s11361_s4 + $0x7a0] sm:$0xff]  }
 0x6c0   :  { %4503 = vmatprep.mubr.bf16.mxu0 %v11925_v28  ;;  %7075 = vmatpush3.bf16.msra.mxu0 %v7580_v23  ;;  %v7566_v23 = vld [vmem:[%s11361_s4 + $0x780] sm:$0xff]  }
 0x6c1   :  { %7141 = vmatpush3.bf16.msra.mxu1 %v7546_v17  ;;  %7076 = vmatprep.subr.bf16.mxu0 %v7583_v46  ;;  %v4894_v48 = vpack.c.bf16 %v4870_v61, %v4862_v63  ;;  %v7599_v46 = vld [vmem:[%s11361_s4 + $0x5f0] sm:$0xff]   ;;  %v7585_v63 = vld [vmem:[%s11361_s4 + $0x7e8] sm:$0xff]  }
 0x6c2   :  { %7142 = vmatprep.subr.bf16.mxu1 %v7549_v59  ;;  %v4903_v59 = vpack.c.bf16 %v4887_v24, %v4879_v60  ;;  %v11937_v61 = vld [vmem:[#allocation86_spill] sm:$0xff]  ;;  %v11940_v60 = vld [vmem:[#allocation81_spill] sm:$0xff] }
 0x6c4   :  { %7077 = vmatpush3.bf16.msra.mxu0 %v7584_v15 }
 0x6c5   :  { %7143 = vmatpush3.bf16.msra.mxu1 %v7550_v51  ;;  %7078 = vmatprep.subr.bf16.mxu0 %v7587_v6  ;;  %v7600_v51 = vld [vmem:[%s11361_s4 + $0x5b0] sm:$0xff]   ;;  %v7570_v6 = vld [vmem:[%s11361_s4 + $0x788] sm:$0xff]  }
 0x6c6   :  { %7144 = vmatprep.subr.bf16.mxu1 %v7553_v18 }
 0x6c7   :  { %4504 = vmatmul.mubr.bf16.gmra.mrb[108].mxu0 %v11926_v44  ;;  %v7006_v55 = vpop.f32.mrb[108].mxu1 }
 0x6c8   :  { %7079 = vmatpush3.bf16.msra.mxu0 %v7588_v8  ;;  %4593 = vmatprep.mubr.bf16.mxu0 %v11927_v43  ;;  %v7007_v47 = vpop.f32.mrb[109].mxu1  ;;  %v7601_v8 = vld [vmem:[%s11361_s4 + $0x5f8] sm:$0xff]   ;;  %v11931_v43 = vld [vmem:[#allocation77_spill] sm:$0xff] }
 0x6c9   :  { %7145 = vmatpush3.bf16.msra.mxu1 %v7554_v42  ;;  %7080 = vmatprep.subr.bf16.mxu0 %v7591_v21  ;;  %v11087_v29 = vadd.f32 %v7007_v47, %v7006_v55  ;;  %v7009_v3 = vpop.f32.mrb[110].mxu1  ;;  %v11930_v42 = vld [vmem:[#allocation82_spill] sm:$0xff]  ;;  %v11933_v55 = vld [vmem:[#allocation12_spill] sm:$0xff] }
 0x6ca   :  { %7146 = vmatprep.subr.bf16.mxu1 %v7557_v33  ;;  %v7010_v31 = vpop.f32.mrb[111].mxu1  ;;  %v4886_v21 = vmul.f32 %v10966_v45, %v11930_v42  ;;  %v7573_v33 = vld [vmem:[%s11361_s4 + $0x7d0] sm:$0xff]   ;;  %v4867_v47 = vmul.f32 %v10887_v1, %v11933_v55  ;;  %v7581_v1 = vld [vmem:[%s11361_s4 + $0x7e0] sm:$0xff]  }
 0x6cb   :  { %v11103_v25 = vadd.f32 %v7010_v31, %v7009_v3  ;;  %v7574_v45 = vld [vmem:[%s11361_s4 + $0x790] sm:$0xff]   ;;  %v11935_v31 = vld [vmem:[#allocation80_spill] sm:$0xff] }
 0x6cc   :  { %7081 = vmatpush3.bf16.msra.mxu0 %v7592_v52  ;;  %v4875_v52 = vmul.f32 %v10895_v40, %v11931_v43  ;;  %v7577_v40 = vld [vmem:[%s11361_s4 + $0x7d8] sm:$0xff]  }
 0x6cd   :  { %7147 = vmatpush3.bf16.msra.mxu1 %v7558_v9  ;;  %7082 = vmatprep.subr.bf16.mxu0 %v7595_v12  ;;  %v11932_v9 = vld [vmem:[#allocation71_spill] sm:$0xff] }
 0x6ce   :  { %7148 = vmatprep.subr.bf16.mxu1 %v7561_v26  ;;  %v4878_v12 = vmul.f32 %v10953_v5, %v11932_v9  ;;  %v7602_v26 = vld [vmem:[%s11361_s4 + $0x5b8] sm:$0xff]   ;;  %v4899_v5 = vpack.c.bf16 %v4875_v52, %v4867_v47  ;;  %v7603_v9 = vld [vmem:[%s11362_s5 + $0x20] sm:$0xff]  }
 0x6d0   :  { %7083 = vmatpush3.bf16.msra.mxu0 %v7596_v36  ;;  %v7012_v17 = vpop.f32.mrb[112].mxu1  ;;  %v4902_v3 = vpack.c.bf16 %v4886_v21, %v4878_v12  ;;  %v7578_v36 = vld [vmem:[%s11361_s4 + $0x798] sm:$0xff]  }
 0x6d1   :  { %7149 = vmatpush3.bf16.msra.mxu1 %v7562_v19  ;;  %7084 = vmatprep.subr.bf16.mxu0 %v7597_v20  ;;  %v7013_v39 = vpop.f32.mrb[113].mxu1  ;;  %v11934_v19 = vld [vmem:[#allocation75_spill] sm:$0xff] }
 0x6d2   :  { %7190 = vmatprep.subr.bf16.mxu1 %v7565_v49  ;;  %v11123_v28 = vadd.f32 %v7013_v39, %v7012_v17  ;;  %v7015_v15 = vpop.f32.mrb[114].mxu1  ;;  %v11936_v20 = vpack.c.bf16 %v11934_v19, %v11935_v31  ;;  %v11938_v49 = vld [vmem:[#allocation84_spill] sm:$0xff]  ;;  %v7593_v17 = vld [vmem:[%s11361_s4 + $0x7f8] sm:$0xff]  }
 0x6d3   :  { %v7016_v18 = vpop.f32.mrb[115].mxu1  ;;  %v11939_v24 = vpack.c.bf16 %v11937_v61, %v11938_v49 }
 0x6d4   :  { %5503 = vmatmul.mubr.bf16.vlgmr.msra.gmra.mrb[132].mxu1 %v4894_v48  ;;  %7085 = vmatpush3.bf16.msra.mxu0 %v7598_v41  ;;  %v11139_v44 = vadd.f32 %v7016_v18, %v7015_v15  ;;  %v7586_v41 = vld [vmem:[%s11361_s4 + $0x7a8] sm:$0xff]  }
 0x6d5   :  { %5510 = vmatprep.mubr.bf16.mxu1 %v4903_v59  ;;  %7191 = vmatpush3.bf16.msra.mxu1 %v7566_v23  ;;  %v11941_v23 = vld [vmem:[#allocation79_spill] sm:$0xff] }
 0x6d6   :  { %7192 = vmatprep.subr.bf16.mxu1 %v7569_v10  ;;  %7086 = vmatprep.subr.bf16.mxu0 %v7599_v46  ;;  %v11942_v48 = vpack.c.bf16 %v11940_v60, %v11941_v23  ;;  %v7590_v10 = vld [vmem:[%s11361_s4 + $0x7b0] sm:$0xff]  }
 0x6d8   :  { %7087 = vmatpush3.bf16.msra.mxu0 %v7600_v51  ;;  %v7594_v51 = vld [vmem:[%s11361_s4 + $0x7b8] sm:$0xff]  }
 0x6d9   :  { %7193 = vmatpush3.bf16.msra.mxu1 %v7570_v6  ;;  %7088 = vmatprep.subr.bf16.mxu0 %v7601_v8 }
 0x6da   :  { %7194 = vmatprep.subr.bf16.mxu1 %v7573_v33 }
 0x6dc   :  { %5511 = vmatmul.mubr.bf16.gmra.mrb[136].mxu1 %v4902_v3  ;;  %7089 = vmatpush3.bf16.msra.mxu0 %v7602_v26 }
 0x6dd   :  { %7195 = vmatpush3.bf16.msra.mxu1 %v7574_v45  ;;  %5600 = vmatprep.mubr.bf16.mxu1 %v4899_v5 }
 0x6de   :  { %7196 = vmatprep.subr.bf16.mxu1 %v7577_v40  ;;  %7274 = vmatprep.subr.bf16.mxu0 %v7603_v9 }
 0x6df   :  { %4594 = vmatmul.mubr.bf16.vlgmr.msra.gmra.mrb[112].mxu0 %v11936_v20 }
 0x6e0   :  { %4601 = vmatprep.mubr.bf16.mxu0 %v11939_v24  ;;  %7275 = vmatpush3.bf16.msra.mxu0 %v7603_v9 }
 0x6e1   :  { %7197 = vmatpush3.bf16.msra.mxu1 %v7578_v36  ;;  %7276 = vmatprep.subr.bf16.mxu0 %v7604_v32 }
 0x6e2   :  { %7198 = vmatprep.subr.bf16.mxu1 %v7581_v1 }
 0x6e4   :  { %7277 = vmatpush3.bf16.msra.mxu0 %v7604_v32 }
 0x6e5   :  { %7199 = vmatpush3.bf16.msra.mxu1 %v7582_v0  ;;  %7162 = vmatprep.subr.bf16.mxu0 %v7605_v56 }
 0x6e6   :  { %7200 = vmatprep.subr.bf16.mxu1 %v7585_v63 }
 0x6e7   :  { %4602 = vmatmul.mubr.bf16.gmra.mrb[116].mxu0 %v11942_v48 }
 0x6e9   :  { %7201 = vmatpush3.bf16.msra.mxu1 %v7586_v41  ;;  %v7062_v46 = vpop.f32.mrb[116].mxu1 }
 0x6ea   :  { %7202 = vmatprep.subr.bf16.mxu1 %v7589_v27  ;;  %v7063_v59 = vpop.f32.mrb[117].mxu1 }
 0x6eb   :  { %v7064_v39 = vadd.f32 %v7063_v59, %v7062_v46  ;;  %v7065_v15 = vpop.f32.mrb[118].mxu1 }
 0x6ec   :  { %v7066_v6 = vpop.f32.mrb[119].mxu1 }
 0x6ed   :  { %7203 = vmatpush3.bf16.msra.mxu1 %v7590_v10  ;;  %v7067_v18 = vadd.f32 %v7066_v6, %v7065_v15 }
 0x6ee   :  { %7204 = vmatprep.subr.bf16.mxu1 %v7593_v17 }
 0x6f1   :  { %7205 = vmatpush3.bf16.msra.mxu1 %v7594_v51  ;;  %v7068_v8 = vpop.f32.mrb[120].mxu1 }
 0x6f2   :  { %v7069_v42 = vpop.f32.mrb[121].mxu1 }
 0x6f3   :  { %v7070_v21 = vadd.f32 %v7069_v42, %v7068_v8  ;;  %v7071_v33 = vpop.f32.mrb[122].mxu1 }
 0x6f4   :  { %5601 = vmatmul.mubr.bf16.vlgmr.msra.gmra.mrb[140].mxu1 %v4898_v58  ;;  %v7072_v43 = vpop.f32.mrb[123].mxu1 }
 0x6f5   :  { %5608 = vmatprep.mubr.bf16.mxu1 %v4907_v13  ;;  %v7073_v52 = vadd.f32 %v7072_v43, %v7071_v33 }
 0x6fc   :  { %5609 = vmatmul.mubr.bf16.gmra.mrb[144].mxu1 %v4906_v54 }
 0x787   :  { %v7122_v58 = vpop.f32.mrb[124].mxu1 }
 0x788   :  { %v7123_v50 = vpop.f32.mrb[125].mxu1 }
 0x789   :  { %v7124_v16 = vadd.f32 %v7123_v50, %v7122_v58  ;;  %v7125_v4 = vpop.f32.mrb[126].mxu1 }
 0x78a   :  { %v7126_v57 = vpop.f32.mrb[127].mxu1 }
 0x78b   :  { %v7127_v13 = vadd.f32 %v7126_v57, %v7125_v4 }
 0x791   :  { %v7128_v54 = vpop.f32.mrb[128].mxu1 }
 0x792   :  { %v7129_v12 = vpop.f32.mrb[129].mxu1  ;;  %v7034_v26 = vpop.f32.mrb[104].mxu0 }
 0x793   :  { %v7130_v45 = vadd.f32 %v7129_v12, %v7128_v54  ;;  %v7131_v55 = vpop.f32.mrb[130].mxu1  ;;  %v7035_v47 = vpop.f32.mrb[105].mxu0 }
 0x794   :  { %v7132_v3 = vpop.f32.mrb[131].mxu1  ;;  %v7036_v40 = vadd.f32 %v7035_v47, %v7034_v26  ;;  %v7037_v5 = vpop.f32.mrb[106].mxu0 }
 0x795   :  { %v7133_v36 = vadd.f32 %v7132_v3, %v7131_v55  ;;  %v7038_v1 = vpop.f32.mrb[107].mxu0 }
 0x796   :  { %v4498_v19 = vadd.f32 %v7036_v40, %v11087_v29  ;;  %v7039_v31 = vadd.f32 %v7038_v1, %v7037_v5  ;;  %v7606_v40 = vld [vmem:[%s11361_s4 + $0x700] sm:$0xff]   ;;  %v7608_v1 = vld [vmem:[%s11361_s4 + $0x708] sm:$0xff]  }
 0x798   :  { %v4501_v20 = vadd.f32 %v7039_v31, %v11103_v25  ;;  %v4547_v61 = vadd.f32 %v7064_v39, %v4498_v19  ;;  %v7609_v19 = vld [vmem:[%s11361_s4 + $0x750] sm:$0xff]  }
 0x79a   :  { %v7040_v49 = vpop.f32.mrb[108].mxu0  ;;  %v4550_v24 = vadd.f32 %v7067_v18, %v4501_v20 }
 0x79b   :  { %v7041_v0 = vpop.f32.mrb[109].mxu0 }
 0x79c   :  { %v7042_v63 = vadd.f32 %v7041_v0, %v7040_v49  ;;  %v7043_v41 = vpop.f32.mrb[110].mxu0  ;;  %v7612_v0 = vld [vmem:[%s11361_s4 + $0x718] sm:$0xff]  }
 0x79d   :  { %v7044_v27 = vpop.f32.mrb[111].mxu0 }
 0x79e   :  { %v4506_v60 = vadd.f32 %v7042_v63, %v11123_v28  ;;  %v7045_v23 = vadd.f32 %v7044_v27, %v7043_v41  ;;  %v7613_v63 = vld [vmem:[%s11361_s4 + $0x760] sm:$0xff]  }
 0x7a0   :  { %v4509_v48 = vadd.f32 %v7045_v23, %v11139_v44  ;;  %v4555_v10 = vadd.f32 %v7070_v21, %v4506_v60 }
 0x7a2   :  { %v4558_v17 = vadd.f32 %v7073_v52, %v4509_v48  ;;  %v7614_v48 = vld [vmem:[%s11361_s4 + $0x720] sm:$0xff]  }
 0x7a7   :  { %v7150_v46 = vpop.f32.mrb[132].mxu1 }
 0x7a8   :  { %v7151_v59 = vpop.f32.mrb[133].mxu1 }
 0x7a9   :  { %v7152_v29 = vadd.f32 %v7151_v59, %v7150_v46  ;;  %v7153_v15 = vpop.f32.mrb[134].mxu1  ;;  %v7616_v59 = vld [vmem:[%s11361_s4 + $0x728] sm:$0xff]  }
 0x7aa   :  { %v7154_v51 = vpop.f32.mrb[135].mxu1 }
 0x7ab   :  { %v11214_v25 = vadd.f32 %v7152_v29, %v7124_v16  ;;  %v7155_v39 = vadd.f32 %v7154_v51, %v7153_v15  ;;  %v7617_v29 = vld [vmem:[%s11361_s4 + $0x770] sm:$0xff]   ;;  %v7619_v51 = vld [vmem:[%s11361_s4 + $0x778] sm:$0xff]  }
 0x7ac   :  { %v7618_v15 = vld [vmem:[%s11361_s4 + $0x730] sm:$0xff]  }
 0x7ad   :  { %v11216_v6 = vadd.f32 %v7155_v39, %v7127_v13  ;;  %v7620_v39 = vld [vmem:[%s11361_s4 + $0x738] sm:$0xff]  }
 0x7af   :  { %v7156_v18 = vpop.f32.mrb[136].mxu1 }
 0x7b0   :  { %v7157_v8 = vpop.f32.mrb[137].mxu1 }
 0x7b1   :  { %v7158_v42 = vadd.f32 %v7157_v8, %v7156_v18  ;;  %v7159_v33 = vpop.f32.mrb[138].mxu1  ;;  %v7621_v18 = vld [vmem:[%s11362_s5 + $0x30] sm:$0xff]   ;;  %v7622_v8 = vld [vmem:[%s11362_s5 + $0x38] sm:$0xff]  }
 0x7b2   :  { %v7160_v28 = vpop.f32.mrb[139].mxu1  ;;  %v7090_v43 = vpop.f32.mrb[112].mxu0 }
 0x7b3   :  { %v11218_v9 = vadd.f32 %v7158_v42, %v7130_v45  ;;  %v7161_v44 = vadd.f32 %v7160_v28, %v7159_v33  ;;  %v7091_v21 = vpop.f32.mrb[113].mxu0 }
 0x7b4   :  { %v7092_v52 = vadd.f32 %v7091_v21, %v7090_v43  ;;  %v7093_v32 = vpop.f32.mrb[114].mxu0 }
 0x7b5   :  { %v11220_v56 = vadd.f32 %v7161_v44, %v7133_v36  ;;  %v7094_v58 = vpop.f32.mrb[115].mxu0  ;;  %v7607_v36 = vld [vmem:[%s11361_s4 + $0x748] sm:$0xff]  }
 0x7b6   :  { %v4596_v50 = vadd.f32 %v7092_v52, %v4547_v61  ;;  %v7095_v16 = vadd.f32 %v7094_v58, %v7093_v32 }
 0x7b8   :  { %v4599_v4 = vadd.f32 %v7095_v16, %v4550_v24  ;;  %v7610_v24 = vld [vmem:[%s11361_s4 + $0x710] sm:$0xff]  }
 0x7ba   :  { %v4610_v57 = vpack.c.bf16 %v4599_v4, %v4596_v50  ;;  %v7096_v13 = vpop.f32.mrb[116].mxu0 }
 0x7bb   :  { %v7097_v54 = vpop.f32.mrb[117].mxu0 }
 0x7bc   :  { %v7098_v12 = vadd.f32 %v7097_v54, %v7096_v13  ;;  %v7099_v26 = vpop.f32.mrb[118].mxu0  ;;  %7278 = vmatprep.mubr.msk.bf16.mxu0 %vm807_vm4, %v4610_v57 }
 0x7bd   :  { %v7100_v55 = vpop.f32.mrb[119].mxu0 }
 0x7be   :  { %v4604_v45 = vadd.f32 %v7098_v12, %v4555_v10  ;;  %v7101_v47 = vadd.f32 %v7100_v55, %v7099_v26 }
 0x7c0   :  { %v4607_v3 = vadd.f32 %v7101_v47, %v4558_v17  ;;  %v7615_v17 = vld [vmem:[%s11361_s4 + $0x768] sm:$0xff]  }
 0x7c2   :  { %v4611_v5 = vpack.c.bf16 %v4607_v3, %v4604_v45  ;;  %v7625_v45 = vld [vmem:[%s11364_s7 + $0x10] sm:$0xff]   ;;  %v7626_v3 = vld [vmem:[%s11364_s7 + $0x18] sm:$0xff]  }
 0x7c4   :  { %7279 = vmatmul.mubr.msk.bf16.vlgmr.msra.gmra.mrb[84].mxu0 %vm807_vm4, %v4611_v5  ;;  %v7627_v5 = vld [vmem:[%s11364_s7 + $0x20] sm:$0xff]  }
 0x7c5   :  { %7163 = vmatpush3.bf16.msra.mxu0 %v7606_v40  ;;  %5551 = vmatprep.mubr.bf16.mxu0 %v4897_v53 }
 0x7c6   :  { %7164 = vmatprep.subr.bf16.mxu0 %v7607_v36 }
 0x7c7   :  { %v7206_v31 = vpop.f32.mrb[140].mxu1 }
 0x7c8   :  { %v7207_v20 = vpop.f32.mrb[141].mxu1 }
 0x7c9   :  { %v7208_v61 = vadd.f32 %v7207_v20, %v7206_v31  ;;  %v7209_v49 = vpop.f32.mrb[142].mxu1  ;;  %7165 = vmatpush3.bf16.msra.mxu0 %v7608_v1  ;;  %v7628_v1 = vld [vmem:[%s11364_s7 + $0x28] sm:$0xff]   ;;  %v7629_v31 = vld [vmem:[%s11364_s7 + $0x30] sm:$0xff]  }
 0x7ca   :  { %v7210_v62 = vpop.f32.mrb[143].mxu1  ;;  %7166 = vmatprep.subr.bf16.mxu0 %v7609_v19 }
 0x7cb   :  { %v7211_v53 = vadd.f32 %v7210_v62, %v7209_v49  ;;  %v6740_v62 = vld [vmem:[%s11365_s8] ss:$0 sm:$0xff] }
 0x7cd   :  { %7167 = vmatpush3.bf16.msra.mxu0 %v7610_v24 }
 0x7ce   :  { %7168 = vmatprep.subr.bf16.mxu0 %v7611_v37 }
 0x7cf   :  { %v7212_v41 = vpop.f32.mrb[144].mxu1 }
 0x7d0   :  { %v7213_v27 = vpop.f32.mrb[145].mxu1 }
 0x7d1   :  { %v7214_v60 = vadd.f32 %v7213_v27, %v7212_v41  ;;  %v7215_v23 = vpop.f32.mrb[146].mxu1  ;;  %7169 = vmatpush3.bf16.msra.mxu0 %v7612_v0  ;;  %v11944_v41 = vld [vmem:[#allocation6_spill] sm:$0xff] }
 0x7d2   :  { %v7216_v10 = vpop.f32.mrb[147].mxu1  ;;  %7170 = vmatprep.subr.bf16.mxu0 %v7613_v63 }
 0x7d3   :  { %v7217_v46 = vadd.f32 %v7216_v10, %v7215_v23  ;;  %v11945_v23 = vld [vmem:[#allocation5_spill] sm:$0xff] }
 0x7d5   :  { %7171 = vmatpush3.bf16.msra.mxu0 %v7614_v48 }
 0x7d6   :  { %7172 = vmatprep.subr.bf16.mxu0 %v7615_v17 }
 0x7d9   :  { %7173 = vmatpush3.bf16.msra.mxu0 %v7616_v59 }
 0x7da   :  { %7174 = vmatprep.subr.bf16.mxu0 %v7617_v29 }
 0x7dd   :  { %7175 = vmatpush3.bf16.msra.mxu0 %v7618_v15 }
 0x7de   :  { %7176 = vmatprep.subr.bf16.mxu0 %v7619_v51 }
 0x7e1   :  { %7177 = vmatpush3.bf16.msra.mxu0 %v7620_v39 }
 0x7e2   :  { %7282 = vmatprep.subr.bf16.mxu0 %v7621_v18 }
 0x7e4   :  { %5552 = vmatmul.mubr.bf16.vlgmr.msra.gmra.mrb[120].mxu0 %v4896_v7 }
 0x7e5   :  { %5559 = vmatprep.mubr.bf16.mxu0 %v4905_v14  ;;  %7283 = vmatpush3.bf16.msra.mxu0 %v7621_v18 }
 0x7e6   :  { %7284 = vmatprep.subr.bf16.mxu0 %v7622_v8 }
 0x7e9   :  { %7285 = vmatpush3.bf16.msra.mxu0 %v7622_v8 }
 0x7ea   :  { %7290 = vmatprep.subr.bf16.mxu0 %v11943_v2 }
 0x7ec   :  { %5560 = vmatmul.mubr.bf16.gmra.mrb[124].mxu0 %v4904_v11 }
 0x8b7   :  { %v7178_v38 = vpop.f32.mrb[120].mxu0 }
 0x8b8   :  { %v7179_v7 = vpop.f32.mrb[121].mxu0 }
 0x8b9   :  { %v7180_v30 = vadd.f32 %v7179_v7, %v7178_v38  ;;  %v7181_v22 = vpop.f32.mrb[122].mxu0 }
 0x8ba   :  { %v7182_v35 = vpop.f32.mrb[123].mxu0 }
 0x8bb   :  { %v5554_v34 = vadd.f32 %v7180_v30, %v11214_v25  ;;  %v7183_v14 = vadd.f32 %v7182_v35, %v7181_v22 }
 0x8bd   :  { %v5603_v11 = vadd.f32 %v7208_v61, %v5554_v34  ;;  %v5557_v42 = vadd.f32 %v7183_v14, %v11216_v6  ;;  %v7623_v6 = vld [vmem:[%s11364_s7] sm:$0xff]   ;;  %v7630_v61 = vld [vmem:[%s11364_s7 + $0x38] sm:$0xff]  }
 0x8bf   :  { %v5606_v33 = vadd.f32 %v7211_v53, %v5557_v42  ;;  %v7184_v28 = vpop.f32.mrb[124].mxu0 }
 0x8c0   :  { %v7185_v43 = vpop.f32.mrb[125].mxu0 }
 0x8c1   :  { %v5617_v44 = vpack.c.bf16 %v5606_v33, %v5603_v11  ;;  %v7186_v21 = vadd.f32 %v7185_v43, %v7184_v28  ;;  %v7187_v52 = vpop.f32.mrb[126].mxu0 }
 0x8c2   :  { %v7188_v32 = vpop.f32.mrb[127].mxu0 }
 0x8c3   :  { %v5562_v58 = vadd.f32 %v7186_v21, %v11218_v9  ;;  %v7189_v50 = vadd.f32 %v7188_v32, %v7187_v52  ;;  %7286 = vmatprep.mubr.msk.bf16.mxu0 %vm807_vm4, %v5617_v44  ;;  %v7624_v9 = vld [vmem:[%s11364_s7 + $0x8] sm:$0xff]   ;;  %s5956_s7 = sshll.u32 %s7950_s16, 4  ;;  %s5957_s7 = int_to_ptr.vmem [resolvable:$true] %s5956_s7 }
 0x8c4   :  { %s7923_s17 = scalar_lea.vmem %s5957_s7, 128  ;;  %p7928_p1 = scmp.lt.s32.totalorder %s5957_s7, %s5957_s7 }
 0x8c5   :  { %v5611_v16 = vadd.f32 %v7214_v60, %v5562_v58  ;;  %v5565_v4 = vadd.f32 %v7189_v50, %v11220_v56  ;;  %v6136_v56 = vld [vmem:[%s11363_s6] ss:$0 sm:$0xff]  ;;  %p7924_p0 = scmp.ne.s32.totalorder %s5957_s7, %s7923_s17  ;;  %p7929_p2 = scmp.lt.s32.totalorder %s7923_s17, %s7923_s17 }
 0x8c7   :  { %v5614_v25 = vadd.f32 %v7217_v46, %v5565_v4  ;;  %p7930_p3 = por %p7929_p2, %p7928_p1 }
 0x8c9   :  { %v5618_v57 = vpack.c.bf16 %v5614_v25, %v5611_v16  ;;  %p7931_p4 = pnand %p7930_p3, %p7924_p0 }
 0x8cb   :  { %7287 = vmatmul.mubr.msk.bf16.vlgmr.msra.gmra.mrb[84].mxu0 %vm807_vm4, %v5618_v57 }
 0x8cc   :  { %7291 = vmatpush3.bf16.msra.mxu0 %v7623_v6  ;;  %7294 = vmatprep.mubr.msk.bf16.mxu0 %vm7948_vm1, %v11943_v2 }
 0x8cd   :  { %7292 = vmatprep.subr.bf16.mxu0 %v11943_v2 }
 0x8d0   :  { %7293 = vmatpush3.bf16.msra.mxu0 %v7624_v9 }
 0x8d1   :  { %7298 = vmatprep.subr.bf16.mxu0 %v11943_v2 }
 0x99e   :  { %v7288_v13 = vpop.f32.mrb[84].mxu0 }
 0x99f   :  { %v5676_v54 = vpop.f32.mrb[85].mxu0  ;;  %v7322_v19 = vadd.f32 %v7288_v13, %v6136_v56 }
 0x9a0   :  { %v7323_v12 = vadd.f32 %v6136_v56, %v5676_v54  ;;  %v7289_v26 = vpop.f32.mrb[86].mxu0 }
 0x9a1   :  { %v5679_v55 = vpop.f32.mrb[87].mxu0  ;;  %v5824_v20 = vpack.c.bf16 %v7322_v19, %v7322_v19  ;;  %v7324_v49 = vadd.f32 %v7289_v26, %v6136_v56 }
 0x9a2   :  { %v5696_v47 = vpack.c.bf16 %v7323_v12, %v7323_v12  ;;  %v7325_v40 = vadd.f32 %v6136_v56, %v5679_v55 }
 0x9a3   :  { %v5885_v24 = vpack.c.bf16 %v7324_v49, %v7324_v49 }
 0x9a4   :  { %7295 = vmatmul.mubr.msk.bf16.vlgmr.msra.gmra.mrb[128].mxu0 %vm807_vm4, %v5696_v47  ;;  %v5763_v36 = vpack.c.bf16 %v7325_v40, %v7325_v40 }
 0x9a5   :  { %7299 = vmatpush3.bf16.msra.mxu0 %v7625_v45  ;;  %7302 = vmatprep.mubr.msk.bf16.mxu0 %vm7948_vm1, %v11943_v2 }
 0x9a6   :  { %7300 = vmatprep.subr.bf16.mxu0 %v11943_v2 }
 0x9a9   :  { %7301 = vmatpush3.bf16.msra.mxu0 %v7626_v3 }
 0x9aa   :  { %7306 = vmatprep.subr.bf16.mxu0 %v11943_v2 }
 0x9b0   :  { %7303 = vmatmul.mubr.msk.bf16.vlgmr.msra.gmra.mrb[128].mxu0 %vm807_vm4, %v5763_v36 }
 0x9b1   :  { %7307 = vmatpush3.bf16.msra.mxu0 %v7627_v5  ;;  %7310 = vmatprep.mubr.msk.bf16.mxu0 %vm7948_vm1, %v11943_v2 }
 0x9b2   :  { %7308 = vmatprep.subr.bf16.mxu0 %v11943_v2 }
 0x9b5   :  { %7309 = vmatpush3.bf16.msra.mxu0 %v7628_v1 }
 0x9b6   :  { %7314 = vmatprep.subr.bf16.mxu0 %v11943_v2 }
 0x9bc   :  { %7311 = vmatmul.mubr.msk.bf16.vlgmr.msra.gmra.mrb[128].mxu0 %vm807_vm4, %v5824_v20 }
 0x9bd   :  { %7315 = vmatpush3.bf16.msra.mxu0 %v7629_v31  ;;  %7318 = vmatprep.mubr.msk.bf16.mxu0 %vm7948_vm1, %v11943_v2 }
 0x9be   :  { %7316 = vmatprep.subr.bf16.mxu0 %v11943_v2 }
 0x9c1   :  { %7317 = vmatpush3.bf16.msra.mxu0 %v7630_v61 }
 0x9c8   :  { %7319 = vmatmul.mubr.msk.bf16.vlgmr.msra.gmra.mrb[128].mxu0 %vm807_vm4, %v5885_v24 }
 0xa9b   :  { %v5939_v37 = vpop.f32.mrb[128].mxu0 }
 0xa9c   :  { %v7326_v53 = vadd.f32 %v6740_v62, %v5939_v37  ;;  %v7320_v0 = vpop.f32.mrb[129].mxu0 }
 0xa9d   :  { %v5942_v63 = vpop.f32.mrb[130].mxu0 }
 0xa9e   :  { %v5946_v27 = vmul.f32 %v7326_v53, %v11944_v41  ;;  %v7321_v60 = vpop.f32.mrb[131].mxu0 }
 0xaa0   :  { %v5947_v48 = vadd.f32 %v5946_v27, %v11945_v23 }
 0xaa2   :  { %5949 = vst.msk [vmem:[#allocation2] sm:$0xff] %vm5948_vm5, %v5947_v48 }
 0xaa3   :  { %7934 = shalt.err (!%p7931_p4)
}
 0xaa4   :  { %s7935_s19 = scalar_lea.hbm %s11366_s9, 128 }
 0xaa5   :  { %p7936_p5 = scmp.ne.s32.totalorder %s11366_s9, %s7935_s19  ;;  %p7939_p6 = scmp.lt.u32.totalorder %s7935_s19, %s11366_s9 }
 0xaa7   :  { %p7941_p7 = pnand %p7939_p6, %p7936_p5 }
 0xaa9   :  { %7944 = shalt.err (!%p7941_p7)
}
 0xaaa   :  { %5959 = dma.vmem_to_hbm [thread:$0]  %s5957_s7, 128, %s11366_s9, [#allocation3]  }
 0xaab   :  { %7945 = dma.done.wait [#allocation3], 128  }
 0xaac   :  { %7946 = vsyncadd [#allocation3], 4294967168 }
 0xaad   :  { %5963 = vsyncpa [#allocation3], 1 }

</bundles_post_ra>
